<compile_context>
chip_gen: v7x
topology: tpu7x:2x2x1
jax: 0.10.0
libtpu: 0.0.40
codegen_flags: <defaults>
</compile_context>

<pallas_src>
import functools
import math

import jax
import jax.numpy as jnp
import numpy as np
from jax.experimental import pallas as pl
from jax.experimental.pallas import tpu as pltpu

EPS = 1e-5
_W_OFF = 8   # sublane-aligned column offset of the un-padded image inside the scratch


# ---------------------------------------------------------------------------
# In-kernel helpers
# ---------------------------------------------------------------------------
def _conv3x3_accumulate(xp_ref, x, w_ref, *, stride, h_out, w_out):
    """3x3 conv (pad=1) of one image.

    x      : (H, W, Cin) f32 value (already affine/ReLU'd when fused).
    xp_ref : (H + 2, W + 2*_W_OFF, Cin) f32 VMEM scratch for the zero padding.
    w_ref  : (3, 3, Cin, Cout) bf16 weights.
    returns: (h_out * w_out, Cout) f32 accumulator.
    """
    h, w, cin = x.shape
    cout = w_ref.shape[-1]

    # In-VMEM zero padding (replaces the wrapper-side jnp.pad HBM round trip).
    # The image sits at a sublane-aligned W offset; window reads below are
    # shifted by (_W_OFF - 1) instead of storing at an unaligned offset.
    xp_ref[...] = jnp.zeros_like(xp_ref)
    xp_ref[1:h + 1, _W_OFF:_W_OFF + w, :] = x

    acc = jnp.zeros((h_out * w_out, cout), jnp.float32)
    for kh in range(3):
        for kw in range(3):
            w0 = _W_OFF - 1 + kw
            if stride == 1:
                win = xp_ref[kh:kh + h_out, w0:w0 + w_out, :]
            else:
                win = xp_ref[pl.ds(kh, h_out, stride),
                             pl.ds(w0, w_out, stride), :]
            lhs = win.reshape(h_out * w_out, cin).astype(jnp.bfloat16)
            acc = acc + jnp.dot(lhs, w_ref[kh, kw],
                                preferred_element_type=jnp.float32)
    return acc


def _store_conv_result(acc, out_ref, sum_ref, ssq_ref, h_out, w_out):
    """Write the conv result plus fused per-channel sum / sum-of-squares
    (BatchNorm statistics side outputs -> no extra HBM pass for stats)."""
    cout = acc.shape[-1]
    out_ref[...] = acc.reshape(h_out, w_out, cout)
    sum_ref[...] = jnp.sum(acc, axis=0, keepdims=True)
    ssq_ref[...] = jnp.sum(acc * acc, axis=0, keepdims=True)


# ---------------------------------------------------------------------------
# Kernels
# ---------------------------------------------------------------------------
def _conv1_kernel(x_ref, w_ref, out_ref, sum_ref, ssq_ref, xp_ref, *,
                  stride, h_out, w_out):
    acc = _conv3x3_accumulate(xp_ref, x_ref[...], w_ref,
                              stride=stride, h_out=h_out, w_out=w_out)
    _store_conv_result(acc, out_ref, sum_ref, ssq_ref, h_out, w_out)


def _conv1_proj_kernel(x_ref, w_ref, wsc_ref,
                       out_ref, sum_ref, ssq_ref,
                       sc_ref, scsum_ref, scssq_ref, xp_ref, *,
                       stride, h_out, w_out):
    x = x_ref[...]
    acc = _conv3x3_accumulate(xp_ref, x, w_ref,
                              stride=stride, h_out=h_out, w_out=w_out)
    _store_conv_result(acc, out_ref, sum_ref, ssq_ref, h_out, w_out)

    # Fused 1x1 projection shortcut; strided read straight from the input
    # block (no wrapper-side ::stride gather / extra HBM intermediate).
    if stride == 1:
        xs = x
    else:
        xs = x_ref[pl.ds(0, h_out, stride), pl.ds(0, w_out, stride), :]
    cin = xs.shape[-1]
    sc = jnp.dot(xs.reshape(h_out * w_out, cin).astype(jnp.bfloat16),
                 wsc_ref[...], preferred_element_type=jnp.float32)
    _store_conv_result(sc, sc_ref, scsum_ref, scssq_ref, h_out, w_out)


def _conv2_kernel(x_ref, scale_ref, bias_ref, w_ref,
                  out_ref, sum_ref, ssq_ref, xp_ref, *, h_out, w_out):
    # BN1-affine + ReLU fused onto the conv2 input (no standalone bn_relu pass).
    y = jnp.maximum(x_ref[...] * scale_ref[0] + bias_ref[0], 0.0)
    acc = _conv3x3_accumulate(xp_ref, y, w_ref,
                              stride=1, h_out=h_out, w_out=w_out)
    _store_conv_result(acc, out_ref, sum_ref, ssq_ref, h_out, w_out)


def _residual_epilogue_kernel(main_ref, sc_ref, sm_ref, bm_ref, ss_ref, bs_ref,
                              o_ref):
    # out = relu(bn2(conv2) + bn_sc(shortcut)); BN folded to scale/bias that
    # were pre-tiled to the 128-wide lane packing in the wrapper.
    o_ref[...] = jnp.maximum(
        main_ref[...] * sm_ref[...] + bm_ref[...] +
        sc_ref[...] * ss_ref[...] + bs_ref[...], 0.0)


# ---------------------------------------------------------------------------
# pallas_call wrappers
# ---------------------------------------------------------------------------
def _conv_pallas_call(x_nhwc, w_hwio, stride, *, bn_in=None, wsc=None):
    n, h, w, cin = x_nhwc.shape
    cout = w_hwio.shape[-1]
    h_out = (h - 1) // stride + 1
    w_out = (w - 1) // stride + 1

    w_bf16 = w_hwio.astype(jnp.bfloat16)

    x_spec = pl.BlockSpec((None, h, w, cin), lambda i: (i, 0, 0, 0))
    w_spec = pl.BlockSpec((3, 3, cin, cout), lambda i: (0, 0, 0, 0))
    out_spec = pl.BlockSpec((None, h_out, w_out, cout), lambda i: (i, 0, 0, 0))
    stat_spec = pl.BlockSpec((None, 1, cout), lambda i: (i, 0, 0))

    conv_shape = jax.ShapeDtypeStruct((n, h_out, w_out, cout), jnp.float32)
    stat_shape = jax.ShapeDtypeStruct((n, 1, cout), jnp.float32)

    scratch = [pltpu.VMEM((h + 2, w + 2 * _W_OFF, cin), jnp.float32)]
    cp = pltpu.CompilerParams(dimension_semantics=("parallel",))

    if bn_in is not None:                       # conv2: fused BN1 + ReLU input
        scale, bias = bn_in
        vec_spec = pl.BlockSpec((1, cin), lambda i: (0, 0))
        kern = functools.partial(_conv2_kernel, h_out=h_out, w_out=w_out)
        return pl.pallas_call(
            kern,
            grid=(n,),
            in_specs=[x_spec, vec_spec, vec_spec, w_spec],
            out_specs=(out_spec, stat_spec, stat_spec),
            out_shape=(conv_shape, stat_shape, stat_shape),
            scratch_shapes=scratch,
            compiler_params=cp,
        )(x_nhwc, scale, bias, w_bf16)

    if wsc is not None:                         # conv1 + fused 1x1 projection
        wsc_spec = pl.BlockSpec((cin, cout), lambda i: (0, 0))
        kern = functools.partial(_conv1_proj_kernel, stride=stride,
                                 h_out=h_out, w_out=w_out)
        return pl.pallas_call(
            kern,
            grid=(n,),
            in_specs=[x_spec, w_spec, wsc_spec],
            out_specs=(out_spec, stat_spec, stat_spec,
                       out_spec, stat_spec, stat_spec),
            out_shape=(conv_shape, stat_shape, stat_shape,
                       conv_shape, stat_shape, stat_shape),
            scratch_shapes=scratch,
            compiler_params=cp,
        )(x_nhwc, w_bf16, wsc.astype(jnp.bfloat16))

    kern = functools.partial(_conv1_kernel, stride=stride,
                             h_out=h_out, w_out=w_out)
    return pl.pallas_call(
        kern,
        grid=(n,),
        in_specs=[x_spec, w_spec],
        out_specs=(out_spec, stat_spec, stat_spec),
        out_shape=(conv_shape, stat_shape, stat_shape),
        scratch_shapes=scratch,
        compiler_params=cp,
    )(x_nhwc, w_bf16)


def _lane_pack(total, c):
    lanes = c * 128 // math.gcd(c, 128)          # lcm(c, 128)
    if total % lanes != 0:
        lanes = c                                # fallback (not hit by tests)
    return lanes, lanes // c


def _row_tile(rows, cap=1024):
    if rows <= cap:
        return rows
    for cand in range(cap - cap % 8, 0, -8):
        if rows % cand == 0:
            return cand
    return rows


def _residual_epilogue(main_nhwc, sc_nhwc, s_main, b_main, s_sc, b_sc):
    n, h, w, c = main_nhwc.shape
    total = n * h * w * c
    lanes, rep = _lane_pack(total, c)
    rows = total // lanes
    tile_r = _row_tile(rows)

    main2d = main_nhwc.reshape(rows, lanes)      # lane-dense 2D view (free)
    sc2d = sc_nhwc.reshape(rows, lanes)
    sm = jnp.tile(s_main.reshape(-1), rep).reshape(1, lanes)
    bm = jnp.tile(b_main.reshape(-1), rep).reshape(1, lanes)
    ss = jnp.tile(s_sc.reshape(-1), rep).reshape(1, lanes)
    bs = jnp.tile(b_sc.reshape(-1), rep).reshape(1, lanes)

    data_spec = pl.BlockSpec((tile_r, lanes), lambda i: (i, 0))
    vec_spec = pl.BlockSpec((1, lanes), lambda i: (0, 0))
    out2d = pl.pallas_call(
        _residual_epilogue_kernel,
        grid=(rows // tile_r,),
        in_specs=[data_spec, data_spec, vec_spec, vec_spec, vec_spec, vec_spec],
        out_specs=data_spec,
        out_shape=jax.ShapeDtypeStruct((rows, lanes), jnp.float32),
        compiler_params=pltpu.CompilerParams(dimension_semantics=("parallel",)),
    )(main2d, sc2d, sm, bm, ss, bs)
    return out2d.reshape(n, h, w, c)


# ---------------------------------------------------------------------------
# BatchNorm (training mode) folded to scale/bias from the fused kernel stats
# ---------------------------------------------------------------------------
def _bn_fold(sums, ssqs, count, gamma, beta):
    mean = jnp.sum(sums, axis=(0, 1)) / count
    var = jnp.maximum(jnp.sum(ssqs, axis=(0, 1)) / count - mean * mean, 0.0)
    scale = gamma / jnp.sqrt(var + EPS)
    bias = beta - mean * scale
    return scale.reshape(1, -1), bias.reshape(1, -1)


# ---------------------------------------------------------------------------
# BasicBlock forward (NCHW in / NCHW out, matching the torch module)
# ---------------------------------------------------------------------------
def basic_block_forward(x_nchw, params, *, in_planes, planes, stride):
    x = jnp.transpose(x_nchw, (0, 2, 3, 1)).astype(jnp.float32)    # NCHW -> NHWC
    n, h, w, _ = x.shape
    h1 = (h - 1) // stride + 1
    w1 = (w - 1) // stride + 1
    count = n * h1 * w1
    has_projection = (stride != 1) or (in_planes != planes)

    if has_projection:
        (out1, sum1, ssq1, sc, sumsc, ssqsc) = _conv_pallas_call(
            x, params["w1"], stride, wsc=params["wsc"])
        s_sc, b_sc = _bn_fold(sumsc, ssqsc, count, params["gsc"], params["betasc"])
    else:
        out1, sum1, ssq1 = _conv_pallas_call(x, params["w1"], stride)
        sc = x
        s_sc = jnp.ones((1, planes), jnp.float32)
        b_sc = jnp.zeros((1, planes), jnp.float32)

    s1, b1 = _bn_fold(sum1, ssq1, count, params["g1"], params["beta1"])

    # conv2 with BN1-affine + ReLU fused onto its input
    out2, sum2, ssq2 = _conv_pallas_call(out1, params["w2"], 1, bn_in=(s1, b1))
    s2, b2 = _bn_fold(sum2, ssq2, count, params["g2"], params["beta2"])

    out = _residual_epilogue(out2, sc, s2, b2, s_sc, b_sc)
    return jnp.transpose(out, (0, 3, 1, 2))                         # NHWC -> NCHW


# ---------------------------------------------------------------------------
# Pure-JAX reference (same math, f32, via lax.conv) for the correctness check
# ---------------------------------------------------------------------------
def reference_forward(x_nchw, params, *, in_planes, planes, stride):
    def conv(x, w_hwio, s, pad):
        w_oihw = jnp.transpose(w_hwio, (3, 2, 0, 1))
        return jax.lax.conv_general_dilated(
            x, w_oihw, (s, s), ((pad, pad), (pad, pad)),
            dimension_numbers=("NCHW", "OIHW", "NCHW"))

    def bn(x, gamma, beta):
        mean = x.mean(axis=(0, 2, 3), keepdims=True)
        var = ((x - mean) ** 2).mean(axis=(0, 2, 3), keepdims=True)
        return ((x - mean) / jnp.sqrt(var + EPS)) * gamma.reshape(1, -1, 1, 1) \
               + beta.reshape(1, -1, 1, 1)

    out = jax.nn.relu(bn(conv(x_nchw, params["w1"], stride, 1),
                         params["g1"], params["beta1"]))
    out = bn(conv(out, params["w2"], 1, 1), params["g2"], params["beta2"])
    if stride != 1 or in_planes != planes:
        w_sc = params["wsc"].reshape(1, 1, in_planes, planes)
        sc = bn(conv(x_nchw, w_sc, stride, 0), params["gsc"], params["betasc"])
    else:
        sc = x_nchw
    return jax.nn.relu(out + sc)


def init_params(key, in_planes, planes):
    ks = jax.random.split(key, 9)
    return {
        "w1": jax.random.normal(ks[0], (3, 3, in_planes, planes), jnp.float32)
              / np.sqrt(9 * in_planes),
        "g1": 1.0 + 0.1 * jax.random.normal(ks[1], (planes,), jnp.float32),
        "beta1": 0.1 * jax.random.normal(ks[2], (planes,), jnp.float32),
        "w2": jax.random.normal(ks[3], (3, 3, planes, planes), jnp.float32)
              / np.sqrt(9 * planes),
        "g2": 1.0 + 0.1 * jax.random.normal(ks[4], (planes,), jnp.float32),
        "beta2": 0.1 * jax.random.normal(ks[5], (planes,), jnp.float32),
        "wsc": jax.random.normal(ks[6], (in_planes, planes), jnp.float32)
               / np.sqrt(in_planes),
        "gsc": 1.0 + 0.1 * jax.random.normal(ks[7], (planes,), jnp.float32),
        "betasc": 0.1 * jax.random.normal(ks[8], (planes,), jnp.float32),
    }


if __name__ == "__main__":
    # (name, N, in_planes, planes, H, W, stride)
    configs = [
        ("projection_stride1", 2, 4, 8, 16, 16, 1),
        ("identity_stride1", 2, 8, 8, 16, 16, 1),
        # stride=2 path (pl.ds strided in-kernel reads) exists but is not
        # exercised here; enable once validated on the target toolchain.
    ]

    key = jax.random.PRNGKey(0)
    for name, n, cin, planes, h, w, stride in configs:
        key, kx, kp = jax.random.split(key, 3)
        x = jax.random.normal(kx, (n, cin, h, w), jnp.float32)
        params = init_params(kp, cin, planes)

        fwd = jax.jit(functools.partial(basic_block_forward,
                                        in_planes=cin, planes=planes,
                                        stride=stride))
        out = jax.block_until_ready(fwd(x, params))
        ref = jax.block_until_ready(
            reference_forward(x, params, in_planes=cin, planes=planes,
                              stride=stride))

        h1 = (h - 1) // stride + 1
        w1 = (w - 1) // stride + 1
        assert out.shape == (n, planes, h1, w1), (name, out.shape)
        # Tolerance covers the bf16 MXU operands (f32 accumulate) vs the
        # all-f32 reference path.
        np.testing.assert_allclose(np.asarray(out), np.asarray(ref),
                                   rtol=5e-2, atol=5e-2,
                                   err_msg=f"mismatch in config {name}")

    print("KERNEL_OK")
</pallas_src>

<mosaic_0001>
module attributes {stable_mosaic.version = 11 : i64} {
  func.func @_conv1_proj_kernel(%arg0: i32, %arg1: memref<1x16x16x4xf32, #tpu.memory_space<vmem>>, %arg2: memref<3x3x4x8xbf16, #tpu.memory_space<vmem>>, %arg3: memref<4x8xbf16, #tpu.memory_space<vmem>>, %arg4: memref<1x16x16x8xf32, #tpu.memory_space<vmem>>, %arg5: memref<1x1x8xf32, #tpu.memory_space<vmem>>, %arg6: memref<1x1x8xf32, #tpu.memory_space<vmem>>, %arg7: memref<1x16x16x8xf32, #tpu.memory_space<vmem>>, %arg8: memref<1x1x8xf32, #tpu.memory_space<vmem>>, %arg9: memref<1x1x8xf32, #tpu.memory_space<vmem>>, %arg10: memref<18x32x4xf32, #tpu.memory_space<vmem>>) attributes {dimension_semantics = [#tpu.dimension_semantics<parallel>], iteration_bounds = array<i64: 2>, scalar_prefetch = 0 : i64, scratch_operands = 1 : i64, tpu.core_type = #tpu.core_type<tc>, window_params = [{transform_indices = @transform_0, window_bounds = array<i64: 1, 16, 16, 4>}, {pipeline_mode = #tpu.pipeline_mode<synchronous>, transform_indices = @transform_1, window_bounds = array<i64: 3, 3, 4, 8>}, {pipeline_mode = #tpu.pipeline_mode<synchronous>, transform_indices = @transform_2, window_bounds = array<i64: 4, 8>}, {transform_indices = @transform_3, window_bounds = array<i64: 1, 16, 16, 8>}, {transform_indices = @transform_4, window_bounds = array<i64: 1, 1, 8>}, {transform_indices = @transform_5, window_bounds = array<i64: 1, 1, 8>}, {transform_indices = @transform_6, window_bounds = array<i64: 1, 16, 16, 8>}, {transform_indices = @transform_7, window_bounds = array<i64: 1, 1, 8>}, {transform_indices = @transform_8, window_bounds = array<i64: 1, 1, 8>}]} {
    %c0 = arith.constant 0 : index
    %c0_0 = arith.constant 0 : index
    %c0_1 = arith.constant 0 : index
    %c0_2 = arith.constant 0 : index
    %0 = vector.load %arg1[%c0, %c0_0, %c0_1, %c0_2] : memref<1x16x16x4xf32, #tpu.memory_space<vmem>>, vector<1x16x16x4xf32>
    %1 = vector.shape_cast %0 : vector<1x16x16x4xf32> to vector<16x16x4xf32>
    %cst = arith.constant 0.000000e+00 : f32
    %2 = vector.broadcast %cst : f32 to vector<18x32x4xf32>
    %c0_3 = arith.constant 0 : index
    %c0_4 = arith.constant 0 : index
    %c0_5 = arith.constant 0 : index
    %3 = vector.load %arg10[%c0_3, %c0_4, %c0_5] : memref<18x32x4xf32, #tpu.memory_space<vmem>>, vector<18x32x4xf32>
    tpu.vector_store %arg10[%c0_3, %c0_4, %c0_5], %2 {strides = array<i32>} : memref<18x32x4xf32, #tpu.memory_space<vmem>>, vector<18x32x4xf32>,
    %c1 = arith.constant 1 : index
    %c8 = arith.constant 8 : index
    %c0_6 = arith.constant 0 : index
    %4 = vector.load %arg10[%c1, %c8, %c0_6] : memref<18x32x4xf32, #tpu.memory_space<vmem>>, vector<16x16x4xf32>
    tpu.vector_store %arg10[%c1, %c8, %c0_6], %1 {strides = array<i32>} : memref<18x32x4xf32, #tpu.memory_space<vmem>>, vector<16x16x4xf32>,
    %cst_7 = arith.constant 0.000000e+00 : f32
    %5 = vector.broadcast %cst_7 : f32 to vector<256x8xf32>
    %c0_8 = arith.constant 0 : index
    %c7 = arith.constant 7 : index
    %c0_9 = arith.constant 0 : index
    %6 = vector.load %arg10[%c0_8, %c7, %c0_9] : memref<18x32x4xf32, #tpu.memory_space<vmem>>, vector<16x16x4xf32>
    %7 = vector.shape_cast %6 : vector<16x16x4xf32> to vector<256x4xf32>
    %8 = arith.truncf %7 : vector<256x4xf32> to vector<256x4xbf16>
    %c0_10 = arith.constant 0 : index
    %c0_11 = arith.constant 0 : index
    %c0_12 = arith.constant 0 : index
    %c0_13 = arith.constant 0 : index
    %9 = vector.load %arg2[%c0_10, %c0_11, %c0_12, %c0_13] : memref<3x3x4x8xbf16, #tpu.memory_space<vmem>>, vector<1x1x4x8xbf16>
    %10 = vector.shape_cast %9 : vector<1x1x4x8xbf16> to vector<4x8xbf16>
    %cst_14 = arith.constant dense<0.000000e+00> : vector<256x8xf32>
    %11 = tpu.matmul %8, %10, %cst_14 {dimension_numbers = #tpu.dot_dimension_numbers<[1], [0], [0], [1], [0, 0, 1, 1], [], []>} : vector<256x4xbf16>, vector<4x8xbf16>, vector<256x8xf32> -> vector<256x8xf32>
    %12 = arith.addf %5, %11 : vector<256x8xf32>
    %c0_15 = arith.constant 0 : index
    %c8_16 = arith.constant 8 : index
    %c0_17 = arith.constant 0 : index
    %13 = vector.load %arg10[%c0_15, %c8_16, %c0_17] : memref<18x32x4xf32, #tpu.memory_space<vmem>>, vector<16x16x4xf32>
    %14 = vector.shape_cast %13 : vector<16x16x4xf32> to vector<256x4xf32>
    %15 = arith.truncf %14 : vector<256x4xf32> to vector<256x4xbf16>
    %c0_18 = arith.constant 0 : index
    %c1_19 = arith.constant 1 : index
    %c0_20 = arith.constant 0 : index
    %c0_21 = arith.constant 0 : index
    %16 = vector.load %arg2[%c0_18, %c1_19, %c0_20, %c0_21] : memref<3x3x4x8xbf16, #tpu.memory_space<vmem>>, vector<1x1x4x8xbf16>
    %17 = vector.shape_cast %16 : vector<1x1x4x8xbf16> to vector<4x8xbf16>
    %cst_22 = arith.constant dense<0.000000e+00> : vector<256x8xf32>
    %18 = tpu.matmul %15, %17, %cst_22 {dimension_numbers = #tpu.dot_dimension_numbers<[1], [0], [0], [1], [0, 0, 1, 1], [], []>} : vector<256x4xbf16>, vector<4x8xbf16>, vector<256x8xf32> -> vector<256x8xf32>
    %19 = arith.addf %12, %18 : vector<256x8xf32>
    %c0_23 = arith.constant 0 : index
    %c9 = arith.constant 9 : index
    %c0_24 = arith.constant 0 : index
    %20 = vector.load %arg10[%c0_23, %c9, %c0_24] : memref<18x32x4xf32, #tpu.memory_space<vmem>>, vector<16x16x4xf32>
    %21 = vector.shape_cast %20 : vector<16x16x4xf32> to vector<256x4xf32>
    %22 = arith.truncf %21 : vector<256x4xf32> to vector<256x4xbf16>
    %c0_25 = arith.constant 0 : index
    %c2 = arith.constant 2 : index
    %c0_26 = arith.constant 0 : index
    %c0_27 = arith.constant 0 : index
    %23 = vector.load %arg2[%c0_25, %c2, %c0_26, %c0_27] : memref<3x3x4x8xbf16, #tpu.memory_space<vmem>>, vector<1x1x4x8xbf16>
    %24 = vector.shape_cast %23 : vector<1x1x4x8xbf16> to vector<4x8xbf16>
    %cst_28 = arith.constant dense<0.000000e+00> : vector<256x8xf32>
    %25 = tpu.matmul %22, %24, %cst_28 {dimension_numbers = #tpu.dot_dimension_numbers<[1], [0], [0], [1], [0, 0, 1, 1], [], []>} : vector<256x4xbf16>, vector<4x8xbf16>, vector<256x8xf32> -> vector<256x8xf32>
    %26 = arith.addf %19, %25 : vector<256x8xf32>
    %c1_29 = arith.constant 1 : index
    %c7_30 = arith.constant 7 : index
    %c0_31 = arith.constant 0 : index
    %27 = vector.load %arg10[%c1_29, %c7_30, %c0_31] : memref<18x32x4xf32, #tpu.memory_space<vmem>>, vector<16x16x4xf32>
    %28 = vector.shape_cast %27 : vector<16x16x4xf32> to vector<256x4xf32>
    %29 = arith.truncf %28 : vector<256x4xf32> to vector<256x4xbf16>
    %c1_32 = arith.constant 1 : index
    %c0_33 = arith.constant 0 : index
    %c0_34 = arith.constant 0 : index
    %c0_35 = arith.constant 0 : index
    %30 = vector.load %arg2[%c1_32, %c0_33, %c0_34, %c0_35] : memref<3x3x4x8xbf16, #tpu.memory_space<vmem>>, vector<1x1x4x8xbf16>
    %31 = vector.shape_cast %30 : vector<1x1x4x8xbf16> to vector<4x8xbf16>
    %cst_36 = arith.constant dense<0.000000e+00> : vector<256x8xf32>
    %32 = tpu.matmul %29, %31, %cst_36 {dimension_numbers = #tpu.dot_dimension_numbers<[1], [0], [0], [1], [0, 0, 1, 1], [], []>} : vector<256x4xbf16>, vector<4x8xbf16>, vector<256x8xf32> -> vector<256x8xf32>
    %33 = arith.addf %26, %32 : vector<256x8xf32>
    %c1_37 = arith.constant 1 : index
    %c8_38 = arith.constant 8 : index
    %c0_39 = arith.constant 0 : index
    %34 = vector.load %arg10[%c1_37, %c8_38, %c0_39] : memref<18x32x4xf32, #tpu.memory_space<vmem>>, vector<16x16x4xf32>
    %35 = vector.shape_cast %34 : vector<16x16x4xf32> to vector<256x4xf32>
    %36 = arith.truncf %35 : vector<256x4xf32> to vector<256x4xbf16>
    %c1_40 = arith.constant 1 : index
    %c1_41 = arith.constant 1 : index
    %c0_42 = arith.constant 0 : index
    %c0_43 = arith.constant 0 : index
    %37 = vector.load %arg2[%c1_40, %c1_41, %c0_42, %c0_43] : memref<3x3x4x8xbf16, #tpu.memory_space<vmem>>, vector<1x1x4x8xbf16>
    %38 = vector.shape_cast %37 : vector<1x1x4x8xbf16> to vector<4x8xbf16>
    %cst_44 = arith.constant dense<0.000000e+00> : vector<256x8xf32>
    %39 = tpu.matmul %36, %38, %cst_44 {dimension_numbers = #tpu.dot_dimension_numbers<[1], [0], [0], [1], [0, 0, 1, 1], [], []>} : vector<256x4xbf16>, vector<4x8xbf16>, vector<256x8xf32> -> vector<256x8xf32>
    %40 = arith.addf %33, %39 : vector<256x8xf32>
    %c1_45 = arith.constant 1 : index
    %c9_46 = arith.constant 9 : index
    %c0_47 = arith.constant 0 : index
    %41 = vector.load %arg10[%c1_45, %c9_46, %c0_47] : memref<18x32x4xf32, #tpu.memory_space<vmem>>, vector<16x16x4xf32>
    %42 = vector.shape_cast %41 : vector<16x16x4xf32> to vector<256x4xf32>
    %43 = arith.truncf %42 : vector<256x4xf32> to vector<256x4xbf16>
    %c1_48 = arith.constant 1 : index
    %c2_49 = arith.constant 2 : index
    %c0_50 = arith.constant 0 : index
    %c0_51 = arith.constant 0 : index
    %44 = vector.load %arg2[%c1_48, %c2_49, %c0_50, %c0_51] : memref<3x3x4x8xbf16, #tpu.memory_space<vmem>>, vector<1x1x4x8xbf16>
    %45 = vector.shape_cast %44 : vector<1x1x4x8xbf16> to vector<4x8xbf16>
    %cst_52 = arith.constant dense<0.000000e+00> : vector<256x8xf32>
    %46 = tpu.matmul %43, %45, %cst_52 {dimension_numbers = #tpu.dot_dimension_numbers<[1], [0], [0], [1], [0, 0, 1, 1], [], []>} : vector<256x4xbf16>, vector<4x8xbf16>, vector<256x8xf32> -> vector<256x8xf32>
    %47 = arith.addf %40, %46 : vector<256x8xf32>
    %c2_53 = arith.constant 2 : index
    %c7_54 = arith.constant 7 : index
    %c0_55 = arith.constant 0 : index
    %48 = vector.load %arg10[%c2_53, %c7_54, %c0_55] : memref<18x32x4xf32, #tpu.memory_space<vmem>>, vector<16x16x4xf32>
    %49 = vector.shape_cast %48 : vector<16x16x4xf32> to vector<256x4xf32>
    %50 = arith.truncf %49 : vector<256x4xf32> to vector<256x4xbf16>
    %c2_56 = arith.constant 2 : index
    %c0_57 = arith.constant 0 : index
    %c0_58 = arith.constant 0 : index
    %c0_59 = arith.constant 0 : index
    %51 = vector.load %arg2[%c2_56, %c0_57, %c0_58, %c0_59] : memref<3x3x4x8xbf16, #tpu.memory_space<vmem>>, vector<1x1x4x8xbf16>
    %52 = vector.shape_cast %51 : vector<1x1x4x8xbf16> to vector<4x8xbf16>
    %cst_60 = arith.constant dense<0.000000e+00> : vector<256x8xf32>
    %53 = tpu.matmul %50, %52, %cst_60 {dimension_numbers = #tpu.dot_dimension_numbers<[1], [0], [0], [1], [0, 0, 1, 1], [], []>} : vector<256x4xbf16>, vector<4x8xbf16>, vector<256x8xf32> -> vector<256x8xf32>
    %54 = arith.addf %47, %53 : vector<256x8xf32>
    %c2_61 = arith.constant 2 : index
    %c8_62 = arith.constant 8 : index
    %c0_63 = arith.constant 0 : index
    %55 = vector.load %arg10[%c2_61, %c8_62, %c0_63] : memref<18x32x4xf32, #tpu.memory_space<vmem>>, vector<16x16x4xf32>
    %56 = vector.shape_cast %55 : vector<16x16x4xf32> to vector<256x4xf32>
    %57 = arith.truncf %56 : vector<256x4xf32> to vector<256x4xbf16>
    %c2_64 = arith.constant 2 : index
    %c1_65 = arith.constant 1 : index
    %c0_66 = arith.constant 0 : index
    %c0_67 = arith.constant 0 : index
    %58 = vector.load %arg2[%c2_64, %c1_65, %c0_66, %c0_67] : memref<3x3x4x8xbf16, #tpu.memory_space<vmem>>, vector<1x1x4x8xbf16>
    %59 = vector.shape_cast %58 : vector<1x1x4x8xbf16> to vector<4x8xbf16>
    %cst_68 = arith.constant dense<0.000000e+00> : vector<256x8xf32>
    %60 = tpu.matmul %57, %59, %cst_68 {dimension_numbers = #tpu.dot_dimension_numbers<[1], [0], [0], [1], [0, 0, 1, 1], [], []>} : vector<256x4xbf16>, vector<4x8xbf16>, vector<256x8xf32> -> vector<256x8xf32>
    %61 = arith.addf %54, %60 : vector<256x8xf32>
    %c2_69 = arith.constant 2 : index
    %c9_70 = arith.constant 9 : index
    %c0_71 = arith.constant 0 : index
    %62 = vector.load %arg10[%c2_69, %c9_70, %c0_71] : memref<18x32x4xf32, #tpu.memory_space<vmem>>, vector<16x16x4xf32>
    %63 = vector.shape_cast %62 : vector<16x16x4xf32> to vector<256x4xf32>
    %64 = arith.truncf %63 : vector<256x4xf32> to vector<256x4xbf16>
    %c2_72 = arith.constant 2 : index
    %c2_73 = arith.constant 2 : index
    %c0_74 = arith.constant 0 : index
    %c0_75 = arith.constant 0 : index
    %65 = vector.load %arg2[%c2_72, %c2_73, %c0_74, %c0_75] : memref<3x3x4x8xbf16, #tpu.memory_space<vmem>>, vector<1x1x4x8xbf16>
    %66 = vector.shape_cast %65 : vector<1x1x4x8xbf16> to vector<4x8xbf16>
    %cst_76 = arith.constant dense<0.000000e+00> : vector<256x8xf32>
    %67 = tpu.matmul %64, %66, %cst_76 {dimension_numbers = #tpu.dot_dimension_numbers<[1], [0], [0], [1], [0, 0, 1, 1], [], []>} : vector<256x4xbf16>, vector<4x8xbf16>, vector<256x8xf32> -> vector<256x8xf32>
    %68 = arith.addf %61, %67 : vector<256x8xf32>
    %69 = vector.shape_cast %68 : vector<256x8xf32> to vector<16x16x8xf32>
    %c0_77 = arith.constant 0 : index
    %c0_78 = arith.constant 0 : index
    %c0_79 = arith.constant 0 : index
    %c0_80 = arith.constant 0 : index
    %70 = vector.load %arg4[%c0_77, %c0_78, %c0_79, %c0_80] : memref<1x16x16x8xf32, #tpu.memory_space<vmem>>, vector<1x16x16x8xf32>
    %71 = vector.shape_cast %70 : vector<1x16x16x8xf32> to vector<16x16x8xf32>
    %72 = vector.shape_cast %69 : vector<16x16x8xf32> to vector<1x16x16x8xf32>
    tpu.vector_store %arg4[%c0_77, %c0_78, %c0_79, %c0_80], %72 {strides = array<i32>} : memref<1x16x16x8xf32, #tpu.memory_space<vmem>>, vector<1x16x16x8xf32>,
    %cst_81 = arith.constant dense<0.000000e+00> : vector<8xf32>
    %73 = vector.multi_reduction <add>, %68, %cst_81 [0] : vector<256x8xf32> to vector<8xf32>
    %74 = vector.shape_cast %73 : vector<8xf32> to vector<1x8xf32>
    %c0_82 = arith.constant 0 : index
    %c0_83 = arith.constant 0 : index
    %c0_84 = arith.constant 0 : index
    %75 = vector.load %arg5[%c0_82, %c0_83, %c0_84] : memref<1x1x8xf32, #tpu.memory_space<vmem>>, vector<1x1x8xf32>
    %76 = vector.shape_cast %75 : vector<1x1x8xf32> to vector<1x8xf32>
    %77 = vector.shape_cast %74 : vector<1x8xf32> to vector<1x1x8xf32>
    tpu.vector_store %arg5[%c0_82, %c0_83, %c0_84], %77 {strides = array<i32>} : memref<1x1x8xf32, #tpu.memory_space<vmem>>, vector<1x1x8xf32>,
    %78 = arith.mulf %68, %68 : vector<256x8xf32>
    %cst_85 = arith.constant dense<0.000000e+00> : vector<8xf32>
    %79 = vector.multi_reduction <add>, %78, %cst_85 [0] : vector<256x8xf32> to vector<8xf32>
    %80 = vector.shape_cast %79 : vector<8xf32> to vector<1x8xf32>
    %c0_86 = arith.constant 0 : index
    %c0_87 = arith.constant 0 : index
    %c0_88 = arith.constant 0 : index
    %81 = vector.load %arg6[%c0_86, %c0_87, %c0_88] : memref<1x1x8xf32, #tpu.memory_space<vmem>>, vector<1x1x8xf32>
    %82 = vector.shape_cast %81 : vector<1x1x8xf32> to vector<1x8xf32>
    %83 = vector.shape_cast %80 : vector<1x8xf32> to vector<1x1x8xf32>
    tpu.vector_store %arg6[%c0_86, %c0_87, %c0_88], %83 {strides = array<i32>} : memref<1x1x8xf32, #tpu.memory_space<vmem>>, vector<1x1x8xf32>,
    %84 = vector.shape_cast %1 : vector<16x16x4xf32> to vector<256x4xf32>
    %85 = arith.truncf %84 : vector<256x4xf32> to vector<256x4xbf16>
    %c0_89 = arith.constant 0 : index
    %c0_90 = arith.constant 0 : index
    %86 = vector.load %arg3[%c0_89, %c0_90] : memref<4x8xbf16, #tpu.memory_space<vmem>>, vector<4x8xbf16>
    %cst_91 = arith.constant dense<0.000000e+00> : vector<256x8xf32>
    %87 = tpu.matmul %85, %86, %cst_91 {dimension_numbers = #tpu.dot_dimension_numbers<[1], [0], [0], [1], [0, 0, 1, 1], [], []>} : vector<256x4xbf16>, vector<4x8xbf16>, vector<256x8xf32> -> vector<256x8xf32>
    %88 = vector.shape_cast %87 : vector<256x8xf32> to vector<16x16x8xf32>
    %c0_92 = arith.constant 0 : index
    %c0_93 = arith.constant 0 : index
    %c0_94 = arith.constant 0 : index
    %c0_95 = arith.constant 0 : index
    %89 = vector.load %arg7[%c0_92, %c0_93, %c0_94, %c0_95] : memref<1x16x16x8xf32, #tpu.memory_space<vmem>>, vector<1x16x16x8xf32>
    %90 = vector.shape_cast %89 : vector<1x16x16x8xf32> to vector<16x16x8xf32>
    %91 = vector.shape_cast %88 : vector<16x16x8xf32> to vector<1x16x16x8xf32>
    tpu.vector_store %arg7[%c0_92, %c0_93, %c0_94, %c0_95], %91 {strides = array<i32>} : memref<1x16x16x8xf32, #tpu.memory_space<vmem>>, vector<1x16x16x8xf32>,
    %cst_96 = arith.constant dense<0.000000e+00> : vector<8xf32>
    %92 = vector.multi_reduction <add>, %87, %cst_96 [0] : vector<256x8xf32> to vector<8xf32>
    %93 = vector.shape_cast %92 : vector<8xf32> to vector<1x8xf32>
    %c0_97 = arith.constant 0 : index
    %c0_98 = arith.constant 0 : index
    %c0_99 = arith.constant 0 : index
    %94 = vector.load %arg8[%c0_97, %c0_98, %c0_99] : memref<1x1x8xf32, #tpu.memory_space<vmem>>, vector<1x1x8xf32>
    %95 = vector.shape_cast %94 : vector<1x1x8xf32> to vector<1x8xf32>
    %96 = vector.shape_cast %93 : vector<1x8xf32> to vector<1x1x8xf32>
    tpu.vector_store %arg8[%c0_97, %c0_98, %c0_99], %96 {strides = array<i32>} : memref<1x1x8xf32, #tpu.memory_space<vmem>>, vector<1x1x8xf32>,
    %97 = arith.mulf %87, %87 : vector<256x8xf32>
    %cst_100 = arith.constant dense<0.000000e+00> : vector<8xf32>
    %98 = vector.multi_reduction <add>, %97, %cst_100 [0] : vector<256x8xf32> to vector<8xf32>
    %99 = vector.shape_cast %98 : vector<8xf32> to vector<1x8xf32>
    %c0_101 = arith.constant 0 : index
    %c0_102 = arith.constant 0 : index
    %c0_103 = arith.constant 0 : index
    %100 = vector.load %arg9[%c0_101, %c0_102, %c0_103] : memref<1x1x8xf32, #tpu.memory_space<vmem>>, vector<1x1x8xf32>
    %101 = vector.shape_cast %100 : vector<1x1x8xf32> to vector<1x8xf32>
    %102 = vector.shape_cast %99 : vector<1x8xf32> to vector<1x1x8xf32>
    tpu.vector_store %arg9[%c0_101, %c0_102, %c0_103], %102 {strides = array<i32>} : memref<1x1x8xf32, #tpu.memory_space<vmem>>, vector<1x1x8xf32>,
    return
  }
  func.func @transform_0(%arg0: i32) -> (i32, i32, i32, i32) {
    %c0_i32 = arith.constant 0 : i32
    %c0_i32_0 = arith.constant 0 : i32
    %c0_i32_1 = arith.constant 0 : i32
    %c0_i32_2 = arith.constant 0 : i32
    return %arg0, %c0_i32, %c0_i32_0, %c0_i32_1 : i32, i32, i32, i32
  }
  func.func @transform_1(%arg0: i32) -> (i32, i32, i32, i32) {
    %c0_i32 = arith.constant 0 : i32
    %c0_i32_0 = arith.constant 0 : i32
    %c0_i32_1 = arith.constant 0 : i32
    %c0_i32_2 = arith.constant 0 : i32
    %c0_i32_3 = arith.constant 0 : i32
    return %c0_i32, %c0_i32_0, %c0_i32_1, %c0_i32_2 : i32, i32, i32, i32
  }
  func.func @transform_2(%arg0: i32) -> (i32, i32) {
    %c0_i32 = arith.constant 0 : i32
    %c0_i32_0 = arith.constant 0 : i32
    %c0_i32_1 = arith.constant 0 : i32
    return %c0_i32, %c0_i32_0 : i32, i32
  }
  func.func @transform_3(%arg0: i32) -> (i32, i32, i32, i32) {
    %c0_i32 = arith.constant 0 : i32
    %c0_i32_0 = arith.constant 0 : i32
    %c0_i32_1 = arith.constant 0 : i32
    %c0_i32_2 = arith.constant 0 : i32
    return %arg0, %c0_i32, %c0_i32_0, %c0_i32_1 : i32, i32, i32, i32
  }
  func.func @transform_4(%arg0: i32) -> (i32, i32, i32) {
    %c0_i32 = arith.constant 0 : i32
    %c0_i32_0 = arith.constant 0 : i32
    %c0_i32_1 = arith.constant 0 : i32
    return %arg0, %c0_i32, %c0_i32_0 : i32, i32, i32
  }
  func.func @transform_5(%arg0: i32) -> (i32, i32, i32) {
    %c0_i32 = arith.constant 0 : i32
    %c0_i32_0 = arith.constant 0 : i32
    %c0_i32_1 = arith.constant 0 : i32
    return %arg0, %c0_i32, %c0_i32_0 : i32, i32, i32
  }
  func.func @transform_6(%arg0: i32) -> (i32, i32, i32, i32) {
    %c0_i32 = arith.constant 0 : i32
    %c0_i32_0 = arith.constant 0 : i32
    %c0_i32_1 = arith.constant 0 : i32
    %c0_i32_2 = arith.constant 0 : i32
    return %arg0, %c0_i32, %c0_i32_0, %c0_i32_1 : i32, i32, i32, i32
  }
  func.func @transform_7(%arg0: i32) -> (i32, i32, i32) {
    %c0_i32 = arith.constant 0 : i32
    %c0_i32_0 = arith.constant 0 : i32
    %c0_i32_1 = arith.constant 0 : i32
    return %arg0, %c0_i32, %c0_i32_0 : i32, i32, i32
  }
  func.func @transform_8(%arg0: i32) -> (i32, i32, i32) {
    %c0_i32 = arith.constant 0 : i32
    %c0_i32_0 = arith.constant 0 : i32
    %c0_i32_1 = arith.constant 0 : i32
    return %arg0, %c0_i32, %c0_i32_0 : i32, i32, i32
  }
}

module attributes {stable_mosaic.version = 11 : i64} {
  func.func @_conv2_kernel(%arg0: i32, %arg1: memref<1x16x16x8xf32, #tpu.memory_space<vmem>>, %arg2: memref<1x8xf32, #tpu.memory_space<vmem>>, %arg3: memref<1x8xf32, #tpu.memory_space<vmem>>, %arg4: memref<3x3x8x8xbf16, #tpu.memory_space<vmem>>, %arg5: memref<1x16x16x8xf32, #tpu.memory_space<vmem>>, %arg6: memref<1x1x8xf32, #tpu.memory_space<vmem>>, %arg7: memref<1x1x8xf32, #tpu.memory_space<vmem>>, %arg8: memref<18x32x8xf32, #tpu.memory_space<vmem>>) attributes {dimension_semantics = [#tpu.dimension_semantics<parallel>], iteration_bounds = array<i64: 2>, scalar_prefetch = 0 : i64, scratch_operands = 1 : i64, tpu.core_type = #tpu.core_type<tc>, window_params = [{transform_indices = @transform_0, window_bounds = array<i64: 1, 16, 16, 8>}, {pipeline_mode = #tpu.pipeline_mode<synchronous>, transform_indices = @transform_1, window_bounds = array<i64: 1, 8>}, {pipeline_mode = #tpu.pipeline_mode<synchronous>, transform_indices = @transform_2, window_bounds = array<i64: 1, 8>}, {pipeline_mode = #tpu.pipeline_mode<synchronous>, transform_indices = @transform_3, window_bounds = array<i64: 3, 3, 8, 8>}, {transform_indices = @transform_4, window_bounds = array<i64: 1, 16, 16, 8>}, {transform_indices = @transform_5, window_bounds = array<i64: 1, 1, 8>}, {transform_indices = @transform_6, window_bounds = array<i64: 1, 1, 8>}]} {
    %c0 = arith.constant 0 : index
    %c0_0 = arith.constant 0 : index
    %c0_1 = arith.constant 0 : index
    %c0_2 = arith.constant 0 : index
    %0 = vector.load %arg1[%c0, %c0_0, %c0_1, %c0_2] : memref<1x16x16x8xf32, #tpu.memory_space<vmem>>, vector<1x16x16x8xf32>
    %1 = vector.shape_cast %0 : vector<1x16x16x8xf32> to vector<16x16x8xf32>
    %c0_3 = arith.constant 0 : index
    %c0_4 = arith.constant 0 : index
    %2 = vector.load %arg2[%c0_3, %c0_4] : memref<1x8xf32, #tpu.memory_space<vmem>>, vector<1x8xf32>
    %3 = vector.shape_cast %2 : vector<1x8xf32> to vector<8xf32>
    %4 = vector.shape_cast %3 : vector<8xf32> to vector<1x1x8xf32>
    %5 = vector.broadcast %4 : vector<1x1x8xf32> to vector<16x16x8xf32>
    %6 = arith.mulf %1, %5 : vector<16x16x8xf32>
    %c0_5 = arith.constant 0 : index
    %c0_6 = arith.constant 0 : index
    %7 = vector.load %arg3[%c0_5, %c0_6] : memref<1x8xf32, #tpu.memory_space<vmem>>, vector<1x8xf32>
    %8 = vector.shape_cast %7 : vector<1x8xf32> to vector<8xf32>
    %9 = vector.shape_cast %8 : vector<8xf32> to vector<1x1x8xf32>
    %10 = vector.broadcast %9 : vector<1x1x8xf32> to vector<16x16x8xf32>
    %11 = arith.addf %6, %10 : vector<16x16x8xf32>
    %cst = arith.constant 0.000000e+00 : f32
    %12 = vector.broadcast %cst : f32 to vector<16x16x8xf32>
    %13 = arith.maximumf %11, %12 : vector<16x16x8xf32>
    %cst_7 = arith.constant 0.000000e+00 : f32
    %14 = vector.broadcast %cst_7 : f32 to vector<18x32x8xf32>
    %c0_8 = arith.constant 0 : index
    %c0_9 = arith.constant 0 : index
    %c0_10 = arith.constant 0 : index
    %15 = vector.load %arg8[%c0_8, %c0_9, %c0_10] : memref<18x32x8xf32, #tpu.memory_space<vmem>>, vector<18x32x8xf32>
    tpu.vector_store %arg8[%c0_8, %c0_9, %c0_10], %14 {strides = array<i32>} : memref<18x32x8xf32, #tpu.memory_space<vmem>>, vector<18x32x8xf32>,
    %c1 = arith.constant 1 : index
    %c8 = arith.constant 8 : index
    %c0_11 = arith.constant 0 : index
    %16 = vector.load %arg8[%c1, %c8, %c0_11] : memref<18x32x8xf32, #tpu.memory_space<vmem>>, vector<16x16x8xf32>
    tpu.vector_store %arg8[%c1, %c8, %c0_11], %13 {strides = array<i32>} : memref<18x32x8xf32, #tpu.memory_space<vmem>>, vector<16x16x8xf32>,
    %cst_12 = arith.constant 0.000000e+00 : f32
    %17 = vector.broadcast %cst_12 : f32 to vector<256x8xf32>
    %c0_13 = arith.constant 0 : index
    %c7 = arith.constant 7 : index
    %c0_14 = arith.constant 0 : index
    %18 = vector.load %arg8[%c0_13, %c7, %c0_14] : memref<18x32x8xf32, #tpu.memory_space<vmem>>, vector<16x16x8xf32>
    %19 = vector.shape_cast %18 : vector<16x16x8xf32> to vector<256x8xf32>
    %20 = arith.truncf %19 : vector<256x8xf32> to vector<256x8xbf16>
    %c0_15 = arith.constant 0 : index
    %c0_16 = arith.constant 0 : index
    %c0_17 = arith.constant 0 : index
    %c0_18 = arith.constant 0 : index
    %21 = vector.load %arg4[%c0_15, %c0_16, %c0_17, %c0_18] : memref<3x3x8x8xbf16, #tpu.memory_space<vmem>>, vector<1x1x8x8xbf16>
    %22 = vector.shape_cast %21 : vector<1x1x8x8xbf16> to vector<8x8xbf16>
    %cst_19 = arith.constant dense<0.000000e+00> : vector<256x8xf32>
    %23 = tpu.matmul %20, %22, %cst_19 {dimension_numbers = #tpu.dot_dimension_numbers<[1], [0], [0], [1], [0, 0, 1, 1], [], []>} : vector<256x8xbf16>, vector<8x8xbf16>, vector<256x8xf32> -> vector<256x8xf32>
    %24 = arith.addf %17, %23 : vector<256x8xf32>
    %c0_20 = arith.constant 0 : index
    %c8_21 = arith.constant 8 : index
    %c0_22 = arith.constant 0 : index
    %25 = vector.load %arg8[%c0_20, %c8_21, %c0_22] : memref<18x32x8xf32, #tpu.memory_space<vmem>>, vector<16x16x8xf32>
    %26 = vector.shape_cast %25 : vector<16x16x8xf32> to vector<256x8xf32>
    %27 = arith.truncf %26 : vector<256x8xf32> to vector<256x8xbf16>
    %c0_23 = arith.constant 0 : index
    %c1_24 = arith.constant 1 : index
    %c0_25 = arith.constant 0 : index
    %c0_26 = arith.constant 0 : index
    %28 = vector.load %arg4[%c0_23, %c1_24, %c0_25, %c0_26] : memref<3x3x8x8xbf16, #tpu.memory_space<vmem>>, vector<1x1x8x8xbf16>
    %29 = vector.shape_cast %28 : vector<1x1x8x8xbf16> to vector<8x8xbf16>
    %cst_27 = arith.constant dense<0.000000e+00> : vector<256x8xf32>
    %30 = tpu.matmul %27, %29, %cst_27 {dimension_numbers = #tpu.dot_dimension_numbers<[1], [0], [0], [1], [0, 0, 1, 1], [], []>} : vector<256x8xbf16>, vector<8x8xbf16>, vector<256x8xf32> -> vector<256x8xf32>
    %31 = arith.addf %24, %30 : vector<256x8xf32>
    %c0_28 = arith.constant 0 : index
    %c9 = arith.constant 9 : index
    %c0_29 = arith.constant 0 : index
    %32 = vector.load %arg8[%c0_28, %c9, %c0_29] : memref<18x32x8xf32, #tpu.memory_space<vmem>>, vector<16x16x8xf32>
    %33 = vector.shape_cast %32 : vector<16x16x8xf32> to vector<256x8xf32>
    %34 = arith.truncf %33 : vector<256x8xf32> to vector<256x8xbf16>
    %c0_30 = arith.constant 0 : index
    %c2 = arith.constant 2 : index
    %c0_31 = arith.constant 0 : index
    %c0_32 = arith.constant 0 : index
    %35 = vector.load %arg4[%c0_30, %c2, %c0_31, %c0_32] : memref<3x3x8x8xbf16, #tpu.memory_space<vmem>>, vector<1x1x8x8xbf16>
    %36 = vector.shape_cast %35 : vector<1x1x8x8xbf16> to vector<8x8xbf16>
    %cst_33 = arith.constant dense<0.000000e+00> : vector<256x8xf32>
    %37 = tpu.matmul %34, %36, %cst_33 {dimension_numbers = #tpu.dot_dimension_numbers<[1], [0], [0], [1], [0, 0, 1, 1], [], []>} : vector<256x8xbf16>, vector<8x8xbf16>, vector<256x8xf32> -> vector<256x8xf32>
    %38 = arith.addf %31, %37 : vector<256x8xf32>
    %c1_34 = arith.constant 1 : index
    %c7_35 = arith.constant 7 : index
    %c0_36 = arith.constant 0 : index
    %39 = vector.load %arg8[%c1_34, %c7_35, %c0_36] : memref<18x32x8xf32, #tpu.memory_space<vmem>>, vector<16x16x8xf32>
    %40 = vector.shape_cast %39 : vector<16x16x8xf32> to vector<256x8xf32>
    %41 = arith.truncf %40 : vector<256x8xf32> to vector<256x8xbf16>
    %c1_37 = arith.constant 1 : index
    %c0_38 = arith.constant 0 : index
    %c0_39 = arith.constant 0 : index
    %c0_40 = arith.constant 0 : index
    %42 = vector.load %arg4[%c1_37, %c0_38, %c0_39, %c0_40] : memref<3x3x8x8xbf16, #tpu.memory_space<vmem>>, vector<1x1x8x8xbf16>
    %43 = vector.shape_cast %42 : vector<1x1x8x8xbf16> to vector<8x8xbf16>
    %cst_41 = arith.constant dense<0.000000e+00> : vector<256x8xf32>
    %44 = tpu.matmul %41, %43, %cst_41 {dimension_numbers = #tpu.dot_dimension_numbers<[1], [0], [0], [1], [0, 0, 1, 1], [], []>} : vector<256x8xbf16>, vector<8x8xbf16>, vector<256x8xf32> -> vector<256x8xf32>
    %45 = arith.addf %38, %44 : vector<256x8xf32>
    %c1_42 = arith.constant 1 : index
    %c8_43 = arith.constant 8 : index
    %c0_44 = arith.constant 0 : index
    %46 = vector.load %arg8[%c1_42, %c8_43, %c0_44] : memref<18x32x8xf32, #tpu.memory_space<vmem>>, vector<16x16x8xf32>
    %47 = vector.shape_cast %46 : vector<16x16x8xf32> to vector<256x8xf32>
    %48 = arith.truncf %47 : vector<256x8xf32> to vector<256x8xbf16>
    %c1_45 = arith.constant 1 : index
    %c1_46 = arith.constant 1 : index
    %c0_47 = arith.constant 0 : index
    %c0_48 = arith.constant 0 : index
    %49 = vector.load %arg4[%c1_45, %c1_46, %c0_47, %c0_48] : memref<3x3x8x8xbf16, #tpu.memory_space<vmem>>, vector<1x1x8x8xbf16>
    %50 = vector.shape_cast %49 : vector<1x1x8x8xbf16> to vector<8x8xbf16>
    %cst_49 = arith.constant dense<0.000000e+00> : vector<256x8xf32>
    %51 = tpu.matmul %48, %50, %cst_49 {dimension_numbers = #tpu.dot_dimension_numbers<[1], [0], [0], [1], [0, 0, 1, 1], [], []>} : vector<256x8xbf16>, vector<8x8xbf16>, vector<256x8xf32> -> vector<256x8xf32>
    %52 = arith.addf %45, %51 : vector<256x8xf32>
    %c1_50 = arith.constant 1 : index
    %c9_51 = arith.constant 9 : index
    %c0_52 = arith.constant 0 : index
    %53 = vector.load %arg8[%c1_50, %c9_51, %c0_52] : memref<18x32x8xf32, #tpu.memory_space<vmem>>, vector<16x16x8xf32>
    %54 = vector.shape_cast %53 : vector<16x16x8xf32> to vector<256x8xf32>
    %55 = arith.truncf %54 : vector<256x8xf32> to vector<256x8xbf16>
    %c1_53 = arith.constant 1 : index
    %c2_54 = arith.constant 2 : index
    %c0_55 = arith.constant 0 : index
    %c0_56 = arith.constant 0 : index
    %56 = vector.load %arg4[%c1_53, %c2_54, %c0_55, %c0_56] : memref<3x3x8x8xbf16, #tpu.memory_space<vmem>>, vector<1x1x8x8xbf16>
    %57 = vector.shape_cast %56 : vector<1x1x8x8xbf16> to vector<8x8xbf16>
    %cst_57 = arith.constant dense<0.000000e+00> : vector<256x8xf32>
    %58 = tpu.matmul %55, %57, %cst_57 {dimension_numbers = #tpu.dot_dimension_numbers<[1], [0], [0], [1], [0, 0, 1, 1], [], []>} : vector<256x8xbf16>, vector<8x8xbf16>, vector<256x8xf32> -> vector<256x8xf32>
    %59 = arith.addf %52, %58 : vector<256x8xf32>
    %c2_58 = arith.constant 2 : index
    %c7_59 = arith.constant 7 : index
    %c0_60 = arith.constant 0 : index
    %60 = vector.load %arg8[%c2_58, %c7_59, %c0_60] : memref<18x32x8xf32, #tpu.memory_space<vmem>>, vector<16x16x8xf32>
    %61 = vector.shape_cast %60 : vector<16x16x8xf32> to vector<256x8xf32>
    %62 = arith.truncf %61 : vector<256x8xf32> to vector<256x8xbf16>
    %c2_61 = arith.constant 2 : index
    %c0_62 = arith.constant 0 : index
    %c0_63 = arith.constant 0 : index
    %c0_64 = arith.constant 0 : index
    %63 = vector.load %arg4[%c2_61, %c0_62, %c0_63, %c0_64] : memref<3x3x8x8xbf16, #tpu.memory_space<vmem>>, vector<1x1x8x8xbf16>
    %64 = vector.shape_cast %63 : vector<1x1x8x8xbf16> to vector<8x8xbf16>
    %cst_65 = arith.constant dense<0.000000e+00> : vector<256x8xf32>
    %65 = tpu.matmul %62, %64, %cst_65 {dimension_numbers = #tpu.dot_dimension_numbers<[1], [0], [0], [1], [0, 0, 1, 1], [], []>} : vector<256x8xbf16>, vector<8x8xbf16>, vector<256x8xf32> -> vector<256x8xf32>
    %66 = arith.addf %59, %65 : vector<256x8xf32>
    %c2_66 = arith.constant 2 : index
    %c8_67 = arith.constant 8 : index
    %c0_68 = arith.constant 0 : index
    %67 = vector.load %arg8[%c2_66, %c8_67, %c0_68] : memref<18x32x8xf32, #tpu.memory_space<vmem>>, vector<16x16x8xf32>
    %68 = vector.shape_cast %67 : vector<16x16x8xf32> to vector<256x8xf32>
    %69 = arith.truncf %68 : vector<256x8xf32> to vector<256x8xbf16>
    %c2_69 = arith.constant 2 : index
    %c1_70 = arith.constant 1 : index
    %c0_71 = arith.constant 0 : index
    %c0_72 = arith.constant 0 : index
    %70 = vector.load %arg4[%c2_69, %c1_70, %c0_71, %c0_72] : memref<3x3x8x8xbf16, #tpu.memory_space<vmem>>, vector<1x1x8x8xbf16>
    %71 = vector.shape_cast %70 : vector<1x1x8x8xbf16> to vector<8x8xbf16>
    %cst_73 = arith.constant dense<0.000000e+00> : vector<256x8xf32>
    %72 = tpu.matmul %69, %71, %cst_73 {dimension_numbers = #tpu.dot_dimension_numbers<[1], [0], [0], [1], [0, 0, 1, 1], [], []>} : vector<256x8xbf16>, vector<8x8xbf16>, vector<256x8xf32> -> vector<256x8xf32>
    %73 = arith.addf %66, %72 : vector<256x8xf32>
    %c2_74 = arith.constant 2 : index
    %c9_75 = arith.constant 9 : index
    %c0_76 = arith.constant 0 : index
    %74 = vector.load %arg8[%c2_74, %c9_75, %c0_76] : memref<18x32x8xf32, #tpu.memory_space<vmem>>, vector<16x16x8xf32>
    %75 = vector.shape_cast %74 : vector<16x16x8xf32> to vector<256x8xf32>
    %76 = arith.truncf %75 : vector<256x8xf32> to vector<256x8xbf16>
    %c2_77 = arith.constant 2 : index
    %c2_78 = arith.constant 2 : index
    %c0_79 = arith.constant 0 : index
    %c0_80 = arith.constant 0 : index
    %77 = vector.load %arg4[%c2_77, %c2_78, %c0_79, %c0_80] : memref<3x3x8x8xbf16, #tpu.memory_space<vmem>>, vector<1x1x8x8xbf16>
    %78 = vector.shape_cast %77 : vector<1x1x8x8xbf16> to vector<8x8xbf16>
    %cst_81 = arith.constant dense<0.000000e+00> : vector<256x8xf32>
    %79 = tpu.matmul %76, %78, %cst_81 {dimension_numbers = #tpu.dot_dimension_numbers<[1], [0], [0], [1], [0, 0, 1, 1], [], []>} : vector<256x8xbf16>, vector<8x8xbf16>, vector<256x8xf32> -> vector<256x8xf32>
    %80 = arith.addf %73, %79 : vector<256x8xf32>
    %81 = vector.shape_cast %80 : vector<256x8xf32> to vector<16x16x8xf32>
    %c0_82 = arith.constant 0 : index
    %c0_83 = arith.constant 0 : index
    %c0_84 = arith.constant 0 : index
    %c0_85 = arith.constant 0 : index
    %82 = vector.load %arg5[%c0_82, %c0_83, %c0_84, %c0_85] : memref<1x16x16x8xf32, #tpu.memory_space<vmem>>, vector<1x16x16x8xf32>
    %83 = vector.shape_cast %82 : vector<1x16x16x8xf32> to vector<16x16x8xf32>
    %84 = vector.shape_cast %81 : vector<16x16x8xf32> to vector<1x16x16x8xf32>
    tpu.vector_store %arg5[%c0_82, %c0_83, %c0_84, %c0_85], %84 {strides = array<i32>} : memref<1x16x16x8xf32, #tpu.memory_space<vmem>>, vector<1x16x16x8xf32>,
    %cst_86 = arith.constant dense<0.000000e+00> : vector<8xf32>
    %85 = vector.multi_reduction <add>, %80, %cst_86 [0] : vector<256x8xf32> to vector<8xf32>
    %86 = vector.shape_cast %85 : vector<8xf32> to vector<1x8xf32>
    %c0_87 = arith.constant 0 : index
    %c0_88 = arith.constant 0 : index
    %c0_89 = arith.constant 0 : index
    %87 = vector.load %arg6[%c0_87, %c0_88, %c0_89] : memref<1x1x8xf32, #tpu.memory_space<vmem>>, vector<1x1x8xf32>
    %88 = vector.shape_cast %87 : vector<1x1x8xf32> to vector<1x8xf32>
    %89 = vector.shape_cast %86 : vector<1x8xf32> to vector<1x1x8xf32>
    tpu.vector_store %arg6[%c0_87, %c0_88, %c0_89], %89 {strides = array<i32>} : memref<1x1x8xf32, #tpu.memory_space<vmem>>, vector<1x1x8xf32>,
    %90 = arith.mulf %80, %80 : vector<256x8xf32>
    %cst_90 = arith.constant dense<0.000000e+00> : vector<8xf32>
    %91 = vector.multi_reduction <add>, %90, %cst_90 [0] : vector<256x8xf32> to vector<8xf32>
    %92 = vector.shape_cast %91 : vector<8xf32> to vector<1x8xf32>
    %c0_91 = arith.constant 0 : index
    %c0_92 = arith.constant 0 : index
    %c0_93 = arith.constant 0 : index
    %93 = vector.load %arg7[%c0_91, %c0_92, %c0_93] : memref<1x1x8xf32, #tpu.memory_space<vmem>>, vector<1x1x8xf32>
    %94 = vector.shape_cast %93 : vector<1x1x8xf32> to vector<1x8xf32>
    %95 = vector.shape_cast %92 : vector<1x8xf32> to vector<1x1x8xf32>
    tpu.vector_store %arg7[%c0_91, %c0_92, %c0_93], %95 {strides = array<i32>} : memref<1x1x8xf32, #tpu.memory_space<vmem>>, vector<1x1x8xf32>,
    return
  }
  func.func @transform_0(%arg0: i32) -> (i32, i32, i32, i32) {
    %c0_i32 = arith.constant 0 : i32
    %c0_i32_0 = arith.constant 0 : i32
    %c0_i32_1 = arith.constant 0 : i32
    %c0_i32_2 = arith.constant 0 : i32
    return %arg0, %c0_i32, %c0_i32_0, %c0_i32_1 : i32, i32, i32, i32
  }
  func.func @transform_1(%arg0: i32) -> (i32, i32) {
    %c0_i32 = arith.constant 0 : i32
    %c0_i32_0 = arith.constant 0 : i32
    %c0_i32_1 = arith.constant 0 : i32
    return %c0_i32, %c0_i32_0 : i32, i32
  }
  func.func @transform_2(%arg0: i32) -> (i32, i32) {
    %c0_i32 = arith.constant 0 : i32
    %c0_i32_0 = arith.constant 0 : i32
    %c0_i32_1 = arith.constant 0 : i32
    return %c0_i32, %c0_i32_0 : i32, i32
  }
  func.func @transform_3(%arg0: i32) -> (i32, i32, i32, i32) {
    %c0_i32 = arith.constant 0 : i32
    %c0_i32_0 = arith.constant 0 : i32
    %c0_i32_1 = arith.constant 0 : i32
    %c0_i32_2 = arith.constant 0 : i32
    %c0_i32_3 = arith.constant 0 : i32
    return %c0_i32, %c0_i32_0, %c0_i32_1, %c0_i32_2 : i32, i32, i32, i32
  }
  func.func @transform_4(%arg0: i32) -> (i32, i32, i32, i32) {
    %c0_i32 = arith.constant 0 : i32
    %c0_i32_0 = arith.constant 0 : i32
    %c0_i32_1 = arith.constant 0 : i32
    %c0_i32_2 = arith.constant 0 : i32
    return %arg0, %c0_i32, %c0_i32_0, %c0_i32_1 : i32, i32, i32, i32
  }
  func.func @transform_5(%arg0: i32) -> (i32, i32, i32) {
    %c0_i32 = arith.constant 0 : i32
    %c0_i32_0 = arith.constant 0 : i32
    %c0_i32_1 = arith.constant 0 : i32
    return %arg0, %c0_i32, %c0_i32_0 : i32, i32, i32
  }
  func.func @transform_6(%arg0: i32) -> (i32, i32, i32) {
    %c0_i32 = arith.constant 0 : i32
    %c0_i32_0 = arith.constant 0 : i32
    %c0_i32_1 = arith.constant 0 : i32
    return %arg0, %c0_i32, %c0_i32_0 : i32, i32, i32
  }
}

module attributes {stable_mosaic.version = 11 : i64} {
  func.func @_residual_epilogue_kernel(%arg0: i32, %arg1: memref<32x128xf32, #tpu.memory_space<vmem>>, %arg2: memref<32x128xf32, #tpu.memory_space<vmem>>, %arg3: memref<1x128xf32, #tpu.memory_space<vmem>>, %arg4: memref<1x128xf32, #tpu.memory_space<vmem>>, %arg5: memref<1x128xf32, #tpu.memory_space<vmem>>, %arg6: memref<1x128xf32, #tpu.memory_space<vmem>>, %arg7: memref<32x128xf32, #tpu.memory_space<vmem>>) attributes {dimension_semantics = [#tpu.dimension_semantics<parallel>], iteration_bounds = array<i64: 1>, scalar_prefetch = 0 : i64, scratch_operands = 0 : i64, tpu.core_type = #tpu.core_type<tc>, window_params = [{transform_indices = @transform_0, window_bounds = array<i64: 32, 128>}, {transform_indices = @transform_1, window_bounds = array<i64: 32, 128>}, {pipeline_mode = #tpu.pipeline_mode<synchronous>, transform_indices = @transform_2, window_bounds = array<i64: 1, 128>}, {pipeline_mode = #tpu.pipeline_mode<synchronous>, transform_indices = @transform_3, window_bounds = array<i64: 1, 128>}, {pipeline_mode = #tpu.pipeline_mode<synchronous>, transform_indices = @transform_4, window_bounds = array<i64: 1, 128>}, {pipeline_mode = #tpu.pipeline_mode<synchronous>, transform_indices = @transform_5, window_bounds = array<i64: 1, 128>}, {transform_indices = @transform_6, window_bounds = array<i64: 32, 128>}]} {
    %c0 = arith.constant 0 : index
    %c0_0 = arith.constant 0 : index
    %0 = vector.load %arg1[%c0, %c0_0] : memref<32x128xf32, #tpu.memory_space<vmem>>, vector<32x128xf32>
    %c0_1 = arith.constant 0 : index
    %c0_2 = arith.constant 0 : index
    %1 = vector.load %arg3[%c0_1, %c0_2] : memref<1x128xf32, #tpu.memory_space<vmem>>, vector<1x128xf32>
    %2 = vector.broadcast %1 : vector<1x128xf32> to vector<32x128xf32>
    %3 = arith.mulf %0, %2 : vector<32x128xf32>
    %c0_3 = arith.constant 0 : index
    %c0_4 = arith.constant 0 : index
    %4 = vector.load %arg4[%c0_3, %c0_4] : memref<1x128xf32, #tpu.memory_space<vmem>>, vector<1x128xf32>
    %5 = vector.broadcast %4 : vector<1x128xf32> to vector<32x128xf32>
    %6 = arith.addf %3, %5 : vector<32x128xf32>
    %c0_5 = arith.constant 0 : index
    %c0_6 = arith.constant 0 : index
    %7 = vector.load %arg2[%c0_5, %c0_6] : memref<32x128xf32, #tpu.memory_space<vmem>>, vector<32x128xf32>
    %c0_7 = arith.constant 0 : index
    %c0_8 = arith.constant 0 : index
    %8 = vector.load %arg5[%c0_7, %c0_8] : memref<1x128xf32, #tpu.memory_space<vmem>>, vector<1x128xf32>
    %9 = vector.broadcast %8 : vector<1x128xf32> to vector<32x128xf32>
    %10 = arith.mulf %7, %9 : vector<32x128xf32>
    %11 = arith.addf %6, %10 : vector<32x128xf32>
    %c0_9 = arith.constant 0 : index
    %c0_10 = arith.constant 0 : index
    %12 = vector.load %arg6[%c0_9, %c0_10] : memref<1x128xf32, #tpu.memory_space<vmem>>, vector<1x128xf32>
    %13 = vector.broadcast %12 : vector<1x128xf32> to vector<32x128xf32>
    %14 = arith.addf %11, %13 : vector<32x128xf32>
    %cst = arith.constant 0.000000e+00 : f32
    %15 = vector.broadcast %cst : f32 to vector<32x128xf32>
    %16 = arith.maximumf %14, %15 : vector<32x128xf32>
    %c0_11 = arith.constant 0 : index
    %c0_12 = arith.constant 0 : index
    %17 = vector.load %arg7[%c0_11, %c0_12] : memref<32x128xf32, #tpu.memory_space<vmem>>, vector<32x128xf32>
    tpu.vector_store %arg7[%c0_11, %c0_12], %16 {strides = array<i32>} : memref<32x128xf32, #tpu.memory_space<vmem>>, vector<32x128xf32>,
    return
  }
  func.func @transform_0(%arg0: i32) -> (i32, i32) {
    %c0_i32 = arith.constant 0 : i32
    %c0_i32_0 = arith.constant 0 : i32
    return %arg0, %c0_i32 : i32, i32
  }
  func.func @transform_1(%arg0: i32) -> (i32, i32) {
    %c0_i32 = arith.constant 0 : i32
    %c0_i32_0 = arith.constant 0 : i32
    return %arg0, %c0_i32 : i32, i32
  }
  func.func @transform_2(%arg0: i32) -> (i32, i32) {
    %c0_i32 = arith.constant 0 : i32
    %c0_i32_0 = arith.constant 0 : i32
    %c0_i32_1 = arith.constant 0 : i32
    return %c0_i32, %c0_i32_0 : i32, i32
  }
  func.func @transform_3(%arg0: i32) -> (i32, i32) {
    %c0_i32 = arith.constant 0 : i32
    %c0_i32_0 = arith.constant 0 : i32
    %c0_i32_1 = arith.constant 0 : i32
    return %c0_i32, %c0_i32_0 : i32, i32
  }
  func.func @transform_4(%arg0: i32) -> (i32, i32) {
    %c0_i32 = arith.constant 0 : i32
    %c0_i32_0 = arith.constant 0 : i32
    %c0_i32_1 = arith.constant 0 : i32
    return %c0_i32, %c0_i32_0 : i32, i32
  }
  func.func @transform_5(%arg0: i32) -> (i32, i32) {
    %c0_i32 = arith.constant 0 : i32
    %c0_i32_0 = arith.constant 0 : i32
    %c0_i32_1 = arith.constant 0 : i32
    return %c0_i32, %c0_i32_0 : i32, i32
  }
  func.func @transform_6(%arg0: i32) -> (i32, i32) {
    %c0_i32 = arith.constant 0 : i32
    %c0_i32_0 = arith.constant 0 : i32
    return %arg0, %c0_i32 : i32, i32
  }
}

</mosaic_0001>

<bundles_post_ra>
// kernel: tile.18
= control target key start
LH: loop header
LB: loop body
LE: loop exit
PB: predicated region body
PF: predicated region fallthrough
CT: control target
= control target key end

     0   :  { %s28_s0 = inlined_call_operand.vmem [shape: f32[8], index: 0, kind: input, shape index: {}]   ;;  %s29_s1 = inlined_call_operand.vmem [shape: f32[16,8], index: 1, kind: output, shape index: {}]  }
   0x1   :  { %v4_v0 = vld [vmem:[%s28_s0] ss:$0 sm:$0xff] }
   0x2   :  { %5 = vst [vmem:[%s29_s1] sm:$0xff] %v4_v0  ;;  %8 = vst [vmem:[%s29_s1 + $0x8] sm:$0xff] %v4_v0 }

// kernel: tile.19
= control target key start
LH: loop header
LB: loop body
LE: loop exit
PB: predicated region body
PF: predicated region fallthrough
CT: control target
= control target key end

     0   :  { %s131_s10 = smov 120   ;;  %s132_s11 = smov 104   ;;  %vm3_vm0 = vcmask 64512   ;;  %vm9_vm1 = vcmask 1048512   ;;  %vm15_vm2 = vcmask 982912   ;;  %vm21_vm3 = vcmask 917312   ;;  %s207_s0 = inlined_call_operand.vmem [shape: f32[16,8], index: 0, kind: input, shape index: {}]   ;;  %s208_s1 = inlined_call_operand.vmem [shape: f32[1,128], index: 1, kind: output, shape index: {}]  }
   0x1   :  { %v101_v0 = vld [vmem:[%s207_s0 + $0xf] sm:$0x1]   ;;  %v103_v1 = vld [vmem:[%s207_s0 + $0xd] sm:$0x1]   ;;  %v102_v2 = vld [vmem:[%s207_s0 + $0xe] sm:$0x1]  }
   0x2   :  { %7 = vrot.lane.b32.xlu0 %v101_v0, %s131_s10  ;;  %19 = vrot.lane.b32.xlu1 %v103_v1, %s132_s11  ;;  %v104_v3 = vld [vmem:[%s207_s0 + $0xc] sm:$0x1]   ;;  %s133_s16 = smov 112   ;;  %s134_s17 = smov 96   ;;  %v105_v4 = vld [vmem:[%s207_s0 + $0xb] sm:$0x1]  }
   0x3   :  { %v106_v5 = vld [vmem:[%s207_s0 + $0xa] sm:$0x1]   ;;  %v2_v6 = vld [vmem:[%s207_s0] sm:$0x1]   ;;  %s135_s24 = smov 88   ;;  %s136_s25 = smov 80  }
   0x4   :  { %4 = vst.msk [vmem:[#allocation0] sm:$0x1] %vm3_vm0, %v2_v6   ;;  %v107_v7 = vld [vmem:[%s207_s0 + $0x9] sm:$0x1]   ;;  %v108_v8 = vld [vmem:[%s207_s0 + $0x8] sm:$0x1]  }
   0x5   :  { %s137_s30 = smov 72   ;;  %s138_s2 = smov 64   ;;  %v109_v9 = vld [vmem:[%s207_s0 + $0x7] sm:$0x1]   ;;  %v110_v10 = vld [vmem:[%s207_s0 + $0x6] sm:$0x1]  }
   0x6   :  { %13 = vrot.lane.b32.xlu0 %v102_v2, %s133_s16  ;;  %25 = vrot.lane.b32.xlu1 %v104_v3, %s134_s17  ;;  %s139_s7 = smov 56   ;;  %s140_s8 = smov 48   ;;  %v111_v11 = vld [vmem:[%s207_s0 + $0x5] sm:$0x1]   ;;  %v112_v12 = vld [vmem:[%s207_s0 + $0x4] sm:$0x1]  }
   0x7   :  { %s141_s13 = smov 40   ;;  %s142_s14 = smov 32   ;;  %v113_v13 = vld [vmem:[%s207_s0 + $0x3] sm:$0x1]   ;;  %v114_v14 = vld [vmem:[%s207_s0 + $0x2] sm:$0x1]  }
   0x8   :  { %s143_s19 = smov 24   ;;  %s144_s20 = smov 16   ;;  %v115_v15 = vld [vmem:[%s207_s0 + $0x1] sm:$0x1]   ;;  %vm27_vm4 = vcmask 851712   ;;  %vm33_vm5 = vcmask 786112  }
   0x9   :  { %s145_s0 = smov 8   ;;  %vm39_vm6 = vcmask 720512   ;;  %vm45_vm7 = vcmask 654912   ;;  %vm51_vm8 = vcmask 589312   ;;  %vm57_vm9 = vcmask 523712  }
   0xa   :  { %31 = vrot.lane.b32.xlu0 %v105_v4, %s135_s24  ;;  %37 = vrot.lane.b32.xlu1 %v106_v5, %s136_s25  ;;  %vm63_vm10 = vcmask 458112   ;;  %vm69_vm11 = vcmask 392512   ;;  %vm75_vm12 = vcmask 326912   ;;  %vm81_vm13 = vcmask 261312  }
   0xb   :  { %vm87_vm14 = vcmask 195712   ;;  %vm93_vm15 = vcmask 130112  }
   0xe   :  { %43 = vrot.lane.b32.xlu0 %v107_v7, %s137_s30  ;;  %49 = vrot.lane.b32.xlu1 %v108_v8, %s138_s2 }
  0x12   :  { %55 = vrot.lane.b32.xlu0 %v109_v9, %s139_s7  ;;  %61 = vrot.lane.b32.xlu1 %v110_v10, %s140_s8 }
  0x16   :  { %67 = vrot.lane.b32.xlu0 %v111_v11, %s141_s13  ;;  %73 = vrot.lane.b32.xlu1 %v112_v12, %s142_s14 }
  0x1a   :  { %79 = vrot.lane.b32.xlu0 %v113_v13, %s143_s19  ;;  %85 = vrot.lane.b32.xlu1 %v114_v14, %s144_s20 }
  0x1e   :  { %91 = vrot.lane.b32.xlu0 %v115_v15, %s145_s0 }
  0x74   :  { %v8_v16 = vpop.permute.xlu0 %7   ;;  %v20_v17 = vpop.permute.xlu1 %19  }
  0x75   :  { %10 = vst.msk [vmem:[#allocation0] sm:$0x1] %vm9_vm1, %v8_v16  }
  0x78   :  { %v14_v18 = vpop.permute.xlu0 %13   ;;  %v26_v19 = vpop.permute.xlu1 %25  }
  0x79   :  { %16 = vst.msk [vmem:[#allocation0] sm:$0x1] %vm15_vm2, %v14_v18  }
  0x7a   :  { %22 = vst.msk [vmem:[#allocation0] sm:$0x1] %vm21_vm3, %v20_v17  }
  0x7b   :  { %28 = vst.msk [vmem:[#allocation0] sm:$0x1] %vm27_vm4, %v26_v19  }
  0x7c   :  { %v32_v20 = vpop.permute.xlu0 %31   ;;  %v38_v21 = vpop.permute.xlu1 %37  }
  0x7d   :  { %34 = vst.msk [vmem:[#allocation0] sm:$0x1] %vm33_vm5, %v32_v20  }
  0x7e   :  { %40 = vst.msk [vmem:[#allocation0] sm:$0x1] %vm39_vm6, %v38_v21  }
  0x80   :  { %v44_v22 = vpop.permute.xlu0 %43   ;;  %v50_v23 = vpop.permute.xlu1 %49  }
  0x81   :  { %46 = vst.msk [vmem:[#allocation0] sm:$0x1] %vm45_vm7, %v44_v22  }
  0x82   :  { %52 = vst.msk [vmem:[#allocation0] sm:$0x1] %vm51_vm8, %v50_v23  }
  0x84   :  { %v56_v24 = vpop.permute.xlu0 %55   ;;  %v62_v25 = vpop.permute.xlu1 %61  }
  0x85   :  { %58 = vst.msk [vmem:[#allocation0] sm:$0x1] %vm57_vm9, %v56_v24  }
  0x86   :  { %64 = vst.msk [vmem:[#allocation0] sm:$0x1] %vm63_vm10, %v62_v25  }
  0x88   :  { %v68_v26 = vpop.permute.xlu0 %67   ;;  %v74_v27 = vpop.permute.xlu1 %73  }
  0x89   :  { %70 = vst.msk [vmem:[#allocation0] sm:$0x1] %vm69_vm11, %v68_v26  }
  0x8a   :  { %76 = vst.msk [vmem:[#allocation0] sm:$0x1] %vm75_vm12, %v74_v27  }
  0x8c   :  { %v80_v28 = vpop.permute.xlu0 %79   ;;  %v86_v29 = vpop.permute.xlu1 %85  }
  0x8d   :  { %82 = vst.msk [vmem:[#allocation0] sm:$0x1] %vm81_vm13, %v80_v28  }
  0x8e   :  { %88 = vst.msk [vmem:[#allocation0] sm:$0x1] %vm87_vm14, %v86_v29  }
  0x90   :  { %v92_v30 = vpop.permute.xlu0 %91  }
  0x91   :  { %94 = vst.msk [vmem:[#allocation0] sm:$0x1] %vm93_vm15, %v92_v30  }
  0x98   :  { %v98_v31 = vld [vmem:[#allocation0] sm:$0x1] }
  0x99   :  { %100 = vst [vmem:[%s208_s1] sm:$0x1] %v98_v31 }

// kernel: basic_block_forward.5
= control target key start
LH: loop header
LB: loop body
LE: loop exit
PB: predicated region body
PF: predicated region fallthrough
CT: control target
= control target key end

     0   :  { %s178_s0 = inlined_call_operand.vmem [shape: f32[32,128], index: 0, kind: input, shape index: {}]   ;;  %s179_s1 = inlined_call_operand.vmem [shape: f32[32,128], index: 1, kind: input, shape index: {}]   ;;  %s180_s2 = inlined_call_operand.vmem [shape: f32[1,128], index: 2, kind: input, shape index: {}]   ;;  %s181_s3 = inlined_call_operand.vmem [shape: f32[1,128], index: 3, kind: input, shape index: {}]   ;;  %s182_s4 = inlined_call_operand.vmem [shape: f32[1,128], index: 4, kind: input, shape index: {}]   ;;  %s183_s5 = inlined_call_operand.vmem [shape: f32[1,128], index: 5, kind: input, shape index: {}]   ;;  %s184_s6 = inlined_call_operand.vmem [shape: f32[32,128], index: 6, kind: output, shape index: {}]  }
   0x1   :  { %v23_v0 = vld [vmem:[%s178_s0] sm:$0xff]  ;;  %v24_v7 = vld [vmem:[%s178_s0 + $0x8] sm:$0xff]  ;;  %v25_v9 = vld [vmem:[%s178_s0 + $0x10] sm:$0xff] }
   0x2   :  { %v91_v1 = vld [vmem:[%s180_s2] ss:$0 sm:$0xff]  ;;  %v50_v8 = vld [vmem:[%s179_s1 + $0x8] sm:$0xff]  ;;  %v51_v14 = vld [vmem:[%s179_s1 + $0x10] sm:$0xff] }
   0x3   :  { %v92_v2 = vld [vmem:[%s181_s3] ss:$0 sm:$0xff]  ;;  %v34_v3 = vmul.f32 %v91_v1, %v23_v0  ;;  %v35_v11 = vmul.f32 %v91_v1, %v24_v7  ;;  %v36_v13 = vmul.f32 %v91_v1, %v25_v9  ;;  %v26_v15 = vld [vmem:[%s178_s0 + $0x18] sm:$0xff] }
   0x4   :  { %v49_v4 = vld [vmem:[%s179_s1] sm:$0xff]  ;;  %v52_v16 = vld [vmem:[%s179_s1 + $0x18] sm:$0xff]  ;;  %v37_v19 = vmul.f32 %v91_v1, %v26_v15 }
   0x5   :  { %v93_v5 = vld [vmem:[%s182_s4] ss:$0 sm:$0xff]  ;;  %v45_v10 = vadd.f32 %v92_v2, %v34_v3  ;;  %v46_v22 = vadd.f32 %v92_v2, %v35_v11  ;;  %v47_v23 = vadd.f32 %v92_v2, %v36_v13 }
   0x6   :  { %v60_v6 = vmul.f32 %v93_v5, %v49_v4  ;;  %v61_v12 = vmul.f32 %v93_v5, %v50_v8  ;;  %v94_v17 = vld [vmem:[%s183_s5] ss:$0 sm:$0xff]  ;;  %v62_v18 = vmul.f32 %v93_v5, %v51_v14  ;;  %v63_v20 = vmul.f32 %v93_v5, %v52_v16 }
   0x7   :  { %v48_v24 = vadd.f32 %v92_v2, %v37_v19 }
   0x8   :  { %v64_v21 = vadd.f32 %v60_v6, %v45_v10  ;;  %v65_v26 = vadd.f32 %v61_v12, %v46_v22  ;;  %v66_v27 = vadd.f32 %v62_v18, %v47_v23 }
   0x9   :  { %v67_v28 = vadd.f32 %v63_v20, %v48_v24 }
   0xa   :  { %v75_v25 = vadd.f32 %v94_v17, %v64_v21  ;;  %v76_v30 = vadd.f32 %v94_v17, %v65_v26  ;;  %v77_v31 = vadd.f32 %v94_v17, %v66_v27 }
   0xb   :  { %v78_v32 = vadd.f32 %v94_v17, %v67_v28 }
   0xc   :  { %v79_v29 = vmax.f32 %v75_v25, 0.0  ;;  %v80_v33 = vmax.f32 %v76_v30, 0.0  ;;  %v81_v34 = vmax.f32 %v77_v31, 0.0 }
   0xd   :  { %v82_v35 = vmax.f32 %v78_v32, 0.0 }
   0xe   :  { %83 = vst [vmem:[%s184_s6] sm:$0xff] %v79_v29  ;;  %84 = vst [vmem:[%s184_s6 + $0x8] sm:$0xff] %v80_v33 }
   0xf   :  { %85 = vst [vmem:[%s184_s6 + $0x10] sm:$0xff] %v81_v34  ;;  %86 = vst [vmem:[%s184_s6 + $0x18] sm:$0xff] %v82_v35 }

// kernel: basic_block_forward.4
= control target key start
LH: loop header
LB: loop body
LE: loop exit
PB: predicated region body
PF: predicated region fallthrough
CT: control target
= control target key end

     0   :  { %s4358_s21 = smov 0   ;;  %s5283_s0 = inlined_call_operand.vmem [shape: f32[2,16,16,8], index: 0, kind: input, shape index: {}]   ;;  %s5284_s1 = inlined_call_operand.vmem [shape: f32[1,8], index: 1, kind: input, shape index: {}]   ;;  %s5285_s2 = inlined_call_operand.vmem [shape: f32[1,8], index: 2, kind: input, shape index: {}]   ;;  %s5286_s3 = inlined_call_operand.vmem [shape: bf16[3,3,8,8], index: 3, kind: input, shape index: {}]   ;;  %s5287_s4 = inlined_call_operand.vmem [shape: f32[2,16,16,8], index: 4, kind: output, shape index: {0}]   ;;  %s5288_s5 = inlined_call_operand.vmem [shape: f32[2,1,8], index: 5, kind: output, shape index: {1}]   ;;  %s5289_s6 = inlined_call_operand.vmem [shape: f32[2,1,8], index: 6, kind: output, shape index: {2}]  }
   0x1 LB: > { %s3411_s22 = sadd.s32 4294967295, %s4320_s21   ;;  %p3415_p0 = scmp.ge.s32.totalorder %s4320_s21, 1  ;;  %s4320_s21 = sphi %s4358_s21, %s17_s21  }
   0x2   : > { %p217_p1 = scmp.lt.s32.totalorder %s4320_s21, 3 }
   0x4   : > { %p218_p2 = pnand %p3415_p0, %p217_p1 }
   0x5   : > { %v3422_v0 = vld [vmem:[%s5286_s3 + $0x4] sm:$0xf] (!%p218_p2)  ;;  %vm665_vm0 = vcmask (!%p218_p2), 1043456   ;;  %v4372_v1 = vld [vmem:[%s5286_s3 + $0x10] sm:$0xf] (!%p218_p2)  ;;  %vm412_vm1 = vcmask (!%p218_p2), 64512  }
   0x6   : > { %221 = sbr.rel (%p218_p2) target bundleno = 573 (0x23d), region = 36  ;;  %4295 = vmatprep.subr.msk.bf16.mxu1 (!%p218_p2), %vm665_vm0, %v3422_v0  ;;  %4299 = vmatprep.subr.msk.bf16.mxu0 (!%p218_p2), %vm665_vm0, %v4372_v1  ;;  %v667_v2 = vsel (!%p218_p2), %vm665_vm0, %v3422_v0, 0  ;;  %v4380_v3 = vsel (!%p218_p2), %vm665_vm0, %v4372_v1, 0  ;;  %p4384_p3 = scmp.lt.s32.totalorder (!%p218_p2), %s3411_s22, 1  ;;  %v4322_v4 = vmov (!%p218_p2), 0.0   ;;  %vm3202_vm2 = vcmask (!%p218_p2), 57344  }
   0x7   : > { %3732 = vmatpush3.bf16.msra.mxu1 (!%p218_p2), %v667_v2  ;;  %3868 = vmatpush3.bf16.msra.mxu0 (!%p218_p2), %v4380_v3  ;;  %414 = vst.msk [vmem:[#allocation2 + $0x8] sm:$0xff] (!%p218_p2), %vm412_vm1, %v4322_v4  ;;  %415 = vst.msk [vmem:[#allocation2 + $0x10] sm:$0xff] (!%p218_p2), %vm412_vm1, %v4322_v4  ;;  %v566_v5 = vld [vmem:[%s5286_s3] sm:$0xf] (!%p218_p2)  ;;  %v3506_v6 = vld [vmem:[%s5286_s3 + $0x14] sm:$0xf] (!%p218_p2) }
   0x8   : > { %413 = vst.msk [vmem:[#allocation2] sm:$0xff] (!%p218_p2), %vm412_vm1, %v4322_v4  ;;  %416 = vst.msk [vmem:[#allocation2 + $0x18] sm:$0xff] (!%p218_p2), %vm412_vm1, %v4322_v4  ;;  %4296 = vmatprep.subr.msk.bf16.mxu1 (!%p218_p2), %vm665_vm0, %v566_v5  ;;  %4301 = vmatprep.subr.msk.bf16.mxu0 (!%p218_p2), %vm665_vm0, %v3506_v6  ;;  %v4551_v7 = vld [vmem:[%s5284_s1] ss:$0 sm:$0xff] (!%p218_p2)  ;;  %v4571_v14 = vsel (!%p218_p2), %vm665_vm0, %v566_v5, 0  ;;  %v4579_v22 = vsel (!%p218_p2), %vm665_vm0, %v3506_v6, 0 }
   0x9   : > { %417 = vst.msk [vmem:[#allocation2 + $0x20] sm:$0xff] (!%p218_p2), %vm412_vm1, %v4322_v4  ;;  %418 = vst.msk [vmem:[#allocation2 + $0x28] sm:$0xff] (!%p218_p2), %vm412_vm1, %v4322_v4  ;;  %v4563_v8 = vld [vmem:[%s5285_s2] ss:$0 sm:$0xff] (!%p218_p2) }
   0xa   : > { %419 = vst.msk [vmem:[#allocation2 + $0x30] sm:$0xff] (!%p218_p2), %vm412_vm1, %v4322_v4  ;;  %420 = vst.msk [vmem:[#allocation2 + $0x38] sm:$0xff] (!%p218_p2), %vm412_vm1, %v4322_v4 }
   0xb   : > { %421 = vst.msk [vmem:[#allocation2 + $0x40] sm:$0xff] (!%p218_p2), %vm412_vm1, %v4322_v4  ;;  %422 = vst.msk [vmem:[#allocation2 + $0x48] sm:$0xff] (!%p218_p2), %vm412_vm1, %v4322_v4 }
   0xc   : > { %423 = vst.msk [vmem:[#allocation2 + $0x50] sm:$0xff] (!%p218_p2), %vm412_vm1, %v4322_v4  ;;  %424 = vst.msk [vmem:[#allocation2 + $0x58] sm:$0xff] (!%p218_p2), %vm412_vm1, %v4322_v4 }
   0xd   : > { %425 = vst.msk [vmem:[#allocation2 + $0x60] sm:$0xff] %vm412_vm1, %v4322_v4  ;;  %426 = vst.msk [vmem:[#allocation2 + $0x68] sm:$0xff] %vm412_vm1, %v4322_v4  ;;  %s5292_s22 = smov (!%p4384_p3, %s3411_s22), 1 }
   0xe   : > { %427 = vst.msk [vmem:[#allocation2 + $0x70] sm:$0xff] %vm412_vm1, %v4322_v4  ;;  %428 = vst.msk [vmem:[#allocation2 + $0x78] sm:$0xff] %vm412_vm1, %v4322_v4  ;;  %s3576_s8 = sshll.u32 %s5292_s22, 8  ;;  %v567_v19 = vld [vmem:[#allocation2 + $0x8] sm:$0xff]  ;;  %v568_v20 = vld [vmem:[#allocation2 + $0x10] sm:$0xff]  ;;  %s265_s9 = scalar_lea.vmem %s5288_s5, %s5292_s22 }
   0xf   : > { %429 = vst.msk [vmem:[#allocation2 + $0x80] sm:$0xff] %vm412_vm1, %v4322_v4  ;;  %430 = vst.msk [vmem:[#allocation2 + $0x88] sm:$0xff] %vm412_vm1, %v4322_v4  ;;  %s4558_s13 = scalar_lea.vmem %s5283_s0, %s3576_s8  ;;  %v599_v26 = vpack.c.bf16 %v568_v20, %v567_v19  ;;  %s5134_s30 = scalar_lea.vmem %s5287_s4, %s3576_s8 }
  0x10   : > { %431 = vst.msk [vmem:[#allocation2 + $0x90] sm:$0xff] %vm412_vm1, %v4322_v4  ;;  %432 = vst.msk [vmem:[#allocation2 + $0x98] sm:$0xff] %vm412_vm1, %v4322_v4  ;;  %v270_v9 = vld [vmem:[%s4558_s13] sm:$0xff]  ;;  %v271_v10 = vld [vmem:[%s4558_s13 + $0x8] sm:$0xff]  ;;  %s268_s12 = scalar_lea.vmem %s5289_s6, %s5292_s22 }
  0x11   : > { %433 = vst.msk [vmem:[#allocation2 + $0xa0] sm:$0xff] %vm412_vm1, %v4322_v4  ;;  %434 = vst.msk [vmem:[#allocation2 + $0xa8] sm:$0xff] %vm412_vm1, %v4322_v4  ;;  %v272_v11 = vld [vmem:[%s4558_s13 + $0x10] sm:$0xff]  ;;  %v309_v12 = vmul.f32 %v4551_v7, %v270_v9  ;;  %v310_v13 = vmul.f32 %v4551_v7, %v271_v10  ;;  %v273_v15 = vld [vmem:[%s4558_s13 + $0x18] sm:$0xff]  ;;  %3733 = vmatprep.mubr.msk.bf16.mxu1 %vm412_vm1, %v599_v26 }
  0x12   : > { %435 = vst.msk [vmem:[#allocation2 + $0xb0] sm:$0xff] %vm412_vm1, %v4322_v4  ;;  %436 = vst.msk [vmem:[#allocation2 + $0xb8] sm:$0xff] %vm412_vm1, %v4322_v4  ;;  %v311_v16 = vmul.f32 %v4551_v7, %v272_v11  ;;  %v274_v17 = vld [vmem:[%s4558_s13 + $0x20] sm:$0xff]  ;;  %v275_v18 = vld [vmem:[%s4558_s13 + $0x28] sm:$0xff]  ;;  %v312_v21 = vmul.f32 %v4551_v7, %v273_v15 }
  0x13   : > { %437 = vst.msk [vmem:[#allocation2 + $0xc0] sm:$0xff] %vm412_vm1, %v4322_v4  ;;  %438 = vst.msk [vmem:[#allocation2 + $0xc8] sm:$0xff] %vm412_vm1, %v4322_v4  ;;  %v313_v23 = vmul.f32 %v4551_v7, %v274_v17  ;;  %v314_v24 = vmul.f32 %v4551_v7, %v275_v18  ;;  %v276_v25 = vld [vmem:[%s4558_s13 + $0x30] sm:$0xff]  ;;  %v348_v27 = vadd.f32 %v4563_v8, %v309_v12  ;;  %v277_v30 = vld [vmem:[%s4558_s13 + $0x38] sm:$0xff] }
  0x14   : > { %439 = vst.msk [vmem:[#allocation2 + $0xd0] sm:$0xff] %vm412_vm1, %v4322_v4  ;;  %440 = vst.msk [vmem:[#allocation2 + $0xd8] sm:$0xff] %vm412_vm1, %v4322_v4  ;;  %v349_v28 = vadd.f32 %v4563_v8, %v310_v13  ;;  %v350_v29 = vadd.f32 %v4563_v8, %v311_v16  ;;  %v351_v31 = vadd.f32 %v4563_v8, %v312_v21  ;;  %v278_v35 = vld [vmem:[%s4558_s13 + $0x40] sm:$0xff]  ;;  %v279_v36 = vld [vmem:[%s4558_s13 + $0x48] sm:$0xff] }
  0x15   : > { %441 = vst.msk [vmem:[#allocation2 + $0xe0] sm:$0xff] %vm412_vm1, %v4322_v4  ;;  %442 = vst.msk [vmem:[#allocation2 + $0xe8] sm:$0xff] %vm412_vm1, %v4322_v4  ;;  %v352_v32 = vadd.f32 %v4563_v8, %v313_v23  ;;  %v353_v33 = vadd.f32 %v4563_v8, %v314_v24  ;;  %v315_v34 = vmul.f32 %v4551_v7, %v276_v25  ;;  %v280_v37 = vld [vmem:[%s4558_s13 + $0x50] sm:$0xff]  ;;  %v380_v38 = vmax.f32 %v348_v27, 0.0  ;;  %v281_v42 = vld [vmem:[%s4558_s13 + $0x58] sm:$0xff] }
  0x16   : > { %443 = vst.msk [vmem:[#allocation2 + $0xf0] sm:$0xff] %vm412_vm1, %v4322_v4  ;;  %444 = vst.msk [vmem:[#allocation2 + $0xf8] sm:$0xff] %vm412_vm1, %v4322_v4  ;;  %v381_v39 = vmax.f32 %v349_v28, 0.0  ;;  %v382_v40 = vmax.f32 %v350_v29, 0.0  ;;  %v316_v41 = vmul.f32 %v4551_v7, %v277_v30  ;;  %v282_v43 = vld [vmem:[%s4558_s13 + $0x60] sm:$0xff]  ;;  %v283_v44 = vld [vmem:[%s4558_s13 + $0x68] sm:$0xff]  ;;  %v317_v50 = vmul.f32 %v4551_v7, %v278_v35 }
  0x17   : > { %445 = vst.msk [vmem:[#allocation2 + $0x100] sm:$0xff] %vm412_vm1, %v4322_v4  ;;  %446 = vst.msk [vmem:[#allocation2 + $0x108] sm:$0xff] %vm412_vm1, %v4322_v4  ;;  %v383_v45 = vmax.f32 %v351_v31, 0.0  ;;  %v384_v46 = vmax.f32 %v352_v32, 0.0  ;;  %v385_v47 = vmax.f32 %v353_v33, 0.0  ;;  %v354_v48 = vadd.f32 %v4563_v8, %v315_v34  ;;  %v284_v53 = vld [vmem:[%s4558_s13 + $0x70] sm:$0xff] }
  0x18   : > { %447 = vst.msk [vmem:[#allocation2 + $0x110] sm:$0xff] %vm412_vm1, %v4322_v4  ;;  %448 = vst.msk [vmem:[#allocation2 + $0x118] sm:$0xff] %vm412_vm1, %v4322_v4  ;;  %v355_v49 = vadd.f32 %v4563_v8, %v316_v41  ;;  %v318_v51 = vmul.f32 %v4551_v7, %v279_v36  ;;  %v319_v52 = vmul.f32 %v4551_v7, %v280_v37  ;;  %v285_v58 = vld [vmem:[%s4558_s13 + $0x78] sm:$0xff]  ;;  %v286_v5 = vld [vmem:[%s4558_s13 + $0x80] sm:$0xff] }
  0x19   : > { %449 = vst.msk [vmem:[#allocation2 + $0x120] sm:$0xff] %vm412_vm1, %v4322_v4  ;;  %450 = vst.msk [vmem:[#allocation2 + $0x128] sm:$0xff] %vm412_vm1, %v4322_v4  ;;  %v386_v54 = vmax.f32 %v354_v48, 0.0  ;;  %v320_v55 = vmul.f32 %v4551_v7, %v281_v42  ;;  %v321_v56 = vmul.f32 %v4551_v7, %v282_v43  ;;  %v322_v57 = vmul.f32 %v4551_v7, %v283_v44  ;;  %v287_v6 = vld [vmem:[%s4558_s13 + $0x88] sm:$0xff]  ;;  %v288_v9 = vld [vmem:[%s4558_s13 + $0x90] sm:$0xff] }
  0x1a   : > { %451 = vst.msk [vmem:[#allocation2 + $0x130] sm:$0xff] %vm412_vm1, %v4322_v4  ;;  %452 = vst.msk [vmem:[#allocation2 + $0x138] sm:$0xff] %vm412_vm1, %v4322_v4  ;;  %v387_v59 = vmax.f32 %v355_v49, 0.0  ;;  %v356_v60 = vadd.f32 %v4563_v8, %v317_v50  ;;  %v357_v61 = vadd.f32 %v4563_v8, %v318_v51  ;;  %v358_v62 = vadd.f32 %v4563_v8, %v319_v52  ;;  %v289_v15 = vld [vmem:[%s4558_s13 + $0x98] sm:$0xff]  ;;  %v290_v16 = vld [vmem:[%s4558_s13 + $0xa0] sm:$0xff] }
  0x1b   : > { %453 = vst.msk [vmem:[#allocation2 + $0x140] sm:$0xff] %vm412_vm1, %v4322_v4  ;;  %454 = vst.msk [vmem:[#allocation2 + $0x148] sm:$0xff] %vm412_vm1, %v4322_v4  ;;  %v359_v63 = vadd.f32 %v4563_v8, %v320_v55  ;;  %v360_v0 = vadd.f32 %v4563_v8, %v321_v56  ;;  %v361_v2 = vadd.f32 %v4563_v8, %v322_v57  ;;  %v291_v17 = vld [vmem:[%s4558_s13 + $0xa8] sm:$0xff]  ;;  %v4662_v48 = vld [vmem:[%s5286_s3 + $0x18] sm:$0xf] }
  0x1c   : > { %455 = vst.msk [vmem:[#allocation2 + $0x150] sm:$0xff] %vm412_vm1, %v4322_v4  ;;  %456 = vst.msk [vmem:[#allocation2 + $0x158] sm:$0xff] %vm412_vm1, %v4322_v4  ;;  %v388_v10 = vmax.f32 %v356_v60, 0.0  ;;  %v389_v11 = vmax.f32 %v357_v61, 0.0  ;;  %v390_v12 = vmax.f32 %v358_v62, 0.0  ;;  %v324_v13 = vmul.f32 %v4551_v7, %v285_v58  ;;  %v293_v50 = vld [vmem:[%s4558_s13 + $0xb8] sm:$0xff] }
  0x1d   : > { %457 = vst.msk [vmem:[#allocation2 + $0x160] sm:$0xff] %vm412_vm1, %v4322_v4  ;;  %458 = vst.msk [vmem:[#allocation2 + $0x168] sm:$0xff] %vm412_vm1, %v4322_v4  ;;  %v391_v18 = vmax.f32 %v359_v63, 0.0  ;;  %v392_v19 = vmax.f32 %v360_v0, 0.0  ;;  %v393_v20 = vmax.f32 %v361_v2, 0.0  ;;  %v325_v24 = vmul.f32 %v4551_v7, %v286_v5  ;;  %v294_v51 = vld [vmem:[%s4558_s13 + $0xc0] sm:$0xff] }
  0x1e   : > { %459 = vst.msk [vmem:[#allocation2 + $0x170] sm:$0xff] %vm412_vm1, %v4322_v4  ;;  %460 = vst.msk [vmem:[#allocation2 + $0x178] sm:$0xff] %vm412_vm1, %v4322_v4  ;;  %v363_v23 = vadd.f32 %v4563_v8, %v324_v13  ;;  %v326_v25 = vmul.f32 %v4551_v7, %v287_v6  ;;  %v327_v26 = vmul.f32 %v4551_v7, %v288_v9  ;;  %v295_v55 = vld [vmem:[%s4558_s13 + $0xc8] sm:$0xff]  ;;  %v296_v56 = vld [vmem:[%s4558_s13 + $0xd0] sm:$0xff] }
  0x1f   : > { %461 = vst.msk [vmem:[#allocation2 + $0x180] sm:$0xff] %vm412_vm1, %v4322_v4  ;;  %462 = vst.msk [vmem:[#allocation2 + $0x188] sm:$0xff] %vm412_vm1, %v4322_v4  ;;  %v328_v31 = vmul.f32 %v4551_v7, %v289_v15  ;;  %v329_v32 = vmul.f32 %v4551_v7, %v290_v16  ;;  %v330_v33 = vmul.f32 %v4551_v7, %v291_v17  ;;  %v4676_v57 = vld [vmem:[%s5286_s3 + $0x8] sm:$0xf]  ;;  %v297_v2 = vld [vmem:[%s4558_s13 + $0xd8] sm:$0xff] }
  0x20   : > { %463 = vst.msk [vmem:[#allocation2 + $0x190] sm:$0xff] %vm412_vm1, %v4322_v4  ;;  %464 = vst.msk [vmem:[#allocation2 + $0x198] sm:$0xff] %vm412_vm1, %v4322_v4  ;;  %v366_v43 = vadd.f32 %v4563_v8, %v327_v26  ;;  %v332_v63 = vmul.f32 %v4551_v7, %v293_v50  ;;  %v333_v0 = vmul.f32 %v4551_v7, %v294_v51 }
  0x21   : > { %465 = vst.msk [vmem:[#allocation2 + $0x1a0] sm:$0xff] %vm412_vm1, %v4322_v4  ;;  %466 = vst.msk [vmem:[#allocation2 + $0x1a8] sm:$0xff] %vm412_vm1, %v4322_v4  ;;  %v367_v44 = vadd.f32 %v4563_v8, %v328_v31  ;;  %v368_v49 = vadd.f32 %v4563_v8, %v329_v32  ;;  %v334_v5 = vmul.f32 %v4551_v7, %v295_v55 }
  0x22   : > { %467 = vst.msk [vmem:[#allocation2 + $0x1b0] sm:$0xff] %vm412_vm1, %v4322_v4  ;;  %468 = vst.msk [vmem:[#allocation2 + $0x1b8] sm:$0xff] %vm412_vm1, %v4322_v4  ;;  %v398_v52 = vmax.f32 %v366_v43, 0.0  ;;  %v335_v6 = vmul.f32 %v4551_v7, %v296_v56  ;;  %v336_v17 = vmul.f32 %v4551_v7, %v297_v2  ;;  %v2318_v2 = vsel %vm665_vm0, %v4662_v48, 0 }
  0x23   : > { %469 = vst.msk [vmem:[#allocation2 + $0x1c0] sm:$0xff] %vm412_vm1, %v4322_v4  ;;  %470 = vst.msk [vmem:[#allocation2 + $0x1c8] sm:$0xff] %vm412_vm1, %v4322_v4  ;;  %v373_v16 = vadd.f32 %v4563_v8, %v334_v5 }
  0x24   : > { %471 = vst.msk [vmem:[#allocation2 + $0x1d0] sm:$0xff] %vm412_vm1, %v4322_v4  ;;  %472 = vst.msk [vmem:[#allocation2 + $0x1d8] sm:$0xff] %vm412_vm1, %v4322_v4 }
  0x25   : > { %473 = vst.msk [vmem:[#allocation2 + $0x1e0] sm:$0xff] %vm412_vm1, %v4322_v4  ;;  %474 = vst.msk [vmem:[#allocation2 + $0x1e8] sm:$0xff] %vm412_vm1, %v4322_v4 }
  0x26   : > { %475 = vst.msk [vmem:[#allocation2 + $0x1f0] sm:$0xff] %vm412_vm1, %v4322_v4  ;;  %476 = vst.msk [vmem:[#allocation2 + $0x1f8] sm:$0xff] %vm412_vm1, %v4322_v4 }
  0x27   : > { %477 = vst.msk [vmem:[#allocation2 + $0x200] sm:$0xff] %vm412_vm1, %v4322_v4  ;;  %478 = vst.msk [vmem:[#allocation2 + $0x208] sm:$0xff] %vm412_vm1, %v4322_v4 }
  0x28   : > { %479 = vst.msk [vmem:[#allocation2 + $0x210] sm:$0xff] %vm412_vm1, %v4322_v4  ;;  %480 = vst.msk [vmem:[#allocation2 + $0x218] sm:$0xff] %vm412_vm1, %v4322_v4 }
  0x29   : > { %481 = vst.msk [vmem:[#allocation2 + $0x220] sm:$0xff] %vm412_vm1, %v4322_v4  ;;  %482 = vst.msk [vmem:[#allocation2 + $0x228] sm:$0xff] %vm412_vm1, %v4322_v4 }
  0x2a   : > { %483 = vst.msk [vmem:[#allocation2 + $0x230] sm:$0xff] %vm412_vm1, %v4322_v4  ;;  %484 = vst.msk [vmem:[#allocation2 + $0x238] sm:$0xff] %vm412_vm1, %v4322_v4  ;;  %v323_v4 = vmul.f32 %v4551_v7, %v284_v53  ;;  %v399_v53 = vmax.f32 %v367_v44, 0.0 }
  0x2b   : > { %486 = vst.msk [vmem:[#allocation2 + $0x28] sm:$0xff] %vm412_vm1, %v380_v38  ;;  %487 = vst.msk [vmem:[#allocation2 + $0x30] sm:$0xff] %vm412_vm1, %v381_v39  ;;  %v395_v38 = vmax.f32 %v363_v23, 0.0  ;;  %v364_v39 = vadd.f32 %v4563_v8, %v325_v24  ;;  %v405_v23 = vmax.f32 %v373_v16, 0.0  ;;  %v375_v24 = vadd.f32 %v4563_v8, %v336_v17 }
  0x2c   : > { %488 = vst.msk [vmem:[#allocation2 + $0x48] sm:$0xff] %vm412_vm1, %v382_v40  ;;  %489 = vst.msk [vmem:[#allocation2 + $0x50] sm:$0xff] %vm412_vm1, %v383_v45  ;;  %v362_v21 = vadd.f32 %v4563_v8, %v323_v4  ;;  %v365_v40 = vadd.f32 %v4563_v8, %v326_v25  ;;  %v292_v45 = vld [vmem:[%s4558_s13 + $0xb0] sm:$0xff] }
  0x2d   : > { %490 = vst.msk [vmem:[#allocation2 + $0x68] sm:$0xff] %vm412_vm1, %v384_v46  ;;  %491 = vst.msk [vmem:[#allocation2 + $0x70] sm:$0xff] %vm412_vm1, %v385_v47  ;;  %v396_v46 = vmax.f32 %v364_v39, 0.0  ;;  %v331_v60 = vmul.f32 %v4551_v7, %v292_v45  ;;  %v407_v31 = vmax.f32 %v375_v24, 0.0 }
  0x2e   : > { %492 = vst.msk [vmem:[#allocation2 + $0x88] sm:$0xff] %vm412_vm1, %v386_v54  ;;  %493 = vst.msk [vmem:[#allocation2 + $0x90] sm:$0xff] %vm412_vm1, %v387_v59  ;;  %v394_v30 = vmax.f32 %v362_v21, 0.0  ;;  %v397_v47 = vmax.f32 %v365_v40, 0.0  ;;  %v369_v54 = vadd.f32 %v4563_v8, %v330_v33  ;;  %v400_v59 = vmax.f32 %v368_v49, 0.0  ;;  %v301_v33 = vld [vmem:[%s4558_s13 + $0xf8] sm:$0xff] }
  0x2f   : > { %494 = vst.msk [vmem:[#allocation2 + $0xa8] sm:$0xff] %vm412_vm1, %v388_v10  ;;  %495 = vst.msk [vmem:[#allocation2 + $0xb0] sm:$0xff] %vm412_vm1, %v389_v11  ;;  %v370_v4 = vadd.f32 %v4563_v8, %v331_v60  ;;  %v371_v10 = vadd.f32 %v4563_v8, %v332_v63  ;;  %v372_v11 = vadd.f32 %v4563_v8, %v333_v0 }
  0x30   : > { %496 = vst.msk [vmem:[#allocation2 + $0xc8] sm:$0xff] %vm412_vm1, %v390_v12  ;;  %497 = vst.msk [vmem:[#allocation2 + $0xd0] sm:$0xff] %vm412_vm1, %v391_v18  ;;  %v298_v12 = vld [vmem:[%s4558_s13 + $0xe0] sm:$0xff]  ;;  %v299_v18 = vld [vmem:[%s4558_s13 + $0xe8] sm:$0xff]  ;;  %v374_v21 = vadd.f32 %v4563_v8, %v335_v6  ;;  %v340_v43 = vmul.f32 %v4551_v7, %v301_v33 }
  0x31   : > { %498 = vst.msk [vmem:[#allocation2 + $0xe8] sm:$0xff] %vm412_vm1, %v392_v19  ;;  %499 = vst.msk [vmem:[#allocation2 + $0xf0] sm:$0xff] %vm412_vm1, %v393_v20  ;;  %v402_v15 = vmax.f32 %v370_v4, 0.0  ;;  %v403_v19 = vmax.f32 %v371_v10, 0.0  ;;  %v404_v20 = vmax.f32 %v372_v11, 0.0  ;;  %v337_v25 = vmul.f32 %v4551_v7, %v298_v12 }
  0x32   : > { %v569_v27 = vld [vmem:[#allocation2 + $0x28] sm:$0xff]  ;;  %v570_v28 = vld [vmem:[#allocation2 + $0x30] sm:$0xff]  ;;  %500 = vst.msk [vmem:[#allocation2 + $0x108] sm:$0xff] %vm412_vm1, %v394_v30  ;;  %501 = vst.msk [vmem:[#allocation2 + $0x110] sm:$0xff] %vm412_vm1, %v395_v38  ;;  %v406_v26 = vmax.f32 %v374_v21, 0.0 }
  0x33   : > { %v1632_v29 = vld [vmem:[#allocation2 + $0x48] sm:$0xff]  ;;  %v600_v34 = vpack.c.bf16 %v570_v28, %v569_v27  ;;  %v1633_v35 = vld [vmem:[#allocation2 + $0x50] sm:$0xff]  ;;  %502 = vst.msk [vmem:[#allocation2 + $0x128] sm:$0xff] %vm412_vm1, %v396_v46  ;;  %503 = vst.msk [vmem:[#allocation2 + $0x130] sm:$0xff] %vm412_vm1, %v397_v47  ;;  %v338_v27 = vmul.f32 %v4551_v7, %v299_v18  ;;  %v376_v32 = vadd.f32 %v4563_v8, %v337_v25 }
  0x34   : > { %v573_v36 = vld [vmem:[#allocation2 + $0x68] sm:$0xff]  ;;  %v574_v37 = vld [vmem:[#allocation2 + $0x70] sm:$0xff]  ;;  %v4648_v41 = vpack.c.bf16 %v1633_v35, %v1632_v29  ;;  %504 = vst.msk [vmem:[#allocation2 + $0x148] sm:$0xff] %vm412_vm1, %v398_v52  ;;  %505 = vst.msk [vmem:[#allocation2 + $0x150] sm:$0xff] %vm412_vm1, %v399_v53  ;;  %v379_v46 = vadd.f32 %v4563_v8, %v340_v43 }
  0x35   : > { %v4650_v42 = vpack.c.bf16 %v574_v37, %v573_v36  ;;  %3734 = vmatmul.mubr.msk.bf16.vlgmr.msra.gmra.mrb[0].mxu1 %vm412_vm1, %v600_v34  ;;  %3869 = vmatprep.mubr.msk.bf16.mxu0 %vm412_vm1, %v600_v34  ;;  %v1637_v58 = vld [vmem:[#allocation2 + $0x90] sm:$0xff]  ;;  %506 = vst.msk [vmem:[#allocation2 + $0x168] sm:$0xff] %vm412_vm1, %v400_v59  ;;  %508 = vst.msk [vmem:[#allocation2 + $0x188] sm:$0xff] %vm412_vm1, %v402_v15  ;;  %v377_v36 = vadd.f32 %v4563_v8, %v338_v27  ;;  %v408_v37 = vmax.f32 %v376_v32, 0.0  ;;  %v4779_v4 = vld [vmem:[%s5286_s3 + $0x1c] sm:$0xf] }
  0x36   : > { %3766 = vmatpush3.bf16.msra.mxu1 %v4571_v14  ;;  %3870 = vmatmul.mubr.msk.bf16.vlgmr.msra.gmra.mrb[0].mxu0 %vm412_vm1, %v4648_v41  ;;  %v1636_v14 = vld [vmem:[#allocation2 + $0x88] sm:$0xff]  ;;  %v578_v62 = vld [vmem:[#allocation2 + $0xb0] sm:$0xff]  ;;  %509 = vst.msk [vmem:[#allocation2 + $0x190] sm:$0xff] %vm412_vm1, %v403_v19  ;;  %510 = vst.msk [vmem:[#allocation2 + $0x1a8] sm:$0xff] %vm412_vm1, %v404_v20 }
  0x37   : > { %3902 = vmatpush3.bf16.msra.mxu0 %v4579_v22  ;;  %3737 = vmatprep.mubr.msk.bf16.mxu1 %vm412_vm1, %v4648_v41  ;;  %v577_v61 = vld [vmem:[#allocation2 + $0xa8] sm:$0xff]  ;;  %v401_v22 = vmax.f32 %v369_v54, 0.0  ;;  %v4699_v9 = vpack.c.bf16 %v1637_v58, %v1636_v14  ;;  %v300_v28 = vld [vmem:[%s4558_s13 + $0xf0] sm:$0xff]  ;;  %511 = vst.msk [vmem:[#allocation2 + $0x1b0] sm:$0xff] %vm412_vm1, %v405_v23  ;;  %512 = vst.msk [vmem:[#allocation2 + $0x1c8] sm:$0xff] %vm412_vm1, %v406_v26  ;;  %v409_v40 = vmax.f32 %v377_v36, 0.0 }
  0x38   : > { %3873 = vmatprep.mubr.msk.bf16.mxu0 %vm412_vm1, %v4650_v42  ;;  %4302 = vmatprep.subr.msk.bf16.mxu0 %vm665_vm0, %v4662_v48  ;;  %v4705_v13 = vpack.c.bf16 %v578_v62, %v577_v61  ;;  %v1640_v29 = vld [vmem:[#allocation2 + $0xc8] sm:$0xff]  ;;  %v1641_v30 = vld [vmem:[#allocation2 + $0xd0] sm:$0xff]  ;;  %513 = vst.msk [vmem:[#allocation2 + $0x1d0] sm:$0xff] %vm412_vm1, %v407_v31  ;;  %v339_v38 = vmul.f32 %v4551_v7, %v300_v28  ;;  %514 = vst.msk [vmem:[#allocation2 + $0x1e8] sm:$0xff] %vm412_vm1, %v408_v37  ;;  %v411_v7 = vmax.f32 %v379_v46, 0.0 }
  0x39   : > { %4297 = vmatprep.subr.msk.bf16.mxu1 %vm665_vm0, %v4676_v57  ;;  %507 = vst.msk [vmem:[#allocation2 + $0x170] sm:$0xff] %vm412_vm1, %v401_v22  ;;  %v581_v34 = vld [vmem:[#allocation2 + $0xe8] sm:$0xff]  ;;  %v582_v35 = vld [vmem:[#allocation2 + $0xf0] sm:$0xff]  ;;  %v4733_v39 = vpack.c.bf16 %v1641_v30, %v1640_v29  ;;  %515 = vst.msk [vmem:[#allocation2 + $0x1f0] sm:$0xff] %vm412_vm1, %v409_v40 }
  0x3a   : > { %v4736_v44 = vpack.c.bf16 %v582_v35, %v581_v34  ;;  %v378_v45 = vadd.f32 %v4563_v8, %v339_v38  ;;  %v1644_v49 = vld [vmem:[#allocation2 + $0x108] sm:$0xff]  ;;  %v1645_v50 = vld [vmem:[#allocation2 + $0x110] sm:$0xff]  ;;  %517 = vst.msk [vmem:[#allocation2 + $0x210] sm:$0xff] %vm412_vm1, %v411_v7 }
  0x3b   : > { %v1924_v51 = vld [vmem:[#allocation2 + $0x29] sm:$0xff]  ;;  %v1925_v8 = vld [vmem:[#allocation2 + $0x31] sm:$0xff]  ;;  %v4752_v52 = vpack.c.bf16 %v1645_v50, %v1644_v49 }
  0x3c   : > { %v410_v47 = vmax.f32 %v378_v45, 0.0  ;;  %v4754_v53 = vpack.c.bf16 %v1925_v8, %v1924_v51  ;;  %v585_v54 = vld [vmem:[#allocation2 + $0x128] sm:$0xff]  ;;  %v586_v55 = vld [vmem:[#allocation2 + $0x130] sm:$0xff] }
  0x3d   : > { %3738 = vmatmul.mubr.msk.bf16.gmra.mrb[4].mxu1 %vm412_vm1, %v4650_v42  ;;  %v1926_v56 = vld [vmem:[#allocation2 + $0x49] sm:$0xff]  ;;  %v1927_v14 = vld [vmem:[#allocation2 + $0x51] sm:$0xff]  ;;  %v4764_v62 = vpack.c.bf16 %v586_v55, %v585_v54 }
  0x3e   : > { %3874 = vmatmul.mubr.msk.bf16.gmra.mrb[4].mxu0 %vm412_vm1, %v4699_v9  ;;  %3741 = vmatprep.mubr.msk.bf16.mxu1 %vm412_vm1, %v4699_v9  ;;  %516 = vst.msk [vmem:[#allocation2 + $0x208] sm:$0xff] %vm412_vm1, %v410_v47  ;;  %v587_v58 = vld [vmem:[#allocation2 + $0x148] sm:$0xff]  ;;  %v588_v59 = vld [vmem:[#allocation2 + $0x150] sm:$0xff]  ;;  %v4766_v22 = vpack.c.bf16 %v1927_v14, %v1926_v56 }
  0x3f   : > { %3877 = vmatprep.mubr.msk.bf16.mxu0 %vm412_vm1, %v4705_v13  ;;  %v1928_v60 = vld [vmem:[#allocation2 + $0x69] sm:$0xff]  ;;  %v1929_v61 = vld [vmem:[#allocation2 + $0x71] sm:$0xff]  ;;  %v4768_v63 = vpack.c.bf16 %v588_v59, %v587_v58 }
  0x40   : > { %v4770_v0 = vpack.c.bf16 %v1929_v61, %v1928_v60  ;;  %v589_v5 = vld [vmem:[#allocation2 + $0x168] sm:$0xff]  ;;  %v590_v6 = vld [vmem:[#allocation2 + $0x170] sm:$0xff]  ;;  %v1141_v61 = vsel %vm665_vm0, %v4676_v57, 0 }
  0x41   : > { %v1930_v10 = vld [vmem:[#allocation2 + $0x89] sm:$0xff]  ;;  %v1931_v48 = vld [vmem:[#allocation2 + $0x91] sm:$0xff]  ;;  %v4789_v17 = vpack.c.bf16 %v590_v6, %v589_v5 }
  0x42   : > { %v591_v11 = vld [vmem:[#allocation2 + $0x188] sm:$0xff]  ;;  %v592_v12 = vld [vmem:[#allocation2 + $0x190] sm:$0xff]  ;;  %v4791_v18 = vpack.c.bf16 %v1931_v48, %v1930_v10 }
  0x43   : > { %v1932_v15 = vld [vmem:[#allocation2 + $0xa9] sm:$0xff]  ;;  %v1933_v16 = vld [vmem:[#allocation2 + $0xb1] sm:$0xff]  ;;  %v4793_v19 = vpack.c.bf16 %v592_v12, %v591_v11 }
  0x44   : > { %v4795_v20 = vpack.c.bf16 %v1933_v16, %v1932_v15  ;;  %v593_v21 = vld [vmem:[#allocation2 + $0x1a8] sm:$0xff]  ;;  %v594_v23 = vld [vmem:[#allocation2 + $0x1b0] sm:$0xff] }
  0x45   : > { %3742 = vmatmul.mubr.msk.bf16.gmra.mrb[8].mxu1 %vm412_vm1, %v4705_v13  ;;  %v1934_v24 = vld [vmem:[#allocation2 + $0xc9] sm:$0xff]  ;;  %v1935_v25 = vld [vmem:[#allocation2 + $0xd1] sm:$0xff]  ;;  %v4805_v30 = vpack.c.bf16 %v594_v23, %v593_v21 }
  0x46   : > { %3878 = vmatmul.mubr.msk.bf16.gmra.mrb[8].mxu0 %vm412_vm1, %v4733_v39  ;;  %3745 = vmatprep.mubr.msk.bf16.mxu1 %vm412_vm1, %v4733_v39  ;;  %v595_v26 = vld [vmem:[#allocation2 + $0x1c8] sm:$0xff]  ;;  %v596_v27 = vld [vmem:[#allocation2 + $0x1d0] sm:$0xff]  ;;  %v4807_v31 = vpack.c.bf16 %v1935_v25, %v1934_v24 }
  0x47   : > { %3881 = vmatprep.mubr.msk.bf16.mxu0 %vm412_vm1, %v4736_v44  ;;  %v1936_v28 = vld [vmem:[#allocation2 + $0xe9] sm:$0xff]  ;;  %v1937_v29 = vld [vmem:[#allocation2 + $0xf1] sm:$0xff]  ;;  %v4809_v32 = vpack.c.bf16 %v596_v27, %v595_v26 }
  0x48   : > { %v4811_v33 = vpack.c.bf16 %v1937_v29, %v1936_v28  ;;  %v597_v34 = vld [vmem:[#allocation2 + $0x1e8] sm:$0xff]  ;;  %v598_v35 = vld [vmem:[#allocation2 + $0x1f0] sm:$0xff] }
  0x49   : > { %v518_v36 = vld [vmem:[#allocation2 + $0x7] sm:$0xff]  ;;  %v1939_v38 = vld [vmem:[#allocation2 + $0x111] sm:$0xff]  ;;  %v4821_v46 = vpack.c.bf16 %v598_v35, %v597_v34 }
  0x4a   : > { %v1938_v37 = vld [vmem:[#allocation2 + $0x109] sm:$0xff]  ;;  %v1941_v45 = vld [vmem:[#allocation2 + $0x131] sm:$0xff] }
  0x4b   : > { %v519_v40 = vld [vmem:[#allocation2 + $0xf] sm:$0xff]  ;;  %v4823_v47 = vpack.c.bf16 %v1939_v38, %v1938_v37  ;;  %v520_v50 = vld [vmem:[#allocation2 + $0x27] sm:$0xff] }
  0x4c   : > { %v1940_v43 = vld [vmem:[#allocation2 + $0x129] sm:$0xff]  ;;  %v550_v7 = vpack.c.bf16 %v519_v40, %v518_v36  ;;  %v1943_v54 = vld [vmem:[#allocation2 + $0x151] sm:$0xff] }
  0x4d   : > { %3746 = vmatmul.mubr.msk.bf16.gmra.mrb[12].mxu1 %vm412_vm1, %v4736_v44  ;;  %v4825_v49 = vpack.c.bf16 %v1941_v45, %v1940_v43  ;;  %v521_v51 = vld [vmem:[#allocation2 + $0x2f] sm:$0xff]  ;;  %v522_v55 = vld [vmem:[#allocation2 + $0x47] sm:$0xff] }
  0x4e   : > { %3882 = vmatmul.mubr.msk.bf16.gmra.mrb[12].mxu0 %vm412_vm1, %v4752_v52  ;;  %3749 = vmatprep.mubr.msk.bf16.mxu1 %vm412_vm1, %v4752_v52  ;;  %v1942_v8 = vld [vmem:[#allocation2 + $0x149] sm:$0xff]  ;;  %v1945_v58 = vld [vmem:[#allocation2 + $0x171] sm:$0xff]  ;;  %v4834_v59 = vpack.c.bf16 %v521_v51, %v520_v50 }
  0x4f   : > { %3903 = vmatprep.mubr.msk.bf16.mxu0 %vm412_vm1, %v4754_v53  ;;  %v523_v56 = vld [vmem:[#allocation2 + $0x4f] sm:$0xff]  ;;  %v4836_v60 = vpack.c.bf16 %v1943_v54, %v1942_v8  ;;  %v524_v10 = vld [vmem:[#allocation2 + $0x67] sm:$0xff] }
  0x50   : > { %v1944_v14 = vld [vmem:[#allocation2 + $0x169] sm:$0xff]  ;;  %v1947_v12 = vld [vmem:[#allocation2 + $0x191] sm:$0xff] }
  0x51   : > { %v4842_v5 = vpack.c.bf16 %v1945_v58, %v1944_v14  ;;  %v4849_v6 = vld [vmem:[%s5286_s3 + $0xc] sm:$0xf]  ;;  %v1949_v21 = vld [vmem:[#allocation2 + $0x1b1] sm:$0xff] }
  0x52   : > { %v525_v48 = vld [vmem:[#allocation2 + $0x6f] sm:$0xff]  ;;  %v526_v11 = vld [vmem:[#allocation2 + $0x87] sm:$0xff] }
  0x53   : > { %v1946_v57 = vld [vmem:[#allocation2 + $0x189] sm:$0xff]  ;;  %v4859_v23 = vpack.c.bf16 %v525_v48, %v524_v10  ;;  %v1951_v35 = vld [vmem:[#allocation2 + $0x1d1] sm:$0xff] }
  0x54   : > { %v527_v15 = vld [vmem:[#allocation2 + $0x8f] sm:$0xff]  ;;  %v4861_v24 = vpack.c.bf16 %v1947_v12, %v1946_v57  ;;  %v528_v27 = vld [vmem:[#allocation2 + $0xa7] sm:$0xff] }
  0x55   : > { %3750 = vmatmul.mubr.msk.bf16.gmra.mrb[16].mxu1 %vm412_vm1, %v4764_v62  ;;  %v1948_v16 = vld [vmem:[#allocation2 + $0x1a9] sm:$0xff]  ;;  %v4863_v25 = vpack.c.bf16 %v527_v15, %v526_v11  ;;  %v1953_v38 = vld [vmem:[#allocation2 + $0x1f1] sm:$0xff] }
  0x56   : > { %3904 = vmatmul.mubr.msk.bf16.vlgmr.msra.gmra.mrb[0].mxu0 %vm412_vm1, %v4766_v22  ;;  %3753 = vmatprep.mubr.msk.bf16.mxu1 %vm412_vm1, %v4768_v63  ;;  %v4865_v26 = vpack.c.bf16 %v1949_v21, %v1948_v16  ;;  %v529_v28 = vld [vmem:[#allocation2 + $0xaf] sm:$0xff]  ;;  %v530_v29 = vld [vmem:[#allocation2 + $0xc7] sm:$0xff]  ;;  %v2612_v16 = vsel %vm665_vm0, %v4779_v4, 0  ;;  %v3557_v21 = vld [vmem:[%s5286_s3 + $0x20] sm:$0xf] }
  0x57   : > { %3936 = vmatpush3.bf16.msra.mxu0 %v2318_v2  ;;  %3907 = vmatprep.mubr.msk.bf16.mxu0 %vm412_vm1, %v4770_v0  ;;  %v4840_v2 = vpack.c.bf16 %v523_v56, %v522_v55  ;;  %v1950_v34 = vld [vmem:[#allocation2 + $0x1c9] sm:$0xff]  ;;  %v4875_v40 = vpack.c.bf16 %v529_v28, %v528_v27  ;;  %v1955_v55 = vld [vmem:[#allocation2 + $0x211] sm:$0xff] }
  0x58   : > { %4303 = vmatprep.subr.msk.bf16.mxu0 %vm665_vm0, %v4779_v4  ;;  %v531_v36 = vld [vmem:[#allocation2 + $0xcf] sm:$0xff]  ;;  %v4877_v43 = vpack.c.bf16 %v1951_v35, %v1950_v34  ;;  %v532_v50 = vld [vmem:[#allocation2 + $0xe7] sm:$0xff] }
  0x59   : > { %v1952_v37 = vld [vmem:[#allocation2 + $0x1e9] sm:$0xff]  ;;  %v4879_v45 = vpack.c.bf16 %v531_v36, %v530_v29 }
  0x5a   : > { %v533_v51 = vld [vmem:[#allocation2 + $0xef] sm:$0xff]  ;;  %v534_v8 = vld [vmem:[#allocation2 + $0x107] sm:$0xff] }
  0x5b   : > { %v1954_v54 = vld [vmem:[#allocation2 + $0x209] sm:$0xff]  ;;  %v4891_v14 = vpack.c.bf16 %v533_v51, %v532_v50 }
  0x5c   : > { %v535_v56 = vld [vmem:[#allocation2 + $0x10f] sm:$0xff]  ;;  %v4893_v58 = vpack.c.bf16 %v1955_v55, %v1954_v54  ;;  %v536_v10 = vld [vmem:[#allocation2 + $0x127] sm:$0xff] }
  0x5d   : > { %3754 = vmatmul.mubr.msk.bf16.gmra.mrb[20].mxu1 %vm412_vm1, %v4789_v17  ;;  %v537_v48 = vld [vmem:[#allocation2 + $0x12f] sm:$0xff]  ;;  %v538_v11 = vld [vmem:[#allocation2 + $0x147] sm:$0xff] }
  0x5e   : > { %3908 = vmatmul.mubr.msk.bf16.gmra.mrb[4].mxu0 %vm412_vm1, %v4791_v18  ;;  %3757 = vmatprep.mubr.msk.bf16.mxu1 %vm412_vm1, %v4793_v19  ;;  %v539_v57 = vld [vmem:[#allocation2 + $0x14f] sm:$0xff]  ;;  %v4905_v12 = vpack.c.bf16 %v537_v48, %v536_v10  ;;  %v540_v27 = vld [vmem:[#allocation2 + $0x167] sm:$0xff] }
  0x5f   : > { %3911 = vmatprep.mubr.msk.bf16.mxu0 %vm412_vm1, %v4795_v20  ;;  %v4907_v15 = vpack.c.bf16 %v539_v57, %v538_v11  ;;  %v541_v28 = vld [vmem:[#allocation2 + $0x16f] sm:$0xff]  ;;  %v542_v4 = vld [vmem:[#allocation2 + $0x187] sm:$0xff]  ;;  %v1435_v57 = vsel %vm665_vm0, %v4849_v6, 0 }
  0x60   : > { %v543_v29 = vld [vmem:[#allocation2 + $0x18f] sm:$0xff]  ;;  %v4923_v34 = vpack.c.bf16 %v541_v28, %v540_v27  ;;  %v544_v36 = vld [vmem:[#allocation2 + $0x1a7] sm:$0xff] }
  0x61   : > { %v4925_v35 = vpack.c.bf16 %v543_v29, %v542_v4  ;;  %v547_v50 = vld [vmem:[#allocation2 + $0x1cf] sm:$0xff]  ;;  %v548_v54 = vld [vmem:[#allocation2 + $0x1e7] sm:$0xff]  ;;  %v2906_v4 = vsel %vm665_vm0, %v3557_v21, 0 }
  0x62   : > { %v549_v55 = vld [vmem:[#allocation2 + $0x1ef] sm:$0xff] }
  0x63   : > { %v1043_v10 = vld [vmem:[#allocation2 + $0x11] sm:$0xff]  ;;  %v4947_v48 = vpack.c.bf16 %v549_v55, %v548_v54 }
  0x64   : > { %v2250_v27 = vld [vmem:[#allocation2 + $0x22f] sm:$0xff] }
  0x65   : > { %3758 = vmatmul.mubr.msk.bf16.gmra.mrb[24].mxu1 %vm412_vm1, %v4805_v30 }
  0x66   : > { %3912 = vmatmul.mubr.msk.bf16.gmra.mrb[8].mxu0 %vm412_vm1, %v4807_v31  ;;  %3761 = vmatprep.mubr.msk.bf16.mxu1 %vm412_vm1, %v4809_v32 }
  0x67   : > { %3915 = vmatprep.mubr.msk.bf16.mxu0 %vm412_vm1, %v4811_v33 }
  0x6d   : > { %3762 = vmatmul.mubr.msk.bf16.gmra.mrb[28].mxu1 %vm412_vm1, %v4821_v46 }
  0x6e   : > { %3916 = vmatmul.mubr.msk.bf16.gmra.mrb[12].mxu0 %vm412_vm1, %v4823_v47  ;;  %3767 = vmatprep.mubr.msk.bf16.mxu1 %vm412_vm1, %v550_v7  ;;  %v4881_v7 = vpack.c.bf16 %v1953_v38, %v1952_v37  ;;  %v545_v37 = vld [vmem:[#allocation2 + $0x1af] sm:$0xff]  ;;  %v546_v38 = vld [vmem:[#allocation2 + $0x1c7] sm:$0xff] }
  0x6f   : > { %3919 = vmatprep.mubr.msk.bf16.mxu0 %vm412_vm1, %v4825_v49  ;;  %v4935_v51 = vpack.c.bf16 %v545_v37, %v544_v36 }
  0x75   : > { %3768 = vmatmul.mubr.msk.bf16.vlgmr.msra.gmra.mrb[0].mxu1 %vm412_vm1, %v4834_v59 }
  0x76   : > { %3800 = vmatpush3.bf16.msra.mxu1 %v1141_v61  ;;  %3920 = vmatmul.mubr.msk.bf16.gmra.mrb[16].mxu0 %vm412_vm1, %v4836_v60  ;;  %v4895_v61 = vpack.c.bf16 %v535_v56, %v534_v8  ;;  %v4937_v8 = vpack.c.bf16 %v547_v50, %v546_v38  ;;  %v1042_v56 = vld [vmem:[#allocation2 + $0x9] sm:$0xff] }
  0x77   : > { %3771 = vmatprep.mubr.msk.bf16.mxu1 %vm412_vm1, %v4840_v2  ;;  %3923 = vmatprep.mubr.msk.bf16.mxu0 %vm412_vm1, %v4842_v5  ;;  %v1074_v11 = vpack.c.bf16 %v1043_v10, %v1042_v56 }
  0x78   : > { %4298 = vmatprep.subr.msk.bf16.mxu1 %vm665_vm0, %v4849_v6  ;;  %v2248_v6 = vld [vmem:[#allocation2 + $0x20f] sm:$0xff] }
  0x7d   : > { %3772 = vmatmul.mubr.msk.bf16.gmra.mrb[4].mxu1 %vm412_vm1, %v4859_v23 }
  0x7e   : > { %3924 = vmatmul.mubr.msk.bf16.gmra.mrb[20].mxu0 %vm412_vm1, %v4861_v24  ;;  %3775 = vmatprep.mubr.msk.bf16.mxu1 %vm412_vm1, %v4863_v25 }
  0x7f   : > { %3927 = vmatprep.mubr.msk.bf16.mxu0 %vm412_vm1, %v4865_v26 }
  0x85   : > { %3776 = vmatmul.mubr.msk.bf16.gmra.mrb[8].mxu1 %vm412_vm1, %v4875_v40 }
  0x86   : > { %3928 = vmatmul.mubr.msk.bf16.gmra.mrb[24].mxu0 %vm412_vm1, %v4877_v43  ;;  %3779 = vmatprep.mubr.msk.bf16.mxu1 %vm412_vm1, %v4879_v45 }
  0x87   : > { %3931 = vmatprep.mubr.msk.bf16.mxu0 %vm412_vm1, %v4881_v7 }
  0x8d   : > { %3780 = vmatmul.mubr.msk.bf16.gmra.mrb[12].mxu1 %vm412_vm1, %v4891_v14 }
  0x8e   : > { %3932 = vmatmul.mubr.msk.bf16.gmra.mrb[28].mxu0 %vm412_vm1, %v4893_v58  ;;  %3783 = vmatprep.mubr.msk.bf16.mxu1 %vm412_vm1, %v4895_v61 }
  0x8f   : > { %3937 = vmatprep.mubr.msk.bf16.mxu0 %vm412_vm1, %v4840_v2 }
  0x95   : > { %3784 = vmatmul.mubr.msk.bf16.gmra.mrb[16].mxu1 %vm412_vm1, %v4905_v12 }
  0x96   : > { %3938 = vmatmul.mubr.msk.bf16.vlgmr.msra.gmra.mrb[0].mxu0 %vm412_vm1, %v4859_v23  ;;  %3787 = vmatprep.mubr.msk.bf16.mxu1 %vm412_vm1, %v4907_v15 }
  0x97   : > { %3970 = vmatpush3.bf16.msra.mxu0 %v2612_v16  ;;  %3941 = vmatprep.mubr.msk.bf16.mxu0 %vm412_vm1, %v4863_v25 }
  0x98   : > { %4304 = vmatprep.subr.msk.bf16.mxu0 %vm665_vm0, %v3557_v21 }
  0x9d   : > { %3788 = vmatmul.mubr.msk.bf16.gmra.mrb[20].mxu1 %vm412_vm1, %v4923_v34 }
  0x9e   : > { %3942 = vmatmul.mubr.msk.bf16.gmra.mrb[4].mxu0 %vm412_vm1, %v4875_v40  ;;  %3791 = vmatprep.mubr.msk.bf16.mxu1 %vm412_vm1, %v4925_v35 }
  0x9f   : > { %3945 = vmatprep.mubr.msk.bf16.mxu0 %vm412_vm1, %v4879_v45 }
  0xa5   : > { %3792 = vmatmul.mubr.msk.bf16.gmra.mrb[24].mxu1 %vm412_vm1, %v4935_v51 }
  0xa6   : > { %3946 = vmatmul.mubr.msk.bf16.gmra.mrb[8].mxu0 %vm412_vm1, %v4891_v14  ;;  %3795 = vmatprep.mubr.msk.bf16.mxu1 %vm412_vm1, %v4937_v8 }
  0xa7   : > { %3949 = vmatprep.mubr.msk.bf16.mxu0 %vm412_vm1, %v4895_v61 }
  0xad   : > { %3796 = vmatmul.mubr.msk.bf16.gmra.mrb[28].mxu1 %vm412_vm1, %v4947_v48 }
  0xae   : > { %3950 = vmatmul.mubr.msk.bf16.gmra.mrb[12].mxu0 %vm412_vm1, %v4905_v12  ;;  %3801 = vmatprep.mubr.msk.bf16.mxu1 %vm412_vm1, %v1074_v11 }
  0xaf   : > { %3953 = vmatprep.mubr.msk.bf16.mxu0 %vm412_vm1, %v4907_v15 }
  0xb5   : > { %3802 = vmatmul.mubr.msk.bf16.vlgmr.msra.gmra.mrb[0].mxu1 %vm412_vm1, %v4754_v53  ;;  %v2247_v53 = vld [vmem:[#allocation2 + $0x207] sm:$0xff] }
  0xb6   : > { %3834 = vmatpush3.bf16.msra.mxu1 %v1435_v57  ;;  %3954 = vmatmul.mubr.msk.bf16.gmra.mrb[16].mxu0 %vm412_vm1, %v4923_v34  ;;  %v4976_v16 = vpack.c.bf16 %v2248_v6, %v2247_v53 }
  0xb7   : > { %3805 = vmatprep.mubr.msk.bf16.mxu1 %vm412_vm1, %v4766_v22  ;;  %3957 = vmatprep.mubr.msk.bf16.mxu0 %vm412_vm1, %v4925_v35 }
  0xb8   : > { %4300 = vmatprep.subr.msk.bf16.mxu1 %vm665_vm0, %v4372_v1  ;;  %v2249_v1 = vld [vmem:[#allocation2 + $0x227] sm:$0xff] }
  0xb9   : > { %v2266_v28 = vpack.c.bf16 %v2250_v27, %v2249_v1 }
  0xbd   : > { %3806 = vmatmul.mubr.msk.bf16.gmra.mrb[4].mxu1 %vm412_vm1, %v4770_v0 }
  0xbe   : > { %3958 = vmatmul.mubr.msk.bf16.gmra.mrb[20].mxu0 %vm412_vm1, %v4935_v51  ;;  %3809 = vmatprep.mubr.msk.bf16.mxu1 %vm412_vm1, %v4791_v18 }
  0xbf   : > { %3961 = vmatprep.mubr.msk.bf16.mxu0 %vm412_vm1, %v4937_v8 }
  0xc5   : > { %3810 = vmatmul.mubr.msk.bf16.gmra.mrb[8].mxu1 %vm412_vm1, %v4795_v20 }
  0xc6   : > { %3962 = vmatmul.mubr.msk.bf16.gmra.mrb[24].mxu0 %vm412_vm1, %v4947_v48  ;;  %3813 = vmatprep.mubr.msk.bf16.mxu1 %vm412_vm1, %v4807_v31 }
  0xc7   : > { %3965 = vmatprep.mubr.msk.bf16.mxu0 %vm412_vm1, %v4976_v16 }
  0xcd   : > { %3814 = vmatmul.mubr.msk.bf16.gmra.mrb[12].mxu1 %vm412_vm1, %v4811_v33 }
  0xce   : > { %3966 = vmatmul.mubr.msk.bf16.gmra.mrb[28].mxu0 %vm412_vm1, %v2266_v28  ;;  %3817 = vmatprep.mubr.msk.bf16.mxu1 %vm412_vm1, %v4823_v47 }
  0xcf   : > { %3971 = vmatprep.mubr.msk.bf16.mxu0 %vm412_vm1, %v4648_v41  ;;  %v2542_v41 = vld [vmem:[#allocation2 + $0x210] sm:$0xff] }
  0xd5   : > { %3818 = vmatmul.mubr.msk.bf16.gmra.mrb[16].mxu1 %vm412_vm1, %v4825_v49 }
  0xd6   : > { %3972 = vmatmul.mubr.msk.bf16.vlgmr.msra.gmra.mrb[0].mxu0 %vm412_vm1, %v4650_v42  ;;  %3821 = vmatprep.mubr.msk.bf16.mxu1 %vm412_vm1, %v4836_v60 }
  0xd7   : > { %4004 = vmatpush3.bf16.msra.mxu0 %v2906_v4  ;;  %3975 = vmatprep.mubr.msk.bf16.mxu0 %vm412_vm1, %v4699_v9  ;;  %v2543_v9 = vld [vmem:[#allocation2 + $0x228] sm:$0xff] }
  0xdd   : > { %3822 = vmatmul.mubr.msk.bf16.gmra.mrb[20].mxu1 %vm412_vm1, %v4842_v5 }
  0xde   : > { %3976 = vmatmul.mubr.msk.bf16.gmra.mrb[4].mxu0 %vm412_vm1, %v4705_v13  ;;  %3825 = vmatprep.mubr.msk.bf16.mxu1 %vm412_vm1, %v4861_v24  ;;  %v2544_v13 = vld [vmem:[#allocation2 + $0x230] sm:$0xff] }
  0xdf   : > { %3979 = vmatprep.mubr.msk.bf16.mxu0 %vm412_vm1, %v4733_v39  ;;  %v2560_v39 = vpack.c.bf16 %v2544_v13, %v2543_v9 }
  0xe5   : > { %3826 = vmatmul.mubr.msk.bf16.gmra.mrb[24].mxu1 %vm412_vm1, %v4865_v26 }
  0xe6   : > { %3980 = vmatmul.mubr.msk.bf16.gmra.mrb[8].mxu0 %vm412_vm1, %v4736_v44  ;;  %3829 = vmatprep.mubr.msk.bf16.mxu1 %vm412_vm1, %v4877_v43  ;;  %v1646_v44 = vld [vmem:[#allocation2 + $0x128] sm:$0xff] }
  0xe7   : > { %3983 = vmatprep.mubr.msk.bf16.mxu0 %vm412_vm1, %v4752_v52  ;;  %v1647_v52 = vld [vmem:[#allocation2 + $0x130] sm:$0xff] }
  0xed   : > { %3830 = vmatmul.mubr.msk.bf16.gmra.mrb[28].mxu1 %vm412_vm1, %v4881_v7 }
  0xee   : > { %3984 = vmatmul.mubr.msk.bf16.gmra.mrb[12].mxu0 %vm412_vm1, %v4764_v62  ;;  %3835 = vmatprep.mubr.msk.bf16.mxu1 %vm412_vm1, %v4834_v59  ;;  %v1670_v62 = vpack.c.bf16 %v1647_v52, %v1646_v44 }
  0xef   : > { %3987 = vmatprep.mubr.msk.bf16.mxu0 %vm412_vm1, %v4768_v63  ;;  %v1649_v63 = vld [vmem:[#allocation2 + $0x150] sm:$0xff] }
  0xf5   : > { %3836 = vmatmul.mubr.msk.bf16.vlgmr.msra.gmra.mrb[0].mxu1 %vm412_vm1, %v4840_v2 }
  0xf6   : > { %4038 = vmatpush3.bf16.msra.mxu1 %v4380_v3  ;;  %3988 = vmatmul.mubr.msk.bf16.gmra.mrb[16].mxu0 %vm412_vm1, %v4789_v17  ;;  %v2541_v3 = vld [vmem:[#allocation2 + $0x208] sm:$0xff] }
  0xf7   : > { %3839 = vmatprep.mubr.msk.bf16.mxu1 %vm412_vm1, %v4859_v23  ;;  %3991 = vmatprep.mubr.msk.bf16.mxu0 %vm412_vm1, %v4793_v19  ;;  %v2559_v42 = vpack.c.bf16 %v2542_v41, %v2541_v3 }
  0xfd   : > { %3840 = vmatmul.mubr.msk.bf16.gmra.mrb[4].mxu1 %vm412_vm1, %v4863_v25 }
  0xfe   : > { %3992 = vmatmul.mubr.msk.bf16.gmra.mrb[20].mxu0 %vm412_vm1, %v4805_v30  ;;  %3843 = vmatprep.mubr.msk.bf16.mxu1 %vm412_vm1, %v4875_v40 }
  0xff   : > { %3995 = vmatprep.mubr.msk.bf16.mxu0 %vm412_vm1, %v4809_v32 }
 0x105   : > { %3844 = vmatmul.mubr.msk.bf16.gmra.mrb[8].mxu1 %vm412_vm1, %v4879_v45 }
 0x106   : > { %3996 = vmatmul.mubr.msk.bf16.gmra.mrb[24].mxu0 %vm412_vm1, %v4821_v46  ;;  %3847 = vmatprep.mubr.msk.bf16.mxu1 %vm412_vm1, %v4891_v14 }
 0x107   : > { %3999 = vmatprep.mubr.msk.bf16.mxu0 %vm412_vm1, %v2559_v42 }
 0x10d   : > { %3848 = vmatmul.mubr.msk.bf16.gmra.mrb[12].mxu1 %vm412_vm1, %v4895_v61 }
 0x10e   : > { %4000 = vmatmul.mubr.msk.bf16.gmra.mrb[28].mxu0 %vm412_vm1, %v2560_v39  ;;  %3851 = vmatprep.mubr.msk.bf16.mxu1 %vm412_vm1, %v4905_v12 }
 0x10f   : > { %4005 = vmatprep.mubr.msk.bf16.mxu0 %vm412_vm1, %v4766_v22  ;;  %v1648_v22 = vld [vmem:[#allocation2 + $0x148] sm:$0xff] }
 0x115   : > { %3852 = vmatmul.mubr.msk.bf16.gmra.mrb[16].mxu1 %vm412_vm1, %v4907_v15 }
 0x116   : > { %4006 = vmatmul.mubr.msk.bf16.vlgmr.msra.gmra.mrb[0].mxu0 %vm412_vm1, %v4770_v0  ;;  %3855 = vmatprep.mubr.msk.bf16.mxu1 %vm412_vm1, %v4923_v34  ;;  %v1671_v0 = vpack.c.bf16 %v1649_v63, %v1648_v22 }
 0x117   : > { %4009 = vmatprep.mubr.msk.bf16.mxu0 %vm412_vm1, %v4791_v18  ;;  %v2838_v18 = vld [vmem:[#allocation2 + $0x231] sm:$0xff] }
 0x11d   : > { %3856 = vmatmul.mubr.msk.bf16.gmra.mrb[20].mxu1 %vm412_vm1, %v4925_v35 }
 0x11e   : > { %4010 = vmatmul.mubr.msk.bf16.gmra.mrb[4].mxu0 %vm412_vm1, %v4795_v20  ;;  %3859 = vmatprep.mubr.msk.bf16.mxu1 %vm412_vm1, %v4935_v51 }
 0x11f   : > { %4013 = vmatprep.mubr.msk.bf16.mxu0 %vm412_vm1, %v4807_v31 }
 0x125   : > { %3860 = vmatmul.mubr.msk.bf16.gmra.mrb[24].mxu1 %vm412_vm1, %v4937_v8 }
 0x126   : > { %4014 = vmatmul.mubr.msk.bf16.gmra.mrb[8].mxu0 %vm412_vm1, %v4811_v33  ;;  %3863 = vmatprep.mubr.msk.bf16.mxu1 %vm412_vm1, %v4947_v48 }
 0x127   : > { %4017 = vmatprep.mubr.msk.bf16.mxu0 %vm412_vm1, %v4823_v47 }
 0x12d   : > { %3864 = vmatmul.mubr.msk.bf16.gmra.mrb[28].mxu1 %vm412_vm1, %v4976_v16 }
 0x12e   : > { %4018 = vmatmul.mubr.msk.bf16.gmra.mrb[12].mxu0 %vm412_vm1, %v4825_v49  ;;  %3885 = vmatprep.mubr.msk.bf16.mxu1 %vm412_vm1, %v1670_v62 }
 0x12f   : > { %4021 = vmatprep.mubr.msk.bf16.mxu0 %vm412_vm1, %v4836_v60 }
 0x135   : > { %3886 = vmatmul.mubr.msk.bf16.vlgmr.msra.gmra.mrb[16].mxu1 %vm412_vm1, %v1671_v0 }
 0x136   : > { %4022 = vmatmul.mubr.msk.bf16.gmra.mrb[16].mxu0 %vm412_vm1, %v4842_v5  ;;  %3889 = vmatprep.mubr.msk.bf16.mxu1 %vm412_vm1, %v4789_v17  ;;  %v2837_v17 = vld [vmem:[#allocation2 + $0x229] sm:$0xff] }
 0x137   : > { %4025 = vmatprep.mubr.msk.bf16.mxu0 %vm412_vm1, %v4861_v24 }
 0x13d   : > { %3890 = vmatmul.mubr.msk.bf16.gmra.mrb[20].mxu1 %vm412_vm1, %v4793_v19  ;;  %v2854_v19 = vpack.c.bf16 %v2838_v18, %v2837_v17 }
 0x13e   : > { %4026 = vmatmul.mubr.msk.bf16.gmra.mrb[20].mxu0 %vm412_vm1, %v4865_v26  ;;  %3893 = vmatprep.mubr.msk.bf16.mxu1 %vm412_vm1, %v4805_v30 }
 0x13f   : > { %4029 = vmatprep.mubr.msk.bf16.mxu0 %vm412_vm1, %v4877_v43 }
 0x145   : > { %3894 = vmatmul.mubr.msk.bf16.gmra.mrb[24].mxu1 %vm412_vm1, %v4809_v32 }
 0x146   : > { %4030 = vmatmul.mubr.msk.bf16.gmra.mrb[24].mxu0 %vm412_vm1, %v4881_v7  ;;  %3897 = vmatprep.mubr.msk.bf16.mxu1 %vm412_vm1, %v4821_v46 }
 0x147   : > { %4033 = vmatprep.mubr.msk.bf16.mxu0 %vm412_vm1, %v4893_v58 }
 0x14d   : > { %3898 = vmatmul.mubr.msk.bf16.gmra.mrb[28].mxu1 %vm412_vm1, %v2559_v42 }
 0x14e   : > { %4034 = vmatmul.mubr.msk.bf16.gmra.mrb[28].mxu0 %vm412_vm1, %v2854_v19 }
 0x1c8   : > { %v3837_v20 = vpop.f32.mrb[0].mxu1 }
 0x1c9   : > { %v1471_v30 = vpop.f32.mrb[1].mxu1 }
 0x1ca   : > { %v3838_v31 = vpop.f32.mrb[2].mxu1 }
 0x1cb   : > { %v1474_v32 = vpop.f32.mrb[3].mxu1 }
 0x1d0   : > { %v3841_v33 = vpop.f32.mrb[4].mxu1 }
 0x1d1   : > { %v1487_v47 = vpop.f32.mrb[5].mxu1 }
 0x1d2   : > { %v3842_v49 = vpop.f32.mrb[6].mxu1 }
 0x1d3   : > { %v1490_v59 = vpop.f32.mrb[7].mxu1 }
 0x1d8   : > { %v5113_v46 = vpop.f32.mrb[8].mxu1 }
 0x1d9   : > { %v5115_v60 = vpop.f32.mrb[9].mxu1 }
 0x1da   : > { %v5117_v2 = vpop.f32.mrb[10].mxu1 }
 0x1db   : > { %v5119_v5 = vpop.f32.mrb[11].mxu1 }
 0x1e0   : > { %v5121_v23 = vpop.f32.mrb[12].mxu1 }
 0x1e1   : > { %v5123_v24 = vpop.f32.mrb[13].mxu1 }
 0x1e2   : > { %v5125_v25 = vpop.f32.mrb[14].mxu1 }
 0x1e3   : > { %v5127_v26 = vpop.f32.mrb[15].mxu1 }
 0x1e9   : > { %v4007_v40 = vpop.f32.mrb[0].mxu0 }
 0x1ea   : > { %v4039_v43 = vadd.f32 %v4007_v40, %v3837_v20  ;;  %v2942_v45 = vpop.f32.mrb[1].mxu0 }
 0x1eb   : > { %v4040_v7 = vadd.f32 %v2942_v45, %v1471_v30  ;;  %v4008_v14 = vpop.f32.mrb[2].mxu0 }
 0x1ec   : > { %3103 = vst.msk [vmem:[%s5134_s30 + $0x10] sm:$0xff] %vm412_vm1, %v4039_v43  ;;  %v4041_v58 = vadd.f32 %v4008_v14, %v3838_v31  ;;  %v2945_v61 = vpop.f32.mrb[3].mxu0  ;;  %v3206_v21 = vmul.f32 %v4039_v43, %v4039_v43  ;;  %v3136_v38 = vsel %vm412_vm1, %v4039_v43, 0.0 }
 0x1ed   : > { %3101 = vst.msk [vmem:[%s5134_s30] sm:$0xff] %vm412_vm1, %v4040_v7  ;;  %v3204_v12 = vmul.f32 %v4040_v7, %v4040_v7  ;;  %v4042_v15 = vadd.f32 %v2945_v61, %v1474_v32  ;;  %v3133_v29 = vsel %vm412_vm1, %v4040_v7, 0.0 }
 0x1ee   : > { %3104 = vst.msk [vmem:[%s5134_s30 + $0x18] sm:$0xff] %vm412_vm1, %v4041_v58  ;;  %v3207_v36 = vmul.f32 %v4041_v58, %v4041_v58  ;;  %v3239_v48 = vsel %vm412_vm1, %v3206_v21, 0.0  ;;  %v3138_v11 = vsel %vm412_vm1, %v4041_v58, 0.0 }
 0x1ef   : > { %3102 = vst.msk [vmem:[%s5134_s30 + $0x8] sm:$0xff] %vm412_vm1, %v4042_v15  ;;  %v3134_v34 = vsel %vm412_vm1, %v4042_v15, 0.0  ;;  %v3205_v35 = vmul.f32 %v4042_v15, %v4042_v15  ;;  %v3236_v50 = vsel %vm412_vm1, %v3204_v12, 0.0 }
 0x1f0   : > { %v3135_v37 = vadd.f32 %v3134_v34, %v3133_v29  ;;  %v3241_v6 = vsel %vm412_vm1, %v3207_v36, 0.0 }
 0x1f1   : > { %v3237_v51 = vsel %vm412_vm1, %v3205_v35, 0.0  ;;  %v4011_v8 = vpop.f32.mrb[4].mxu0 }
 0x1f2   : > { %v3137_v54 = vadd.f32 %v3136_v38, %v3135_v37  ;;  %v3238_v55 = vadd.f32 %v3237_v51, %v3236_v50  ;;  %v4043_v56 = vadd.f32 %v4011_v8, %v3841_v33  ;;  %v2958_v10 = vpop.f32.mrb[5].mxu0 }
 0x1f3   : > { %v4044_v57 = vadd.f32 %v2958_v10, %v1487_v47  ;;  %v4012_v53 = vpop.f32.mrb[6].mxu0 }
 0x1f4   : > { %v3240_v16 = vadd.f32 %v3239_v48, %v3238_v55  ;;  %3107 = vst.msk [vmem:[%s5134_s30 + $0x30] sm:$0xff] %vm412_vm1, %v4043_v56  ;;  %v3139_v1 = vadd.f32 %v3138_v11, %v3137_v54  ;;  %v2961_v27 = vpop.f32.mrb[7].mxu0  ;;  %v4045_v3 = vadd.f32 %v4012_v53, %v3842_v49  ;;  %v3210_v44 = vmul.f32 %v4043_v56, %v4043_v56 }
 0x1f5   : > { %3105 = vst.msk [vmem:[%s5134_s30 + $0x20] sm:$0xff] %vm412_vm1, %v4044_v57  ;;  %v3140_v28 = vsel %vm412_vm1, %v4044_v57, 0.0  ;;  %v3208_v4 = vmul.f32 %v4044_v57, %v4044_v57  ;;  %v4046_v41 = vadd.f32 %v2961_v27, %v1490_v59  ;;  %v3144_v63 = vsel %vm412_vm1, %v4043_v56, 0.0 }
 0x1f6   : > { %v3141_v42 = vadd.f32 %v3140_v28, %v3139_v1  ;;  %v3242_v9 = vadd.f32 %v3241_v6, %v3240_v16  ;;  %3108 = vst.msk [vmem:[%s5134_s30 + $0x38] sm:$0xff] %vm412_vm1, %v4045_v3  ;;  %v3211_v17 = vmul.f32 %v4045_v3, %v4045_v3  ;;  %v3146_v31 = vsel %vm412_vm1, %v4045_v3, 0.0 }
 0x1f7   : > { %v3243_v13 = vsel %vm412_vm1, %v3208_v4, 0.0  ;;  %3106 = vst.msk [vmem:[%s5134_s30 + $0x28] sm:$0xff] %vm412_vm1, %v4046_v41  ;;  %v3142_v39 = vsel %vm412_vm1, %v4046_v41, 0.0  ;;  %v3209_v22 = vmul.f32 %v4046_v41, %v4046_v41  ;;  %v3247_v49 = vsel %vm412_vm1, %v3210_v44, 0.0 }
 0x1f8   : > { %v3244_v52 = vadd.f32 %v3243_v13, %v3242_v9  ;;  %v3143_v62 = vadd.f32 %v3142_v39, %v3141_v42 }
 0x1f9   : > { %v4015_v0 = vpop.f32.mrb[8].mxu0  ;;  %v3245_v19 = vsel %vm412_vm1, %v3209_v22, 0.0 }
 0x1fa   : > { %v3145_v18 = vadd.f32 %v3144_v63, %v3143_v62  ;;  %v4047_v20 = vadd.f32 %v4015_v0, %v5113_v46  ;;  %v2974_v30 = vpop.f32.mrb[9].mxu0  ;;  %v3246_v32 = vadd.f32 %v3245_v19, %v3244_v52 }
 0x1fb   : > { %v4048_v33 = vadd.f32 %v2974_v30, %v5115_v60  ;;  %v4016_v47 = vpop.f32.mrb[10].mxu0  ;;  %v3249_v60 = vsel %vm412_vm1, %v3211_v17, 0.0 }
 0x1fc   : > { %3111 = vst.msk [vmem:[%s5134_s30 + $0x50] sm:$0xff] %vm412_vm1, %v4047_v20  ;;  %v3147_v59 = vadd.f32 %v3146_v31, %v3145_v18  ;;  %v4049_v40 = vadd.f32 %v4016_v47, %v5117_v2  ;;  %v2977_v43 = vpop.f32.mrb[11].mxu0  ;;  %v3248_v45 = vadd.f32 %v3247_v49, %v3246_v32  ;;  %v3214_v21 = vmul.f32 %v4047_v20, %v4047_v20 }
 0x1fd   : > { %3109 = vst.msk [vmem:[%s5134_s30 + $0x40] sm:$0xff] %vm412_vm1, %v4048_v33  ;;  %v3148_v46 = vsel %vm412_vm1, %v4048_v33, 0.0  ;;  %v3212_v7 = vmul.f32 %v4048_v33, %v4048_v33  ;;  %v4050_v14 = vadd.f32 %v2977_v43, %v5119_v5  ;;  %v3152_v34 = vsel %vm412_vm1, %v4047_v20, 0.0 }
 0x1fe   : > { %v3149_v58 = vadd.f32 %v3148_v46, %v3147_v59  ;;  %3112 = vst.msk [vmem:[%s5134_s30 + $0x58] sm:$0xff] %vm412_vm1, %v4049_v40  ;;  %v3250_v61 = vadd.f32 %v3249_v60, %v3248_v45  ;;  %v3215_v37 = vmul.f32 %v4049_v40, %v4049_v40  ;;  %v3154_v8 = vsel %vm412_vm1, %v4049_v40, 0.0 }
 0x1ff   : > { %v3251_v12 = vsel %vm412_vm1, %v3212_v7, 0.0  ;;  %3110 = vst.msk [vmem:[%s5134_s30 + $0x48] sm:$0xff] %vm412_vm1, %v4050_v14  ;;  %v3150_v2 = vsel %vm412_vm1, %v4050_v14, 0.0  ;;  %v3213_v15 = vmul.f32 %v4050_v14, %v4050_v14  ;;  %v3255_v10 = vsel %vm412_vm1, %v3214_v21, 0.0 }
 0x200   : > { %v3151_v29 = vadd.f32 %v3150_v2, %v3149_v58  ;;  %v3252_v35 = vadd.f32 %v3251_v12, %v3250_v61 }
 0x201   : > { %v3253_v5 = vsel %vm412_vm1, %v3213_v15, 0.0  ;;  %v4019_v36 = vpop.f32.mrb[12].mxu0 }
 0x202   : > { %v3153_v38 = vadd.f32 %v3152_v34, %v3151_v29  ;;  %v4051_v50 = vadd.f32 %v4019_v36, %v5121_v23  ;;  %v2990_v51 = vpop.f32.mrb[13].mxu0  ;;  %v3254_v54 = vadd.f32 %v3253_v5, %v3252_v35 }
 0x203   : > { %v4052_v55 = vadd.f32 %v2990_v51, %v5123_v24  ;;  %v4020_v56 = vpop.f32.mrb[14].mxu0  ;;  %v3257_v24 = vsel %vm412_vm1, %v3215_v37, 0.0 }
 0x204   : > { %3115 = vst.msk [vmem:[%s5134_s30 + $0x70] sm:$0xff] %vm412_vm1, %v4051_v50  ;;  %v3155_v48 = vadd.f32 %v3154_v8, %v3153_v38  ;;  %v4053_v11 = vadd.f32 %v4020_v56, %v5125_v25  ;;  %v2993_v57 = vpop.f32.mrb[15].mxu0  ;;  %v3256_v53 = vadd.f32 %v3255_v10, %v3254_v54  ;;  %v3218_v3 = vmul.f32 %v4051_v50, %v4051_v50 }
 0x205   : > { %3113 = vst.msk [vmem:[%s5134_s30 + $0x60] sm:$0xff] %vm412_vm1, %v4052_v55  ;;  %v3156_v23 = vsel %vm412_vm1, %v4052_v55, 0.0  ;;  %v3216_v6 = vmul.f32 %v4052_v55, %v4052_v55  ;;  %v4054_v16 = vadd.f32 %v2993_v57, %v5127_v26  ;;  %v3160_v9 = vsel %vm412_vm1, %v4051_v50, 0.0 }
 0x206   : > { %v3157_v1 = vadd.f32 %v3156_v23, %v3155_v48  ;;  %3116 = vst.msk [vmem:[%s5134_s30 + $0x78] sm:$0xff] %vm412_vm1, %v4053_v11  ;;  %v3258_v27 = vadd.f32 %v3257_v24, %v3256_v53  ;;  %v3219_v52 = vmul.f32 %v4053_v11, %v4053_v11  ;;  %v3162_v17 = vsel %vm412_vm1, %v4053_v11, 0.0 }
 0x207   : > { %v3259_v28 = vsel %vm412_vm1, %v3216_v6, 0.0  ;;  %3114 = vst.msk [vmem:[%s5134_s30 + $0x68] sm:$0xff] %vm412_vm1, %v4054_v16  ;;  %v3158_v25 = vsel %vm412_vm1, %v4054_v16, 0.0  ;;  %v3217_v4 = vmul.f32 %v4054_v16, %v4054_v16  ;;  %v3263_v31 = vsel %vm412_vm1, %v3218_v3, 0.0 }
 0x208   : > { %v3159_v41 = vadd.f32 %v3158_v25, %v3157_v1  ;;  %v3887_v42 = vpop.f32.mrb[16].mxu1  ;;  %v3260_v26 = vadd.f32 %v3259_v28, %v3258_v27  ;;  %v3265_v45 = vsel %vm412_vm1, %v3219_v52, 0.0 }
 0x209   : > { %v3261_v13 = vsel %vm412_vm1, %v3217_v4, 0.0  ;;  %v1829_v39 = vpop.f32.mrb[17].mxu1  ;;  %v4023_v44 = vpop.f32.mrb[16].mxu0 }
 0x20a   : > { %v3161_v62 = vadd.f32 %v3160_v9, %v3159_v41  ;;  %v4055_v22 = vadd.f32 %v4023_v44, %v3887_v42  ;;  %v3888_v63 = vpop.f32.mrb[18].mxu1  ;;  %v3006_v0 = vpop.f32.mrb[17].mxu0  ;;  %v3262_v18 = vadd.f32 %v3261_v13, %v3260_v26 }
 0x20b   : > { %v4056_v19 = vadd.f32 %v3006_v0, %v1829_v39  ;;  %v1832_v20 = vpop.f32.mrb[19].mxu1  ;;  %v4024_v30 = vpop.f32.mrb[18].mxu0 }
 0x20c   : > { %3119 = vst.msk [vmem:[%s5134_s30 + $0x90] sm:$0xff] %vm412_vm1, %v4055_v22  ;;  %v3163_v32 = vadd.f32 %v3162_v17, %v3161_v62  ;;  %v4057_v33 = vadd.f32 %v4024_v30, %v3888_v63  ;;  %v3009_v47 = vpop.f32.mrb[19].mxu0  ;;  %v3264_v49 = vadd.f32 %v3263_v31, %v3262_v18  ;;  %v3222_v61 = vmul.f32 %v4055_v22, %v4055_v22 }
 0x20d   : > { %3117 = vst.msk [vmem:[%s5134_s30 + $0x80] sm:$0xff] %vm412_vm1, %v4056_v19  ;;  %v3164_v59 = vsel %vm412_vm1, %v4056_v19, 0.0  ;;  %v3220_v40 = vmul.f32 %v4056_v19, %v4056_v19  ;;  %v4058_v43 = vadd.f32 %v3009_v47, %v1832_v20  ;;  %v3168_v15 = vsel %vm412_vm1, %v4055_v22, 0.0 }
 0x20e   : > { %v3165_v46 = vadd.f32 %v3164_v59, %v3163_v32  ;;  %3120 = vst.msk [vmem:[%s5134_s30 + $0x98] sm:$0xff] %vm412_vm1, %v4057_v33  ;;  %v3266_v7 = vadd.f32 %v3265_v45, %v3264_v49  ;;  %v3223_v5 = vmul.f32 %v4057_v33, %v4057_v33  ;;  %v3170_v51 = vsel %vm412_vm1, %v4057_v33, 0.0 }
 0x20f   : > { %v3267_v14 = vsel %vm412_vm1, %v3220_v40, 0.0  ;;  %3118 = vst.msk [vmem:[%s5134_s30 + $0x88] sm:$0xff] %vm412_vm1, %v4058_v43  ;;  %v3166_v60 = vsel %vm412_vm1, %v4058_v43, 0.0  ;;  %v3221_v58 = vmul.f32 %v4058_v43, %v4058_v43  ;;  %v3271_v10 = vsel %vm412_vm1, %v3222_v61, 0.0 }
 0x210   : > { %v3167_v12 = vadd.f32 %v3166_v60, %v3165_v46  ;;  %v3891_v2 = vpop.f32.mrb[20].mxu1  ;;  %v3268_v21 = vadd.f32 %v3267_v14, %v3266_v7  ;;  %v3273_v24 = vsel %vm412_vm1, %v3223_v5, 0.0 }
 0x211   : > { %v3269_v29 = vsel %vm412_vm1, %v3221_v58, 0.0  ;;  %v1845_v34 = vpop.f32.mrb[21].mxu1  ;;  %v4027_v35 = vpop.f32.mrb[20].mxu0 }
 0x212   : > { %v3169_v36 = vadd.f32 %v3168_v15, %v3167_v12  ;;  %v4059_v37 = vadd.f32 %v4027_v35, %v3891_v2  ;;  %v3892_v38 = vpop.f32.mrb[22].mxu1  ;;  %v3022_v50 = vpop.f32.mrb[21].mxu0  ;;  %v3270_v8 = vadd.f32 %v3269_v29, %v3268_v21 }
 0x213   : > { %v4060_v54 = vadd.f32 %v3022_v50, %v1845_v34  ;;  %v1848_v55 = vpop.f32.mrb[23].mxu1  ;;  %v4028_v56 = vpop.f32.mrb[22].mxu0 }
 0x214   : > { %3123 = vst.msk [vmem:[%s5134_s30 + $0xb0] sm:$0xff] %vm412_vm1, %v4059_v37  ;;  %v3171_v48 = vadd.f32 %v3170_v51, %v3169_v36  ;;  %v4061_v11 = vadd.f32 %v4028_v56, %v3892_v38  ;;  %v3025_v57 = vpop.f32.mrb[23].mxu0  ;;  %v3272_v53 = vadd.f32 %v3271_v10, %v3270_v8  ;;  %v3226_v3 = vmul.f32 %v4059_v37, %v4059_v37 }
 0x215   : > { %3121 = vst.msk [vmem:[%s5134_s30 + $0xa0] sm:$0xff] %vm412_vm1, %v4060_v54  ;;  %v3172_v23 = vsel %vm412_vm1, %v4060_v54, 0.0  ;;  %v3224_v6 = vmul.f32 %v4060_v54, %v4060_v54  ;;  %v4062_v16 = vadd.f32 %v3025_v57, %v1848_v55  ;;  %v3176_v9 = vsel %vm412_vm1, %v4059_v37, 0.0 }
 0x216   : > { %v3173_v1 = vadd.f32 %v3172_v23, %v3171_v48  ;;  %3124 = vst.msk [vmem:[%s5134_s30 + $0xb8] sm:$0xff] %vm412_vm1, %v4061_v11  ;;  %v3274_v27 = vadd.f32 %v3273_v24, %v3272_v53  ;;  %v3227_v52 = vmul.f32 %v4061_v11, %v4061_v11  ;;  %v3178_v17 = vsel %vm412_vm1, %v4061_v11, 0.0 }
 0x217   : > { %v3275_v28 = vsel %vm412_vm1, %v3224_v6, 0.0  ;;  %3122 = vst.msk [vmem:[%s5134_s30 + $0xa8] sm:$0xff] %vm412_vm1, %v4062_v16  ;;  %v3174_v25 = vsel %vm412_vm1, %v4062_v16, 0.0  ;;  %v3225_v4 = vmul.f32 %v4062_v16, %v4062_v16  ;;  %v3279_v31 = vsel %vm412_vm1, %v3226_v3, 0.0 }
 0x218   : > { %v3175_v41 = vadd.f32 %v3174_v25, %v3173_v1  ;;  %v3895_v42 = vpop.f32.mrb[24].mxu1  ;;  %v3276_v26 = vadd.f32 %v3275_v28, %v3274_v27  ;;  %v3281_v45 = vsel %vm412_vm1, %v3227_v52, 0.0 }
 0x219   : > { %v3277_v13 = vsel %vm412_vm1, %v3225_v4, 0.0  ;;  %v1861_v39 = vpop.f32.mrb[25].mxu1  ;;  %v4031_v44 = vpop.f32.mrb[24].mxu0 }
 0x21a   : > { %v3177_v62 = vadd.f32 %v3176_v9, %v3175_v41  ;;  %v4063_v22 = vadd.f32 %v4031_v44, %v3895_v42  ;;  %v3896_v63 = vpop.f32.mrb[26].mxu1  ;;  %v3038_v0 = vpop.f32.mrb[25].mxu0  ;;  %v3278_v18 = vadd.f32 %v3277_v13, %v3276_v26 }
 0x21b   : > { %v4064_v19 = vadd.f32 %v3038_v0, %v1861_v39  ;;  %v1864_v20 = vpop.f32.mrb[27].mxu1  ;;  %v4032_v30 = vpop.f32.mrb[26].mxu0 }
 0x21c   : > { %3127 = vst.msk [vmem:[%s5134_s30 + $0xd0] sm:$0xff] %vm412_vm1, %v4063_v22  ;;  %v3179_v32 = vadd.f32 %v3178_v17, %v3177_v62  ;;  %v4065_v33 = vadd.f32 %v4032_v30, %v3896_v63  ;;  %v3041_v47 = vpop.f32.mrb[27].mxu0  ;;  %v3280_v49 = vadd.f32 %v3279_v31, %v3278_v18  ;;  %v3230_v61 = vmul.f32 %v4063_v22, %v4063_v22 }
 0x21d   : > { %3125 = vst.msk [vmem:[%s5134_s30 + $0xc0] sm:$0xff] %vm412_vm1, %v4064_v19  ;;  %v3180_v59 = vsel %vm412_vm1, %v4064_v19, 0.0  ;;  %v3228_v40 = vmul.f32 %v4064_v19, %v4064_v19  ;;  %v4066_v43 = vadd.f32 %v3041_v47, %v1864_v20  ;;  %v3184_v15 = vsel %vm412_vm1, %v4063_v22, 0.0 }
 0x21e   : > { %v3181_v46 = vadd.f32 %v3180_v59, %v3179_v32  ;;  %3128 = vst.msk [vmem:[%s5134_s30 + $0xd8] sm:$0xff] %vm412_vm1, %v4065_v33  ;;  %v3282_v7 = vadd.f32 %v3281_v45, %v3280_v49  ;;  %v3231_v5 = vmul.f32 %v4065_v33, %v4065_v33  ;;  %v3186_v51 = vsel %vm412_vm1, %v4065_v33, 0.0 }
 0x21f   : > { %v3283_v14 = vsel %vm412_vm1, %v3228_v40, 0.0  ;;  %3126 = vst.msk [vmem:[%s5134_s30 + $0xc8] sm:$0xff] %vm412_vm1, %v4066_v43  ;;  %v3182_v60 = vsel %vm412_vm1, %v4066_v43, 0.0  ;;  %v3229_v58 = vmul.f32 %v4066_v43, %v4066_v43  ;;  %v3287_v10 = vsel %vm412_vm1, %v3230_v61, 0.0 }
 0x220   : > { %v3183_v12 = vadd.f32 %v3182_v60, %v3181_v46  ;;  %v3899_v2 = vpop.f32.mrb[28].mxu1  ;;  %v3284_v21 = vadd.f32 %v3283_v14, %v3282_v7  ;;  %v3289_v24 = vsel %vm412_vm1, %v3231_v5, 0.0 }
 0x221   : > { %v3285_v29 = vsel %vm412_vm1, %v3229_v58, 0.0  ;;  %v1877_v34 = vpop.f32.mrb[29].mxu1  ;;  %v4035_v35 = vpop.f32.mrb[28].mxu0 }
 0x222   : > { %v3185_v36 = vadd.f32 %v3184_v15, %v3183_v12  ;;  %v4067_v37 = vadd.f32 %v4035_v35, %v3899_v2  ;;  %v3900_v38 = vpop.f32.mrb[30].mxu1  ;;  %v3054_v50 = vpop.f32.mrb[29].mxu0  ;;  %v3286_v8 = vadd.f32 %v3285_v29, %v3284_v21 }
 0x223   : > { %v4068_v54 = vadd.f32 %v3054_v50, %v1877_v34  ;;  %v1880_v55 = vpop.f32.mrb[31].mxu1  ;;  %v4036_v56 = vpop.f32.mrb[30].mxu0 }
 0x224   : > { %3131 = vst.msk [vmem:[%s5134_s30 + $0xf0] sm:$0xff] %vm412_vm1, %v4067_v37  ;;  %v3187_v48 = vadd.f32 %v3186_v51, %v3185_v36  ;;  %v4069_v11 = vadd.f32 %v4036_v56, %v3900_v38  ;;  %v3057_v57 = vpop.f32.mrb[31].mxu0  ;;  %v3288_v53 = vadd.f32 %v3287_v10, %v3286_v8  ;;  %v3234_v3 = vmul.f32 %v4067_v37, %v4067_v37 }
 0x225   : > { %3129 = vst.msk [vmem:[%s5134_s30 + $0xe0] sm:$0xff] %vm412_vm1, %v4068_v54  ;;  %v3188_v23 = vsel %vm412_vm1, %v4068_v54, 0.0  ;;  %v3232_v6 = vmul.f32 %v4068_v54, %v4068_v54  ;;  %v4070_v16 = vadd.f32 %v3057_v57, %v1880_v55  ;;  %v3192_v42 = vsel %vm412_vm1, %v4067_v37, 0.0 }
 0x226   : > { %v3189_v1 = vadd.f32 %v3188_v23, %v3187_v48  ;;  %3132 = vst.msk [vmem:[%s5134_s30 + $0xf8] sm:$0xff] %vm412_vm1, %v4069_v11  ;;  %v3290_v27 = vadd.f32 %v3289_v24, %v3288_v53  ;;  %v3235_v13 = vmul.f32 %v4069_v11, %v4069_v11  ;;  %v3194_v44 = vsel %vm412_vm1, %v4069_v11, 0.0 }
 0x227   : > { %v3291_v28 = vsel %vm412_vm1, %v3232_v6, 0.0  ;;  %3130 = vst.msk [vmem:[%s5134_s30 + $0xe8] sm:$0xff] %vm412_vm1, %v4070_v16  ;;  %v3190_v25 = vsel %vm412_vm1, %v4070_v16, 0.0  ;;  %v3233_v4 = vmul.f32 %v4070_v16, %v4070_v16  ;;  %v3295_v62 = vsel %vm412_vm1, %v3234_v3, 0.0 }
 0x228   : > { %v3191_v41 = vadd.f32 %v3190_v25, %v3189_v1  ;;  %v3292_v9 = vadd.f32 %v3291_v28, %v3290_v27  ;;  %v3297_v0 = vsel %vm412_vm1, %v3235_v13, 0.0 }
 0x229   : > { %v3293_v26 = vsel %vm412_vm1, %v3233_v4, 0.0 }
 0x22a   : > { %v3193_v39 = vadd.f32 %v3192_v42, %v3191_v41  ;;  %v3294_v52 = vadd.f32 %v3293_v26, %v3292_v9 }
 0x22c   : > { %v3195_v22 = vadd.f32 %v3194_v44, %v3193_v39  ;;  %v3296_v63 = vadd.f32 %v3295_v62, %v3294_v52 }
 0x22e   : > { %v3196_v17 = vrot.slane %v3195_v22, 4  ;;  %v3298_v18 = vadd.f32 %v3297_v0, %v3296_v63 }
 0x230   : > { %v3197_v19 = vadd.f32 %v3196_v17, %v3195_v22  ;;  %v3299_v20 = vrot.slane %v3298_v18, 4 }
 0x232   : > { %v3198_v30 = vrot.slane %v3197_v19, 2  ;;  %v3300_v31 = vadd.f32 %v3299_v20, %v3298_v18 }
 0x234   : > { %v3199_v32 = vadd.f32 %v3198_v30, %v3197_v19  ;;  %v3301_v33 = vrot.slane %v3300_v31, 2 }
 0x236   : > { %v3200_v47 = vrot.slane %v3199_v32, 1  ;;  %v3302_v49 = vadd.f32 %v3301_v33, %v3300_v31 }
 0x238   : > { %v3201_v59 = vadd.f32 %v3200_v47, %v3199_v32  ;;  %v3303_v40 = vrot.slane %v3302_v49, 1 }
 0x23a   : > { %3203 = vst.msk [vmem:[%s265_s9] sm:$0x1] %vm3202_vm2, %v3201_v59  ;;  %v3304_v43 = vadd.f32 %v3303_v40, %v3302_v49 }
 0x23c   : > { %3305 = vst.msk [vmem:[%s268_s12] sm:$0x1] %vm3202_vm2, %v3304_v43 }
 0x23d PF: > { %s17_s21 = sadd.s32 1, %s4320_s21  }
 0x23e   : > { %p14_p4 = scmp.ge.s32.totalorder %s17_s21, 4  }
 0x240   :  { %16 = sbr.rel (!%p14_p4) target bundleno = 1 (0x1), region = 100 }

// kernel: basic_block_forward.3
= control target key start
LH: loop header
LB: loop body
LE: loop exit
PB: predicated region body
PF: predicated region fallthrough
CT: control target
= control target key end

     0   :  { %s4923_s27 = smov 0   ;;  %s6286_s0 = inlined_call_operand.vmem [shape: f32[2,16,16,4], index: 0, kind: input, shape index: {}]   ;;  %s6287_s1 = inlined_call_operand.vmem [shape: bf16[3,3,4,8], index: 1, kind: input, shape index: {}]   ;;  %s6288_s2 = inlined_call_operand.vmem [shape: bf16[4,8], index: 2, kind: input, shape index: {}]   ;;  %s6289_s3 = inlined_call_operand.vmem [shape: f32[2,16,16,8], index: 3, kind: output, shape index: {0}]   ;;  %s6290_s4 = inlined_call_operand.vmem [shape: f32[2,1,8], index: 4, kind: output, shape index: {1}]   ;;  %s6291_s5 = inlined_call_operand.vmem [shape: f32[2,1,8], index: 5, kind: output, shape index: {2}]   ;;  %s6292_s6 = inlined_call_operand.vmem [shape: f32[2,16,16,8], index: 6, kind: output, shape index: {3}]   ;;  %s6293_s7 = inlined_call_operand.vmem [shape: f32[2,1,8], index: 7, kind: output, shape index: {4}]   ;;  %s6294_s8 = inlined_call_operand.vmem [shape: f32[2,1,8], index: 8, kind: output, shape index: {5}]  }
   0x1 LB: > { %s3900_s28 = sadd.s32 4294967295, %s4875_s27   ;;  %p3904_p0 = scmp.ge.s32.totalorder %s4875_s27, 1  ;;  %s4875_s27 = sphi %s4923_s27, %s19_s27  }
   0x2   : > { %p273_p1 = scmp.lt.s32.totalorder %s4875_s27, 3 }
   0x4   : > { %p274_p2 = pnand %p3904_p0, %p273_p1 }
   0x6   : > { %277 = sbr.rel (%p274_p2) target bundleno = 633 (0x279), region = 32 }
   0xd   : > { %v3911_v0 = vld [vmem:[%s6287_s1 + $0x2] sm:$0x3]  ;;  %vm637_vm0 = vcmask 1041408   ;;  %v3978_v1 = vld [vmem:[%s6287_s1 + $0x8] sm:$0x3]  ;;  %vm384_vm1 = vcmask 31744  }
   0xe   : > { %4850 = vmatprep.subr.msk.bf16.mxu1 %vm637_vm0, %v3911_v0  ;;  %4854 = vmatprep.subr.msk.bf16.mxu0 %vm637_vm0, %v3978_v1  ;;  %v639_v2 = vsel %vm637_vm0, %v3911_v0, 0  ;;  %v1701_v3 = vsel %vm637_vm0, %v3978_v1, 0  ;;  %p4943_p3 = scmp.lt.s32.totalorder %s3900_s28, 1  ;;  %v4950_v4 = vld [vmem:[%s6287_s1 + $0xa] sm:$0x3]  ;;  %v4877_v5 = vmov 0.0  }
   0xf   : > { %4255 = vmatpush3.bf16.msra.mxu1 %v639_v2  ;;  %4391 = vmatpush3.bf16.msra.mxu0 %v1701_v3  ;;  %386 = vst.msk [vmem:[#allocation2 + $0x8] sm:$0xff] %vm384_vm1, %v4877_v5  ;;  %387 = vst.msk [vmem:[#allocation2 + $0x10] sm:$0xff] %vm384_vm1, %v4877_v5  ;;  %v538_v6 = vld [vmem:[%s6287_s1] sm:$0x3]  ;;  %v1995_v41 = vsel %vm637_vm0, %v4950_v4, 0  ;;  %vm3073_vm2 = vcmask 64512  }
  0x10   : > { %385 = vst.msk [vmem:[#allocation2] sm:$0xff] %vm384_vm1, %v4877_v5  ;;  %388 = vst.msk [vmem:[#allocation2 + $0x18] sm:$0xff] %vm384_vm1, %v4877_v5  ;;  %s6372_s28 = smov (!%p4943_p3, %s3900_s28), 1  ;;  %4855 = vmatprep.subr.msk.bf16.mxu0 %vm637_vm0, %v4950_v4  ;;  %4851 = vmatprep.subr.msk.bf16.mxu1 %vm637_vm0, %v538_v6  ;;  %v851_v37 = vsel %vm637_vm0, %v538_v6, 0  ;;  %v5250_v45 = vld [vmem:[%s6287_s1 + $0xc] sm:$0x3] }
  0x11   : > { %389 = vst.msk [vmem:[#allocation2 + $0x20] sm:$0xff] %vm384_vm1, %v4877_v5  ;;  %390 = vst.msk [vmem:[#allocation2 + $0x28] sm:$0xff] %vm384_vm1, %v4877_v5  ;;  %s5109_s16 = sshll.u32 %s6372_s28, 8  ;;  %v5257_v46 = vld [vmem:[%s6287_s1 + $0x4] sm:$0x3]  ;;  %s347_s20 = scalar_lea.vmem %s6293_s7, %s6372_s28  ;;  %vm3175_vm3 = vcmask 57344  }
  0x12   : > { %391 = vst.msk [vmem:[#allocation2 + $0x30] sm:$0xff] %vm384_vm1, %v4877_v5  ;;  %392 = vst.msk [vmem:[#allocation2 + $0x38] sm:$0xff] %vm384_vm1, %v4877_v5  ;;  %s5115_s19 = scalar_lea.vmem %s6286_s0, %s5109_s16  ;;  %s5806_s14 = scalar_lea.vmem %s6292_s6, %s5109_s16 }
  0x13   : > { %393 = vst.msk [vmem:[#allocation2 + $0x40] sm:$0xff] %vm384_vm1, %v4877_v5  ;;  %394 = vst.msk [vmem:[#allocation2 + $0x48] sm:$0xff] %vm384_vm1, %v4877_v5  ;;  %v5118_v7 = vld [vmem:[%s5115_s19] sm:$0xff]  ;;  %v5121_v8 = vld [vmem:[%s5115_s19 + $0x8] sm:$0xff]  ;;  %s5814_s18 = scalar_lea.vmem %s6289_s3, %s5109_s16  ;;  %s350_s23 = scalar_lea.vmem %s6294_s8, %s6372_s28 }
  0x14   : > { %395 = vst.msk [vmem:[#allocation2 + $0x50] sm:$0xff] %vm384_vm1, %v4877_v5  ;;  %396 = vst.msk [vmem:[#allocation2 + $0x58] sm:$0xff] %vm384_vm1, %v4877_v5  ;;  %v5124_v9 = vld [vmem:[%s5115_s19 + $0x10] sm:$0xff]  ;;  %v5131_v10 = vld [vmem:[%s5115_s19 + $0x18] sm:$0xff]  ;;  %s336_s26 = scalar_lea.vmem %s6290_s4, %s6372_s28  ;;  %s339_s9 = scalar_lea.vmem %s6291_s5, %s6372_s28 }
  0x15   : > { %397 = vst.msk [vmem:[#allocation2 + $0x60] sm:$0xff] %vm384_vm1, %v4877_v5  ;;  %398 = vst.msk [vmem:[#allocation2 + $0x68] sm:$0xff] %vm384_vm1, %v4877_v5  ;;  %v5136_v11 = vld [vmem:[%s5115_s19 + $0x20] sm:$0xff]  ;;  %v5139_v12 = vld [vmem:[%s5115_s19 + $0x28] sm:$0xff] }
  0x16   : > { %399 = vst.msk [vmem:[#allocation2 + $0x70] sm:$0xff] %vm384_vm1, %v4877_v5  ;;  %400 = vst.msk [vmem:[#allocation2 + $0x78] sm:$0xff] %vm384_vm1, %v4877_v5  ;;  %v539_v13 = vld [vmem:[#allocation2 + $0x8] sm:$0xff]  ;;  %v540_v14 = vld [vmem:[#allocation2 + $0x10] sm:$0xff] }
  0x17   : > { %401 = vst.msk [vmem:[#allocation2 + $0x80] sm:$0xff] %vm384_vm1, %v4877_v5  ;;  %402 = vst.msk [vmem:[#allocation2 + $0x88] sm:$0xff] %vm384_vm1, %v4877_v5  ;;  %v5148_v15 = vld [vmem:[%s5115_s19 + $0x30] sm:$0xff]  ;;  %v571_v16 = vpack.c.bf16 %v540_v14, %v539_v13  ;;  %v5151_v17 = vld [vmem:[%s5115_s19 + $0x38] sm:$0xff] }
  0x18   : > { %403 = vst.msk [vmem:[#allocation2 + $0x90] sm:$0xff] %vm384_vm1, %v4877_v5  ;;  %404 = vst.msk [vmem:[#allocation2 + $0x98] sm:$0xff] %vm384_vm1, %v4877_v5  ;;  %v5156_v18 = vld [vmem:[%s5115_s19 + $0x40] sm:$0xff]  ;;  %v5159_v19 = vld [vmem:[%s5115_s19 + $0x48] sm:$0xff] }
  0x19   : > { %405 = vst.msk [vmem:[#allocation2 + $0xa0] sm:$0xff] %vm384_vm1, %v4877_v5  ;;  %406 = vst.msk [vmem:[#allocation2 + $0xa8] sm:$0xff] %vm384_vm1, %v4877_v5  ;;  %v5168_v20 = vld [vmem:[%s5115_s19 + $0x50] sm:$0xff]  ;;  %v5171_v21 = vld [vmem:[%s5115_s19 + $0x58] sm:$0xff]  ;;  %4256 = vmatprep.mubr.msk.bf16.mxu1 %vm384_vm1, %v571_v16 }
  0x1a   : > { %407 = vst.msk [vmem:[#allocation2 + $0xb0] sm:$0xff] %vm384_vm1, %v4877_v5  ;;  %408 = vst.msk [vmem:[#allocation2 + $0xb8] sm:$0xff] %vm384_vm1, %v4877_v5  ;;  %v5174_v22 = vld [vmem:[%s5115_s19 + $0x60] sm:$0xff]  ;;  %v5182_v23 = vld [vmem:[%s5115_s19 + $0x68] sm:$0xff] }
  0x1b   : > { %409 = vst.msk [vmem:[#allocation2 + $0xc0] sm:$0xff] %vm384_vm1, %v4877_v5  ;;  %410 = vst.msk [vmem:[#allocation2 + $0xc8] sm:$0xff] %vm384_vm1, %v4877_v5  ;;  %v5187_v24 = vld [vmem:[%s5115_s19 + $0x70] sm:$0xff]  ;;  %v5190_v25 = vld [vmem:[%s5115_s19 + $0x78] sm:$0xff] }
  0x1c   : > { %411 = vst.msk [vmem:[#allocation2 + $0xd0] sm:$0xff] %vm384_vm1, %v4877_v5  ;;  %412 = vst.msk [vmem:[#allocation2 + $0xd8] sm:$0xff] %vm384_vm1, %v4877_v5  ;;  %v5199_v26 = vld [vmem:[%s5115_s19 + $0x80] sm:$0xff]  ;;  %v5202_v27 = vld [vmem:[%s5115_s19 + $0x88] sm:$0xff] }
  0x1d   : > { %413 = vst.msk [vmem:[#allocation2 + $0xe0] sm:$0xff] %vm384_vm1, %v4877_v5  ;;  %414 = vst.msk [vmem:[#allocation2 + $0xe8] sm:$0xff] %vm384_vm1, %v4877_v5  ;;  %v5205_v28 = vld [vmem:[%s5115_s19 + $0x90] sm:$0xff]  ;;  %v5212_v29 = vld [vmem:[%s5115_s19 + $0x98] sm:$0xff] }
  0x1e   : > { %415 = vst.msk [vmem:[#allocation2 + $0xf0] sm:$0xff] %vm384_vm1, %v4877_v5  ;;  %416 = vst.msk [vmem:[#allocation2 + $0xf8] sm:$0xff] %vm384_vm1, %v4877_v5  ;;  %v5217_v30 = vld [vmem:[%s5115_s19 + $0xa0] sm:$0xff]  ;;  %v5220_v31 = vld [vmem:[%s5115_s19 + $0xa8] sm:$0xff] }
  0x1f   : > { %417 = vst.msk [vmem:[#allocation2 + $0x100] sm:$0xff] %vm384_vm1, %v4877_v5  ;;  %418 = vst.msk [vmem:[#allocation2 + $0x108] sm:$0xff] %vm384_vm1, %v4877_v5  ;;  %v5236_v43 = vld [vmem:[%s5115_s19 + $0xb0] sm:$0xff]  ;;  %v5239_v44 = vld [vmem:[%s5115_s19 + $0xb8] sm:$0xff] }
  0x20   : > { %419 = vst.msk [vmem:[#allocation2 + $0x110] sm:$0xff] %vm384_vm1, %v4877_v5  ;;  %420 = vst.msk [vmem:[#allocation2 + $0x118] sm:$0xff] %vm384_vm1, %v4877_v5  ;;  %v5270_v52 = vld [vmem:[%s5115_s19 + $0xc0] sm:$0xff]  ;;  %v5273_v53 = vld [vmem:[%s5115_s19 + $0xc8] sm:$0xff] }
  0x21   : > { %421 = vst.msk [vmem:[#allocation2 + $0x120] sm:$0xff] %vm384_vm1, %v4877_v5  ;;  %422 = vst.msk [vmem:[#allocation2 + $0x128] sm:$0xff] %vm384_vm1, %v4877_v5  ;;  %v5276_v54 = vld [vmem:[%s5115_s19 + $0xd0] sm:$0xff]  ;;  %v5285_v56 = vld [vmem:[%s5115_s19 + $0xd8] sm:$0xff] }
  0x22   : > { %423 = vst.msk [vmem:[#allocation2 + $0x130] sm:$0xff] %vm384_vm1, %v4877_v5  ;;  %424 = vst.msk [vmem:[#allocation2 + $0x138] sm:$0xff] %vm384_vm1, %v4877_v5  ;;  %v5290_v57 = vld [vmem:[%s5115_s19 + $0xe0] sm:$0xff]  ;;  %v5293_v58 = vld [vmem:[%s5115_s19 + $0xe8] sm:$0xff] }
  0x23   : > { %425 = vst.msk [vmem:[#allocation2 + $0x140] sm:$0xff] %vm384_vm1, %v4877_v5  ;;  %426 = vst.msk [vmem:[#allocation2 + $0x148] sm:$0xff] %vm384_vm1, %v4877_v5  ;;  %v5302_v59 = vld [vmem:[%s5115_s19 + $0xf0] sm:$0xff]  ;;  %v5307_v60 = vld [vmem:[%s5115_s19 + $0xf8] sm:$0xff] }
  0x24   : > { %427 = vst.msk [vmem:[#allocation2 + $0x150] sm:$0xff] %vm384_vm1, %v4877_v5  ;;  %428 = vst.msk [vmem:[#allocation2 + $0x158] sm:$0xff] %vm384_vm1, %v4877_v5 }
  0x25   : > { %429 = vst.msk [vmem:[#allocation2 + $0x160] sm:$0xff] %vm384_vm1, %v4877_v5  ;;  %430 = vst.msk [vmem:[#allocation2 + $0x168] sm:$0xff] %vm384_vm1, %v4877_v5 }
  0x26   : > { %431 = vst.msk [vmem:[#allocation2 + $0x170] sm:$0xff] %vm384_vm1, %v4877_v5  ;;  %432 = vst.msk [vmem:[#allocation2 + $0x178] sm:$0xff] %vm384_vm1, %v4877_v5 }
  0x27   : > { %433 = vst.msk [vmem:[#allocation2 + $0x180] sm:$0xff] %vm384_vm1, %v4877_v5  ;;  %434 = vst.msk [vmem:[#allocation2 + $0x188] sm:$0xff] %vm384_vm1, %v4877_v5 }
  0x28   : > { %435 = vst.msk [vmem:[#allocation2 + $0x190] sm:$0xff] %vm384_vm1, %v4877_v5  ;;  %436 = vst.msk [vmem:[#allocation2 + $0x198] sm:$0xff] %vm384_vm1, %v4877_v5 }
  0x29   : > { %437 = vst.msk [vmem:[#allocation2 + $0x1a0] sm:$0xff] %vm384_vm1, %v4877_v5  ;;  %438 = vst.msk [vmem:[#allocation2 + $0x1a8] sm:$0xff] %vm384_vm1, %v4877_v5 }
  0x2a   : > { %439 = vst.msk [vmem:[#allocation2 + $0x1b0] sm:$0xff] %vm384_vm1, %v4877_v5  ;;  %440 = vst.msk [vmem:[#allocation2 + $0x1b8] sm:$0xff] %vm384_vm1, %v4877_v5 }
  0x2b   : > { %441 = vst.msk [vmem:[#allocation2 + $0x1c0] sm:$0xff] %vm384_vm1, %v4877_v5  ;;  %442 = vst.msk [vmem:[#allocation2 + $0x1c8] sm:$0xff] %vm384_vm1, %v4877_v5 }
  0x2c   : > { %443 = vst.msk [vmem:[#allocation2 + $0x1d0] sm:$0xff] %vm384_vm1, %v4877_v5  ;;  %444 = vst.msk [vmem:[#allocation2 + $0x1d8] sm:$0xff] %vm384_vm1, %v4877_v5 }
  0x2d   : > { %445 = vst.msk [vmem:[#allocation2 + $0x1e0] sm:$0xff] %vm384_vm1, %v4877_v5  ;;  %446 = vst.msk [vmem:[#allocation2 + $0x1e8] sm:$0xff] %vm384_vm1, %v4877_v5 }
  0x2e   : > { %447 = vst.msk [vmem:[#allocation2 + $0x1f0] sm:$0xff] %vm384_vm1, %v4877_v5  ;;  %448 = vst.msk [vmem:[#allocation2 + $0x1f8] sm:$0xff] %vm384_vm1, %v4877_v5 }
  0x2f   : > { %449 = vst.msk [vmem:[#allocation2 + $0x200] sm:$0xff] %vm384_vm1, %v4877_v5  ;;  %450 = vst.msk [vmem:[#allocation2 + $0x208] sm:$0xff] %vm384_vm1, %v4877_v5 }
  0x30   : > { %451 = vst.msk [vmem:[#allocation2 + $0x210] sm:$0xff] %vm384_vm1, %v4877_v5  ;;  %452 = vst.msk [vmem:[#allocation2 + $0x218] sm:$0xff] %vm384_vm1, %v4877_v5 }
  0x31   : > { %453 = vst.msk [vmem:[#allocation2 + $0x220] sm:$0xff] %vm384_vm1, %v4877_v5  ;;  %454 = vst.msk [vmem:[#allocation2 + $0x228] sm:$0xff] %vm384_vm1, %v4877_v5 }
  0x32   : > { %455 = vst.msk [vmem:[#allocation2 + $0x230] sm:$0xff] %vm384_vm1, %v4877_v5  ;;  %456 = vst.msk [vmem:[#allocation2 + $0x238] sm:$0xff] %vm384_vm1, %v4877_v5 }
  0x33   : > { %458 = vst.msk [vmem:[#allocation2 + $0x28] sm:$0xff] %vm384_vm1, %v5118_v7  ;;  %459 = vst.msk [vmem:[#allocation2 + $0x30] sm:$0xff] %vm384_vm1, %v5121_v8 }
  0x34   : > { %460 = vst.msk [vmem:[#allocation2 + $0x48] sm:$0xff] %vm384_vm1, %v5124_v9  ;;  %461 = vst.msk [vmem:[#allocation2 + $0x50] sm:$0xff] %vm384_vm1, %v5131_v10 }
  0x35   : > { %462 = vst.msk [vmem:[#allocation2 + $0x68] sm:$0xff] %vm384_vm1, %v5136_v11  ;;  %463 = vst.msk [vmem:[#allocation2 + $0x70] sm:$0xff] %vm384_vm1, %v5139_v12 }
  0x36   : > { %6321 = vst [vmem:[#allocation3_spill] sm:$0xff] %v5151_v17  ;;  %464 = vst.msk [vmem:[#allocation2 + $0x88] sm:$0xff] %vm384_vm1, %v5148_v15 }
  0x37   : > { %6322 = vst [vmem:[#allocation4_spill] sm:$0xff] %v5156_v18  ;;  %6323 = vst [vmem:[#allocation5_spill] sm:$0xff] %v5159_v19 }
  0x38   : > { %465 = vst.msk [vmem:[#allocation2 + $0x90] sm:$0xff] %vm384_vm1, %v5151_v17  ;;  %466 = vst.msk [vmem:[#allocation2 + $0xa8] sm:$0xff] %vm384_vm1, %v5156_v18 }
  0x39   : > { %467 = vst.msk [vmem:[#allocation2 + $0xb0] sm:$0xff] %vm384_vm1, %v5159_v19  ;;  %6324 = vst [vmem:[#allocation6_spill] sm:$0xff] %v5168_v20 }
  0x3a   : > { %6325 = vst [vmem:[#allocation7_spill] sm:$0xff] %v5171_v21  ;;  %6326 = vst [vmem:[#allocation8_spill] sm:$0xff] %v5174_v22  ;;  %v541_v32 = vld [vmem:[#allocation2 + $0x28] sm:$0xff]  ;;  %v542_v33 = vld [vmem:[#allocation2 + $0x30] sm:$0xff] }
  0x3b   : > { %468 = vst.msk [vmem:[#allocation2 + $0xc8] sm:$0xff] %vm384_vm1, %v5168_v20  ;;  %469 = vst.msk [vmem:[#allocation2 + $0xd0] sm:$0xff] %vm384_vm1, %v5171_v21  ;;  %v1604_v34 = vld [vmem:[#allocation2 + $0x48] sm:$0xff]  ;;  %v572_v35 = vpack.c.bf16 %v542_v33, %v541_v32  ;;  %v1605_v36 = vld [vmem:[#allocation2 + $0x50] sm:$0xff] }
  0x3c   : > { %6327 = vst [vmem:[#allocation9_spill] sm:$0xff] %v5182_v23  ;;  %470 = vst.msk [vmem:[#allocation2 + $0xe8] sm:$0xff] %vm384_vm1, %v5174_v22  ;;  %v545_v38 = vld [vmem:[#allocation2 + $0x68] sm:$0xff]  ;;  %v546_v39 = vld [vmem:[#allocation2 + $0x70] sm:$0xff]  ;;  %v5229_v40 = vpack.c.bf16 %v1605_v36, %v1604_v34 }
  0x3d   : > { %6328 = vst [vmem:[#allocation10_spill] sm:$0xff] %v5187_v24  ;;  %6329 = vst [vmem:[#allocation11_spill] sm:$0xff] %v5190_v25  ;;  %v5233_v42 = vpack.c.bf16 %v546_v39, %v545_v38  ;;  %4257 = vmatmul.mubr.msk.bf16.vlgmr.msra.gmra.mrb[0].mxu1 %vm384_vm1, %v572_v35  ;;  %4392 = vmatprep.mubr.msk.bf16.mxu0 %vm384_vm1, %v572_v35  ;;  %v1608_v47 = vld [vmem:[#allocation2 + $0x88] sm:$0xff] }
  0x3e   : > { %471 = vst.msk [vmem:[#allocation2 + $0xf0] sm:$0xff] %vm384_vm1, %v5182_v23  ;;  %472 = vst.msk [vmem:[#allocation2 + $0x108] sm:$0xff] %vm384_vm1, %v5187_v24  ;;  %4393 = vmatmul.mubr.msk.bf16.vlgmr.msra.gmra.mrb[0].mxu0 %vm384_vm1, %v5229_v40  ;;  %4289 = vmatpush3.bf16.msra.mxu1 %v851_v37 }
  0x3f   : > { %473 = vst.msk [vmem:[#allocation2 + $0x110] sm:$0xff] %vm384_vm1, %v5190_v25  ;;  %6330 = vst [vmem:[#allocation12_spill] sm:$0xff] %v5199_v26  ;;  %4425 = vmatpush3.bf16.msra.mxu0 %v1995_v41  ;;  %4260 = vmatprep.mubr.msk.bf16.mxu1 %vm384_vm1, %v5229_v40  ;;  %v1609_v48 = vld [vmem:[#allocation2 + $0x90] sm:$0xff]  ;;  %v549_v49 = vld [vmem:[#allocation2 + $0xa8] sm:$0xff] }
  0x40   : > { %6331 = vst [vmem:[#allocation13_spill] sm:$0xff] %v5202_v27  ;;  %6332 = vst [vmem:[#allocation14_spill] sm:$0xff] %v5205_v28  ;;  %4396 = vmatprep.mubr.msk.bf16.mxu0 %vm384_vm1, %v5233_v42  ;;  %v550_v50 = vld [vmem:[#allocation2 + $0xb0] sm:$0xff]  ;;  %4856 = vmatprep.subr.msk.bf16.mxu0 %vm637_vm0, %v5250_v45  ;;  %v5267_v51 = vpack.c.bf16 %v1609_v48, %v1608_v47 }
  0x41   : > { %474 = vst.msk [vmem:[#allocation2 + $0x128] sm:$0xff] %vm384_vm1, %v5199_v26  ;;  %475 = vst.msk [vmem:[#allocation2 + $0x130] sm:$0xff] %vm384_vm1, %v5202_v27  ;;  %4852 = vmatprep.subr.msk.bf16.mxu1 %vm637_vm0, %v5257_v46  ;;  %v5278_v55 = vpack.c.bf16 %v550_v50, %v549_v49 }
  0x42   : > { %6333 = vst [vmem:[#allocation15_spill] sm:$0xff] %v5212_v29  ;;  %476 = vst.msk [vmem:[#allocation2 + $0x148] sm:$0xff] %vm384_vm1, %v5205_v28  ;;  %v1612_v61 = vld [vmem:[#allocation2 + $0xc8] sm:$0xff]  ;;  %v1613_v62 = vld [vmem:[#allocation2 + $0xd0] sm:$0xff] }
  0x43   : > { %6334 = vst [vmem:[#allocation16_spill] sm:$0xff] %v5217_v30  ;;  %6335 = vst [vmem:[#allocation17_spill] sm:$0xff] %v5220_v31  ;;  %v553_v63 = vld [vmem:[#allocation2 + $0xe8] sm:$0xff]  ;;  %v5319_v1 = vpack.c.bf16 %v1613_v62, %v1612_v61 }
  0x44   : > { %477 = vst.msk [vmem:[#allocation2 + $0x150] sm:$0xff] %vm384_vm1, %v5212_v29  ;;  %478 = vst.msk [vmem:[#allocation2 + $0x168] sm:$0xff] %vm384_vm1, %v5217_v30 }
  0x45   : > { %479 = vst.msk [vmem:[#allocation2 + $0x170] sm:$0xff] %vm384_vm1, %v5220_v31  ;;  %6336 = vst [vmem:[#allocation18_spill] sm:$0xff] %v5236_v43  ;;  %4261 = vmatmul.mubr.msk.bf16.gmra.mrb[4].mxu1 %vm384_vm1, %v5233_v42  ;;  %v554_v0 = vld [vmem:[#allocation2 + $0xf0] sm:$0xff]  ;;  %v1616_v3 = vld [vmem:[#allocation2 + $0x108] sm:$0xff] }
  0x46   : > { %6337 = vst [vmem:[#allocation19_spill] sm:$0xff] %v5239_v44  ;;  %480 = vst.msk [vmem:[#allocation2 + $0x188] sm:$0xff] %vm384_vm1, %v5236_v43  ;;  %4397 = vmatmul.mubr.msk.bf16.gmra.mrb[4].mxu0 %vm384_vm1, %v5267_v51  ;;  %4264 = vmatprep.mubr.msk.bf16.mxu1 %vm384_vm1, %v5267_v51  ;;  %v5321_v2 = vpack.c.bf16 %v554_v0, %v553_v63  ;;  %v1617_v4 = vld [vmem:[#allocation2 + $0x110] sm:$0xff] }
  0x47   : > { %481 = vst.msk [vmem:[#allocation2 + $0x190] sm:$0xff] %vm384_vm1, %v5239_v44  ;;  %6338 = vst [vmem:[#allocation20_spill] sm:$0xff] %v5270_v52  ;;  %4400 = vmatprep.mubr.msk.bf16.mxu0 %vm384_vm1, %v5278_v55  ;;  %v5331_v13 = vpack.c.bf16 %v1617_v4, %v1616_v3  ;;  %v490_v3 = vld [vmem:[#allocation2 + $0x7] sm:$0xff] }
  0x48   : > { %6339 = vst [vmem:[#allocation21_spill] sm:$0xff] %v5273_v53  ;;  %6340 = vst [vmem:[#allocation22_spill] sm:$0xff] %v5276_v54  ;;  %v557_v5 = vld [vmem:[#allocation2 + $0x128] sm:$0xff]  ;;  %v558_v6 = vld [vmem:[#allocation2 + $0x130] sm:$0xff] }
  0x49   : > { %482 = vst.msk [vmem:[#allocation2 + $0x1a8] sm:$0xff] %vm384_vm1, %v5270_v52  ;;  %483 = vst.msk [vmem:[#allocation2 + $0x1b0] sm:$0xff] %vm384_vm1, %v5273_v53  ;;  %v5333_v14 = vpack.c.bf16 %v558_v6, %v557_v5  ;;  %v1620_v16 = vld [vmem:[#allocation2 + $0x148] sm:$0xff] }
  0x4a   : > { %6341 = vst [vmem:[#allocation23_spill] sm:$0xff] %v5285_v56  ;;  %484 = vst.msk [vmem:[#allocation2 + $0x1c8] sm:$0xff] %vm384_vm1, %v5276_v54  ;;  %v491_v6 = vld [vmem:[#allocation2 + $0xf] sm:$0xff]  ;;  %v504_v53 = vld [vmem:[#allocation2 + $0xe7] sm:$0xff] }
  0x4b   : > { %6342 = vst [vmem:[#allocation24_spill] sm:$0xff] %v5290_v57  ;;  %6343 = vst [vmem:[#allocation25_spill] sm:$0xff] %v5293_v58  ;;  %v1621_v32 = vld [vmem:[#allocation2 + $0x150] sm:$0xff]  ;;  %v561_v33 = vld [vmem:[#allocation2 + $0x168] sm:$0xff] }
  0x4c   : > { %485 = vst.msk [vmem:[#allocation2 + $0x1d0] sm:$0xff] %vm384_vm1, %v5285_v56  ;;  %486 = vst.msk [vmem:[#allocation2 + $0x1e8] sm:$0xff] %vm384_vm1, %v5290_v57  ;;  %v562_v34 = vld [vmem:[#allocation2 + $0x170] sm:$0xff]  ;;  %v5343_v35 = vpack.c.bf16 %v1621_v32, %v1620_v16  ;;  %v508_v31 = vld [vmem:[#allocation2 + $0x127] sm:$0xff] }
  0x4d   : > { %487 = vst.msk [vmem:[#allocation2 + $0x1f0] sm:$0xff] %vm384_vm1, %v5293_v58  ;;  %6344 = vst [vmem:[#allocation26_spill] sm:$0xff] %v5302_v59  ;;  %4265 = vmatmul.mubr.msk.bf16.gmra.mrb[8].mxu1 %vm384_vm1, %v5278_v55  ;;  %v5345_v36 = vpack.c.bf16 %v562_v34, %v561_v33  ;;  %v1624_v37 = vld [vmem:[#allocation2 + $0x188] sm:$0xff]  ;;  %v1897_v32 = vld [vmem:[#allocation2 + $0x31] sm:$0xff]  ;;  %v522_v34 = vpack.c.bf16 %v491_v6, %v490_v3  ;;  %v1113_v6 = vsel %vm637_vm0, %v5257_v46, 0 }
  0x4e   : > { %6345 = vst [vmem:[#allocation27_spill] sm:$0xff] %v5307_v60  ;;  %488 = vst.msk [vmem:[#allocation2 + $0x208] sm:$0xff] %vm384_vm1, %v5302_v59  ;;  %4401 = vmatmul.mubr.msk.bf16.gmra.mrb[8].mxu0 %vm384_vm1, %v5319_v1  ;;  %4268 = vmatprep.mubr.msk.bf16.mxu1 %vm384_vm1, %v5319_v1  ;;  %v1625_v38 = vld [vmem:[#allocation2 + $0x190] sm:$0xff]  ;;  %v512_v27 = vld [vmem:[#allocation2 + $0x167] sm:$0xff] }
  0x4f   : > { %489 = vst.msk [vmem:[#allocation2 + $0x210] sm:$0xff] %vm384_vm1, %v5307_v60  ;;  %4404 = vmatprep.mubr.msk.bf16.mxu0 %vm384_vm1, %v5321_v2  ;;  %v5355_v47 = vpack.c.bf16 %v1625_v38, %v1624_v37  ;;  %v1896_v16 = vld [vmem:[#allocation2 + $0x29] sm:$0xff] }
  0x50   : > { %v565_v39 = vld [vmem:[#allocation2 + $0x1a8] sm:$0xff]  ;;  %v566_v41 = vld [vmem:[#allocation2 + $0x1b0] sm:$0xff]  ;;  %v5381_v37 = vpack.c.bf16 %v1897_v32, %v1896_v16  ;;  %v2290_v32 = vsel %vm637_vm0, %v5250_v45, 0  ;;  %v5414_v45 = vld [vmem:[%s6287_s1 + $0x6] sm:$0x3] }
  0x51   : > { %v5357_v48 = vpack.c.bf16 %v566_v41, %v565_v39  ;;  %v1628_v49 = vld [vmem:[#allocation2 + $0x1c8] sm:$0xff] }
  0x52   : > { %v492_v38 = vld [vmem:[#allocation2 + $0x27] sm:$0xff]  ;;  %v493_v39 = vld [vmem:[#allocation2 + $0x2f] sm:$0xff] }
  0x53   : > { %v1629_v50 = vld [vmem:[#allocation2 + $0x1d0] sm:$0xff]  ;;  %v569_v61 = vld [vmem:[#allocation2 + $0x1e8] sm:$0xff] }
  0x54   : > { %v570_v62 = vld [vmem:[#allocation2 + $0x1f0] sm:$0xff]  ;;  %v5367_v63 = vpack.c.bf16 %v1629_v50, %v1628_v49  ;;  %v494_v50 = vld [vmem:[#allocation2 + $0x47] sm:$0xff] }
  0x55   : > { %4269 = vmatmul.mubr.msk.bf16.gmra.mrb[12].mxu1 %vm384_vm1, %v5321_v2  ;;  %v5369_v0 = vpack.c.bf16 %v570_v62, %v569_v61  ;;  %v1632_v4 = vld [vmem:[#allocation2 + $0x208] sm:$0xff]  ;;  %v1899_v49 = vld [vmem:[#allocation2 + $0x51] sm:$0xff]  ;;  %v5390_v62 = vpack.c.bf16 %v493_v39, %v492_v38 }
  0x56   : > { %4405 = vmatmul.mubr.msk.bf16.gmra.mrb[12].mxu0 %vm384_vm1, %v5331_v13  ;;  %4272 = vmatprep.mubr.msk.bf16.mxu1 %vm384_vm1, %v5331_v13  ;;  %v1633_v5 = vld [vmem:[#allocation2 + $0x210] sm:$0xff]  ;;  %v496_v60 = vld [vmem:[#allocation2 + $0x67] sm:$0xff] }
  0x57   : > { %4408 = vmatprep.mubr.msk.bf16.mxu0 %vm384_vm1, %v5333_v14  ;;  %v5379_v33 = vpack.c.bf16 %v1633_v5, %v1632_v4  ;;  %v1898_v41 = vld [vmem:[#allocation2 + $0x49] sm:$0xff]  ;;  %v1901_v4 = vld [vmem:[#allocation2 + $0x71] sm:$0xff] }
  0x58   : > { %v495_v61 = vld [vmem:[#allocation2 + $0x4f] sm:$0xff]  ;;  %v5392_v5 = vpack.c.bf16 %v1899_v49, %v1898_v41  ;;  %v498_v49 = vld [vmem:[#allocation2 + $0x87] sm:$0xff] }
  0x59   : > { %v1900_v3 = vld [vmem:[#allocation2 + $0x69] sm:$0xff]  ;;  %v5396_v16 = vpack.c.bf16 %v495_v61, %v494_v50  ;;  %v1903_v41 = vld [vmem:[#allocation2 + $0x91] sm:$0xff] }
  0x5a   : > { %v5407_v38 = vld [vmem:[%s6287_s1 + $0xe] sm:$0x3] }
  0x5b   : > { %v497_v46 = vld [vmem:[#allocation2 + $0x6f] sm:$0xff]  ;;  %v516_v23 = vld [vmem:[#allocation2 + $0x1a7] sm:$0xff] }
  0x5c   : > { %v1902_v39 = vld [vmem:[#allocation2 + $0x89] sm:$0xff] }
  0x5d   : > { %4273 = vmatmul.mubr.msk.bf16.gmra.mrb[16].mxu1 %vm384_vm1, %v5333_v14  ;;  %v499_v50 = vld [vmem:[#allocation2 + $0x8f] sm:$0xff]  ;;  %v520_v19 = vld [vmem:[#allocation2 + $0x1e7] sm:$0xff] }
  0x5e   : > { %4409 = vmatmul.mubr.msk.bf16.gmra.mrb[16].mxu0 %vm384_vm1, %v5343_v35  ;;  %4276 = vmatprep.mubr.msk.bf16.mxu1 %vm384_vm1, %v5343_v35  ;;  %v1904_v61 = vld [vmem:[#allocation2 + $0xa9] sm:$0xff] }
  0x5f   : > { %4412 = vmatprep.mubr.msk.bf16.mxu0 %vm384_vm1, %v5345_v36  ;;  %v1906_v58 = vld [vmem:[#allocation2 + $0xc9] sm:$0xff] }
  0x60   : > { %v505_v52 = vld [vmem:[#allocation2 + $0xef] sm:$0xff] }
  0x61   : > { %v1910_v44 = vld [vmem:[#allocation2 + $0x109] sm:$0xff] }
  0x62   : > { %v509_v30 = vld [vmem:[#allocation2 + $0x12f] sm:$0xff] }
  0x63   : > { %v1914_v29 = vld [vmem:[#allocation2 + $0x149] sm:$0xff] }
  0x64   : > { %v513_v26 = vld [vmem:[#allocation2 + $0x16f] sm:$0xff] }
  0x65   : > { %4277 = vmatmul.mubr.msk.bf16.gmra.mrb[20].mxu1 %vm384_vm1, %v5345_v36  ;;  %v1918_v25 = vld [vmem:[#allocation2 + $0x189] sm:$0xff] }
  0x66   : > { %4413 = vmatmul.mubr.msk.bf16.gmra.mrb[20].mxu0 %vm384_vm1, %v5355_v47  ;;  %4280 = vmatprep.mubr.msk.bf16.mxu1 %vm384_vm1, %v5355_v47  ;;  %v517_v22 = vld [vmem:[#allocation2 + $0x1af] sm:$0xff] }
  0x67   : > { %4416 = vmatprep.mubr.msk.bf16.mxu0 %vm384_vm1, %v5357_v48  ;;  %v1922_v21 = vld [vmem:[#allocation2 + $0x1c9] sm:$0xff] }
  0x68   : > { %v521_v18 = vld [vmem:[#allocation2 + $0x1ef] sm:$0xff] }
  0x69   : > { %v1926_v17 = vld [vmem:[#allocation2 + $0x209] sm:$0xff] }
  0x6d   : > { %4281 = vmatmul.mubr.msk.bf16.gmra.mrb[24].mxu1 %vm384_vm1, %v5357_v48 }
  0x6e   : > { %4417 = vmatmul.mubr.msk.bf16.gmra.mrb[24].mxu0 %vm384_vm1, %v5367_v63  ;;  %4284 = vmatprep.mubr.msk.bf16.mxu1 %vm384_vm1, %v5367_v63 }
  0x6f   : > { %4420 = vmatprep.mubr.msk.bf16.mxu0 %vm384_vm1, %v5369_v0 }
  0x75   : > { %4285 = vmatmul.mubr.msk.bf16.gmra.mrb[28].mxu1 %vm384_vm1, %v5369_v0 }
  0x76   : > { %4421 = vmatmul.mubr.msk.bf16.gmra.mrb[28].mxu0 %vm384_vm1, %v5379_v33  ;;  %4290 = vmatprep.mubr.msk.bf16.mxu1 %vm384_vm1, %v522_v34  ;;  %v5400_v34 = vpack.c.bf16 %v1901_v4, %v1900_v3  ;;  %v1905_v3 = vld [vmem:[#allocation2 + $0xb1] sm:$0xff]  ;;  %v5422_v4 = vpack.c.bf16 %v497_v46, %v496_v60  ;;  %v500_v60 = vld [vmem:[#allocation2 + $0xa7] sm:$0xff] }
  0x77   : > { %4426 = vmatprep.mubr.msk.bf16.mxu0 %vm384_vm1, %v5381_v37  ;;  %v5430_v59 = vpack.c.bf16 %v1905_v3, %v1904_v61  ;;  %v501_v46 = vld [vmem:[#allocation2 + $0xaf] sm:$0xff] }
  0x78   : > { %v1909_v61 = vld [vmem:[#allocation2 + $0xf1] sm:$0xff]  ;;  %v5440_v3 = vpack.c.bf16 %v501_v46, %v500_v60  ;;  %v506_v60 = vld [vmem:[#allocation2 + $0x107] sm:$0xff] }
  0x79   : > { %v507_v46 = vld [vmem:[#allocation2 + $0x10f] sm:$0xff] }
  0x7d   : > { %4291 = vmatmul.mubr.msk.bf16.vlgmr.msra.gmra.mrb[0].mxu1 %vm384_vm1, %v5390_v62 }
  0x7e   : > { %4427 = vmatmul.mubr.msk.bf16.vlgmr.msra.gmra.mrb[0].mxu0 %vm384_vm1, %v5392_v5  ;;  %4323 = vmatpush3.bf16.msra.mxu1 %v1113_v6  ;;  %v5426_v6 = vpack.c.bf16 %v1903_v41, %v1902_v39  ;;  %v1907_v39 = vld [vmem:[#allocation2 + $0xd1] sm:$0xff]  ;;  %v502_v41 = vld [vmem:[#allocation2 + $0xc7] sm:$0xff] }
  0x7f   : > { %4459 = vmatpush3.bf16.msra.mxu0 %v2290_v32  ;;  %4294 = vmatprep.mubr.msk.bf16.mxu1 %vm384_vm1, %v5396_v16  ;;  %v5428_v32 = vpack.c.bf16 %v499_v50, %v498_v49  ;;  %v503_v49 = vld [vmem:[#allocation2 + $0xcf] sm:$0xff]  ;;  %v5442_v57 = vpack.c.bf16 %v1907_v39, %v1906_v58 }
  0x80   : > { %4430 = vmatprep.mubr.msk.bf16.mxu0 %vm384_vm1, %v5400_v34  ;;  %4857 = vmatprep.subr.msk.bf16.mxu0 %vm637_vm0, %v5407_v38  ;;  %v1908_v50 = vld [vmem:[#allocation2 + $0xe9] sm:$0xff]  ;;  %v5444_v56 = vpack.c.bf16 %v503_v49, %v502_v41  ;;  %v1911_v58 = vld [vmem:[#allocation2 + $0x111] sm:$0xff]  ;;  %v5456_v49 = vpack.c.bf16 %v505_v52, %v504_v53 }
  0x81   : > { %4853 = vmatprep.subr.msk.bf16.mxu1 %vm637_vm0, %v5414_v45  ;;  %v5446_v54 = vpack.c.bf16 %v1909_v61, %v1908_v50  ;;  %v1912_v39 = vld [vmem:[#allocation2 + $0x129] sm:$0xff]  ;;  %v1913_v41 = vld [vmem:[#allocation2 + $0x131] sm:$0xff]  ;;  %v5458_v50 = vpack.c.bf16 %v1911_v58, %v1910_v44  ;;  %v5460_v61 = vpack.c.bf16 %v507_v46, %v506_v60  ;;  %v5472_v46 = vpack.c.bf16 %v509_v30, %v508_v31 }
  0x82   : > { %v5462_v43 = vpack.c.bf16 %v1913_v41, %v1912_v39  ;;  %v1915_v44 = vld [vmem:[#allocation2 + $0x151] sm:$0xff]  ;;  %v510_v52 = vld [vmem:[#allocation2 + $0x147] sm:$0xff] }
  0x83   : > { %v511_v53 = vld [vmem:[#allocation2 + $0x14f] sm:$0xff]  ;;  %v5474_v39 = vpack.c.bf16 %v1915_v44, %v1914_v29  ;;  %v514_v30 = vld [vmem:[#allocation2 + $0x187] sm:$0xff] }
  0x84   : > { %v1916_v58 = vld [vmem:[#allocation2 + $0x169] sm:$0xff]  ;;  %v1917_v60 = vld [vmem:[#allocation2 + $0x171] sm:$0xff]  ;;  %v5476_v41 = vpack.c.bf16 %v511_v53, %v510_v52  ;;  %v5488_v53 = vpack.c.bf16 %v513_v26, %v512_v27 }
  0x85   : > { %4295 = vmatmul.mubr.msk.bf16.gmra.mrb[4].mxu1 %vm384_vm1, %v5422_v4  ;;  %v5478_v28 = vpack.c.bf16 %v1917_v60, %v1916_v58  ;;  %v1919_v29 = vld [vmem:[#allocation2 + $0x191] sm:$0xff]  ;;  %v1920_v44 = vld [vmem:[#allocation2 + $0x1a9] sm:$0xff] }
  0x86   : > { %4431 = vmatmul.mubr.msk.bf16.gmra.mrb[4].mxu0 %vm384_vm1, %v5426_v6  ;;  %4298 = vmatprep.mubr.msk.bf16.mxu1 %vm384_vm1, %v5428_v32  ;;  %v515_v31 = vld [vmem:[#allocation2 + $0x18f] sm:$0xff]  ;;  %v5490_v58 = vpack.c.bf16 %v1919_v29, %v1918_v25  ;;  %v518_v26 = vld [vmem:[#allocation2 + $0x1c7] sm:$0xff] }
  0x87   : > { %4434 = vmatprep.mubr.msk.bf16.mxu0 %vm384_vm1, %v5430_v59  ;;  %v1921_v52 = vld [vmem:[#allocation2 + $0x1b1] sm:$0xff]  ;;  %v5492_v60 = vpack.c.bf16 %v515_v31, %v514_v30  ;;  %v1924_v29 = vld [vmem:[#allocation2 + $0x1e9] sm:$0xff]  ;;  %v5504_v31 = vpack.c.bf16 %v517_v22, %v516_v23 }
  0x88   : > { %v5494_v24 = vpack.c.bf16 %v1921_v52, %v1920_v44  ;;  %v1923_v25 = vld [vmem:[#allocation2 + $0x1d1] sm:$0xff]  ;;  %v1014_v22 = vld [vmem:[#allocation2 + $0x9] sm:$0xff] }
  0x89   : > { %v519_v27 = vld [vmem:[#allocation2 + $0x1cf] sm:$0xff]  ;;  %v5506_v44 = vpack.c.bf16 %v1923_v25, %v1922_v21  ;;  %v5520_v25 = vpack.c.bf16 %v521_v18, %v520_v19  ;;  %v2584_v18 = vsel %vm637_vm0, %v5407_v38, 0  ;;  %v3295_v19 = vld [vmem:[%s6288_s2] sm:$0x3] }
  0x8a   : > { %v1925_v30 = vld [vmem:[#allocation2 + $0x1f1] sm:$0xff]  ;;  %v5508_v52 = vpack.c.bf16 %v519_v27, %v518_v26 }
  0x8b   : > { %v5510_v20 = vpack.c.bf16 %v1925_v30, %v1924_v29  ;;  %v1927_v21 = vld [vmem:[#allocation2 + $0x211] sm:$0xff]  ;;  %v1407_v29 = vsel %vm637_vm0, %v5414_v45, 0  ;;  %v2221_v30 = vld [vmem:[#allocation2 + $0x227] sm:$0xff] }
  0x8c   : > { %v1015_v23 = vld [vmem:[#allocation2 + $0x11] sm:$0xff]  ;;  %v5522_v26 = vpack.c.bf16 %v1927_v21, %v1926_v17 }
  0x8d   : > { %4299 = vmatmul.mubr.msk.bf16.gmra.mrb[8].mxu1 %vm384_vm1, %v5440_v3  ;;  %v1046_v27 = vpack.c.bf16 %v1015_v23, %v1014_v22  ;;  %v4046_v17 = vld [vmem:[%s6287_s1 + $0x10] sm:$0x3]  ;;  %v3345_v23 = vsel %vm637_vm0, %v3295_v19, 0 }
  0x8e   : > { %4435 = vmatmul.mubr.msk.bf16.gmra.mrb[8].mxu0 %vm384_vm1, %v5442_v57  ;;  %4302 = vmatprep.mubr.msk.bf16.mxu1 %vm384_vm1, %v5444_v56  ;;  %v2220_v38 = vld [vmem:[#allocation2 + $0x20f] sm:$0xff] }
  0x8f   : > { %4438 = vmatprep.mubr.msk.bf16.mxu0 %vm384_vm1, %v5446_v54  ;;  %v2222_v21 = vld [vmem:[#allocation2 + $0x22f] sm:$0xff] }
  0x90   : > { %v2238_v22 = vpack.c.bf16 %v2222_v21, %v2221_v30 }
  0x95   : > { %4303 = vmatmul.mubr.msk.bf16.gmra.mrb[12].mxu1 %vm384_vm1, %v5456_v49 }
  0x96   : > { %4439 = vmatmul.mubr.msk.bf16.gmra.mrb[12].mxu0 %vm384_vm1, %v5458_v50  ;;  %4306 = vmatprep.mubr.msk.bf16.mxu1 %vm384_vm1, %v5460_v61 }
  0x97   : > { %4442 = vmatprep.mubr.msk.bf16.mxu0 %vm384_vm1, %v5462_v43 }
  0x9d   : > { %4307 = vmatmul.mubr.msk.bf16.gmra.mrb[16].mxu1 %vm384_vm1, %v5472_v46 }
  0x9e   : > { %4443 = vmatmul.mubr.msk.bf16.gmra.mrb[16].mxu0 %vm384_vm1, %v5474_v39  ;;  %4310 = vmatprep.mubr.msk.bf16.mxu1 %vm384_vm1, %v5476_v41 }
  0x9f   : > { %4446 = vmatprep.mubr.msk.bf16.mxu0 %vm384_vm1, %v5478_v28 }
  0xa5   : > { %4311 = vmatmul.mubr.msk.bf16.gmra.mrb[20].mxu1 %vm384_vm1, %v5488_v53 }
  0xa6   : > { %4447 = vmatmul.mubr.msk.bf16.gmra.mrb[20].mxu0 %vm384_vm1, %v5490_v58  ;;  %4314 = vmatprep.mubr.msk.bf16.mxu1 %vm384_vm1, %v5492_v60 }
  0xa7   : > { %4450 = vmatprep.mubr.msk.bf16.mxu0 %vm384_vm1, %v5494_v24 }
  0xad   : > { %4315 = vmatmul.mubr.msk.bf16.gmra.mrb[24].mxu1 %vm384_vm1, %v5504_v31 }
  0xae   : > { %4451 = vmatmul.mubr.msk.bf16.gmra.mrb[24].mxu0 %vm384_vm1, %v5506_v44  ;;  %4318 = vmatprep.mubr.msk.bf16.mxu1 %vm384_vm1, %v5508_v52 }
  0xaf   : > { %4454 = vmatprep.mubr.msk.bf16.mxu0 %vm384_vm1, %v5510_v20 }
  0xb5   : > { %4319 = vmatmul.mubr.msk.bf16.gmra.mrb[28].mxu1 %vm384_vm1, %v5520_v25 }
  0xb6   : > { %4455 = vmatmul.mubr.msk.bf16.gmra.mrb[28].mxu0 %vm384_vm1, %v5522_v26  ;;  %4324 = vmatprep.mubr.msk.bf16.mxu1 %vm384_vm1, %v1046_v27  ;;  %v2878_v27 = vsel %vm637_vm0, %v4046_v17, 0 }
  0xb7   : > { %4460 = vmatprep.mubr.msk.bf16.mxu0 %vm384_vm1, %v5396_v16 }
  0xbd   : > { %4325 = vmatmul.mubr.msk.bf16.vlgmr.msra.gmra.mrb[0].mxu1 %vm384_vm1, %v5381_v37  ;;  %v2219_v37 = vld [vmem:[#allocation2 + $0x207] sm:$0xff] }
  0xbe   : > { %4461 = vmatmul.mubr.msk.bf16.vlgmr.msra.gmra.mrb[0].mxu0 %vm384_vm1, %v5422_v4  ;;  %4357 = vmatpush3.bf16.msra.mxu1 %v1407_v29  ;;  %v2237_v45 = vpack.c.bf16 %v2220_v38, %v2219_v37 }
  0xbf   : > { %4493 = vmatpush3.bf16.msra.mxu0 %v2584_v18  ;;  %4328 = vmatprep.mubr.msk.bf16.mxu1 %vm384_vm1, %v5392_v5 }
  0xc0   : > { %4464 = vmatprep.mubr.msk.bf16.mxu0 %vm384_vm1, %v5428_v32  ;;  %4858 = vmatprep.subr.msk.bf16.mxu0 %vm637_vm0, %v4046_v17 }
  0xc1   : > { %4859 = vmatprep.subr.msk.bf16.mxu1 %vm637_vm0, %v3295_v19 }
  0xc5   : > { %4329 = vmatmul.mubr.msk.bf16.gmra.mrb[4].mxu1 %vm384_vm1, %v5400_v34 }
  0xc6   : > { %4465 = vmatmul.mubr.msk.bf16.gmra.mrb[4].mxu0 %vm384_vm1, %v5440_v3  ;;  %4332 = vmatprep.mubr.msk.bf16.mxu1 %vm384_vm1, %v5426_v6 }
  0xc7   : > { %4468 = vmatprep.mubr.msk.bf16.mxu0 %vm384_vm1, %v5444_v56 }
  0xcd   : > { %4333 = vmatmul.mubr.msk.bf16.gmra.mrb[8].mxu1 %vm384_vm1, %v5430_v59 }
  0xce   : > { %4469 = vmatmul.mubr.msk.bf16.gmra.mrb[8].mxu0 %vm384_vm1, %v5456_v49  ;;  %4336 = vmatprep.mubr.msk.bf16.mxu1 %vm384_vm1, %v5442_v57 }
  0xcf   : > { %4472 = vmatprep.mubr.msk.bf16.mxu0 %vm384_vm1, %v5460_v61 }
  0xd5   : > { %4337 = vmatmul.mubr.msk.bf16.gmra.mrb[12].mxu1 %vm384_vm1, %v5446_v54 }
  0xd6   : > { %4473 = vmatmul.mubr.msk.bf16.gmra.mrb[12].mxu0 %vm384_vm1, %v5472_v46  ;;  %4340 = vmatprep.mubr.msk.bf16.mxu1 %vm384_vm1, %v5458_v50 }
  0xd7   : > { %4476 = vmatprep.mubr.msk.bf16.mxu0 %vm384_vm1, %v5476_v41 }
  0xdd   : > { %4341 = vmatmul.mubr.msk.bf16.gmra.mrb[16].mxu1 %vm384_vm1, %v5462_v43 }
  0xde   : > { %4477 = vmatmul.mubr.msk.bf16.gmra.mrb[16].mxu0 %vm384_vm1, %v5488_v53  ;;  %4344 = vmatprep.mubr.msk.bf16.mxu1 %vm384_vm1, %v5474_v39 }
  0xdf   : > { %4480 = vmatprep.mubr.msk.bf16.mxu0 %vm384_vm1, %v5492_v60 }
  0xe5   : > { %4345 = vmatmul.mubr.msk.bf16.gmra.mrb[20].mxu1 %vm384_vm1, %v5478_v28 }
  0xe6   : > { %4481 = vmatmul.mubr.msk.bf16.gmra.mrb[20].mxu0 %vm384_vm1, %v5504_v31  ;;  %4348 = vmatprep.mubr.msk.bf16.mxu1 %vm384_vm1, %v5490_v58 }
  0xe7   : > { %4484 = vmatprep.mubr.msk.bf16.mxu0 %vm384_vm1, %v5508_v52 }
  0xed   : > { %4349 = vmatmul.mubr.msk.bf16.gmra.mrb[24].mxu1 %vm384_vm1, %v5494_v24 }
  0xee   : > { %4485 = vmatmul.mubr.msk.bf16.gmra.mrb[24].mxu0 %vm384_vm1, %v5520_v25  ;;  %4352 = vmatprep.mubr.msk.bf16.mxu1 %vm384_vm1, %v5506_v44 }
  0xef   : > { %4488 = vmatprep.mubr.msk.bf16.mxu0 %vm384_vm1, %v2237_v45 }
  0xf5   : > { %4353 = vmatmul.mubr.msk.bf16.gmra.mrb[28].mxu1 %vm384_vm1, %v5510_v20 }
  0xf6   : > { %4489 = vmatmul.mubr.msk.bf16.gmra.mrb[28].mxu0 %vm384_vm1, %v2238_v22  ;;  %4358 = vmatprep.mubr.msk.bf16.mxu1 %vm384_vm1, %v5390_v62  ;;  %v6359_v62 = vld [vmem:[#allocation16_spill] sm:$0xff] }
  0xf7   : > { %4494 = vmatprep.mubr.msk.bf16.mxu0 %vm384_vm1, %v5229_v40  ;;  %v2515_v40 = vld [vmem:[#allocation2 + $0x228] sm:$0xff] }
  0xfd   : > { %4359 = vmatmul.mubr.msk.bf16.vlgmr.msra.gmra.mrb[0].mxu1 %vm384_vm1, %v5396_v16 }
  0xfe   : > { %4495 = vmatmul.mubr.msk.bf16.vlgmr.msra.gmra.mrb[0].mxu0 %vm384_vm1, %v5233_v42  ;;  %4561 = vmatpush3.bf16.msra.mxu1 %v3345_v23  ;;  %v2516_v42 = vld [vmem:[#allocation2 + $0x230] sm:$0xff] }
  0xff   : > { %4527 = vmatpush3.bf16.msra.mxu0 %v2878_v27  ;;  %4362 = vmatprep.mubr.msk.bf16.mxu1 %vm384_vm1, %v5422_v4 }
 0x100   : > { %4498 = vmatprep.mubr.msk.bf16.mxu0 %vm384_vm1, %v5267_v51  ;;  %v2532_v51 = vpack.c.bf16 %v2516_v42, %v2515_v40 }
 0x105   : > { %4363 = vmatmul.mubr.msk.bf16.gmra.mrb[4].mxu1 %vm384_vm1, %v5428_v32  ;;  %v6364_v32 = vld [vmem:[#allocation21_spill] sm:$0xff] }
 0x106   : > { %4499 = vmatmul.mubr.msk.bf16.gmra.mrb[4].mxu0 %vm384_vm1, %v5278_v55  ;;  %4366 = vmatprep.mubr.msk.bf16.mxu1 %vm384_vm1, %v5440_v3  ;;  %v3279_v55 = vpack.c.bf16 %v5121_v8, %v5118_v7  ;;  %v6346_v7 = vld [vmem:[#allocation3_spill] sm:$0xff] }
 0x107   : > { %4502 = vmatprep.mubr.msk.bf16.mxu0 %vm384_vm1, %v5319_v1  ;;  %v3281_v1 = vpack.c.bf16 %v5139_v12, %v5136_v11  ;;  %v3282_v8 = vpack.c.bf16 %v6346_v7, %v5148_v15  ;;  %v6351_v12 = vld [vmem:[#allocation8_spill] sm:$0xff]  ;;  %v6353_v15 = vld [vmem:[#allocation10_spill] sm:$0xff] }
 0x10d   : > { %4367 = vmatmul.mubr.msk.bf16.gmra.mrb[8].mxu1 %vm384_vm1, %v5444_v56  ;;  %v3280_v56 = vpack.c.bf16 %v5131_v10, %v5124_v9  ;;  %v6349_v9 = vld [vmem:[#allocation6_spill] sm:$0xff]  ;;  %v6350_v10 = vld [vmem:[#allocation7_spill] sm:$0xff] }
 0x10e   : > { %4503 = vmatmul.mubr.msk.bf16.gmra.mrb[8].mxu0 %vm384_vm1, %v5321_v2  ;;  %4370 = vmatprep.mubr.msk.bf16.mxu1 %vm384_vm1, %v5456_v49  ;;  %v6347_v2 = vld [vmem:[#allocation4_spill] sm:$0xff]  ;;  %v3284_v11 = vpack.c.bf16 %v6350_v10, %v6349_v9  ;;  %v6366_v49 = vld [vmem:[#allocation23_spill] sm:$0xff] }
 0x10f   : > { %4506 = vmatprep.mubr.msk.bf16.mxu0 %vm384_vm1, %v5331_v13  ;;  %v6348_v13 = vld [vmem:[#allocation5_spill] sm:$0xff] }
 0x115   : > { %4371 = vmatmul.mubr.msk.bf16.gmra.mrb[12].mxu1 %vm384_vm1, %v5460_v61  ;;  %v6367_v61 = vld [vmem:[#allocation24_spill] sm:$0xff] }
 0x116   : > { %4507 = vmatmul.mubr.msk.bf16.gmra.mrb[12].mxu0 %vm384_vm1, %v5333_v14  ;;  %4374 = vmatprep.mubr.msk.bf16.mxu1 %vm384_vm1, %v5472_v46  ;;  %v3283_v14 = vpack.c.bf16 %v6348_v13, %v6347_v2  ;;  %v6368_v46 = vld [vmem:[#allocation25_spill] sm:$0xff] }
 0x117   : > { %4510 = vmatprep.mubr.msk.bf16.mxu0 %vm384_vm1, %v5343_v35  ;;  %v6352_v35 = vld [vmem:[#allocation9_spill] sm:$0xff] }
 0x11d   : > { %4375 = vmatmul.mubr.msk.bf16.gmra.mrb[16].mxu1 %vm384_vm1, %v5476_v41  ;;  %v2810_v41 = vld [vmem:[#allocation2 + $0x231] sm:$0xff] }
 0x11e   : > { %4511 = vmatmul.mubr.msk.bf16.gmra.mrb[16].mxu0 %vm384_vm1, %v5345_v36  ;;  %4378 = vmatprep.mubr.msk.bf16.mxu1 %vm384_vm1, %v5488_v53  ;;  %v3285_v36 = vpack.c.bf16 %v6352_v35, %v6351_v12  ;;  %v6369_v53 = vld [vmem:[#allocation26_spill] sm:$0xff] }
 0x11f   : > { %4514 = vmatprep.mubr.msk.bf16.mxu0 %vm384_vm1, %v5355_v47 }
 0x125   : > { %4379 = vmatmul.mubr.msk.bf16.gmra.mrb[20].mxu1 %vm384_vm1, %v5492_v60 }
 0x126   : > { %4515 = vmatmul.mubr.msk.bf16.gmra.mrb[20].mxu0 %vm384_vm1, %v5357_v48  ;;  %4382 = vmatprep.mubr.msk.bf16.mxu1 %vm384_vm1, %v5504_v31  ;;  %v6356_v48 = vld [vmem:[#allocation13_spill] sm:$0xff] }
 0x127   : > { %4518 = vmatprep.mubr.msk.bf16.mxu0 %vm384_vm1, %v5367_v63 }
 0x12d   : > { %4383 = vmatmul.mubr.msk.bf16.gmra.mrb[24].mxu1 %vm384_vm1, %v5508_v52 }
 0x12e   : > { %4519 = vmatmul.mubr.msk.bf16.gmra.mrb[24].mxu0 %vm384_vm1, %v5369_v0  ;;  %4386 = vmatprep.mubr.msk.bf16.mxu1 %vm384_vm1, %v5520_v25  ;;  %v6358_v0 = vld [vmem:[#allocation15_spill] sm:$0xff] }
 0x12f   : > { %4522 = vmatprep.mubr.msk.bf16.mxu0 %vm384_vm1, %v5379_v33 }
 0x135   : > { %4387 = vmatmul.mubr.msk.bf16.gmra.mrb[28].mxu1 %vm384_vm1, %v2237_v45 }
 0x136   : > { %4523 = vmatmul.mubr.msk.bf16.gmra.mrb[28].mxu0 %vm384_vm1, %v2532_v51  ;;  %4562 = vmatprep.mubr.msk.bf16.mxu1 %vm384_vm1, %v3279_v55 }
 0x137   : > { %4528 = vmatprep.mubr.msk.bf16.mxu0 %vm384_vm1, %v5392_v5  ;;  %v6360_v5 = vld [vmem:[#allocation17_spill] sm:$0xff] }
 0x138   : > { %v3289_v16 = vpack.c.bf16 %v6360_v5, %v6359_v62 }
 0x13d   : > { %4563 = vmatmul.mubr.msk.bf16.vlgmr.msra.gmra.mrb[32].mxu1 %vm384_vm1, %v3280_v56 }
 0x13e   : > { %4529 = vmatmul.mubr.msk.bf16.vlgmr.msra.gmra.mrb[0].mxu0 %vm384_vm1, %v5400_v34  ;;  %4566 = vmatprep.mubr.msk.bf16.mxu1 %vm384_vm1, %v3281_v1  ;;  %v6362_v34 = vld [vmem:[#allocation19_spill] sm:$0xff] }
 0x13f   : > { %4532 = vmatprep.mubr.msk.bf16.mxu0 %vm384_vm1, %v5426_v6  ;;  %v6363_v6 = vld [vmem:[#allocation20_spill] sm:$0xff] }
 0x140   : > { %v3291_v3 = vpack.c.bf16 %v6364_v32, %v6363_v6 }
 0x145   : > { %4567 = vmatmul.mubr.msk.bf16.gmra.mrb[36].mxu1 %vm384_vm1, %v3282_v8 }
 0x146   : > { %4533 = vmatmul.mubr.msk.bf16.gmra.mrb[4].mxu0 %vm384_vm1, %v5430_v59  ;;  %4570 = vmatprep.mubr.msk.bf16.mxu1 %vm384_vm1, %v3283_v14  ;;  %v6354_v59 = vld [vmem:[#allocation11_spill] sm:$0xff] }
 0x147   : > { %4536 = vmatprep.mubr.msk.bf16.mxu0 %vm384_vm1, %v5442_v57  ;;  %v3286_v47 = vpack.c.bf16 %v6354_v59, %v6353_v15  ;;  %v6355_v57 = vld [vmem:[#allocation12_spill] sm:$0xff] }
 0x148   : > { %v3287_v63 = vpack.c.bf16 %v6356_v48, %v6355_v57 }
 0x14d   : > { %4571 = vmatmul.mubr.msk.bf16.gmra.mrb[40].mxu1 %vm384_vm1, %v3284_v11 }
 0x14e   : > { %4537 = vmatmul.mubr.msk.bf16.gmra.mrb[8].mxu0 %vm384_vm1, %v5446_v54  ;;  %4574 = vmatprep.mubr.msk.bf16.mxu1 %vm384_vm1, %v3285_v36  ;;  %v6357_v54 = vld [vmem:[#allocation14_spill] sm:$0xff] }
 0x14f   : > { %4540 = vmatprep.mubr.msk.bf16.mxu0 %vm384_vm1, %v5458_v50  ;;  %v3288_v33 = vpack.c.bf16 %v6358_v0, %v6357_v54 }
 0x155   : > { %4575 = vmatmul.mubr.msk.bf16.gmra.mrb[44].mxu1 %vm384_vm1, %v3286_v47 }
 0x156   : > { %4541 = vmatmul.mubr.msk.bf16.gmra.mrb[12].mxu0 %vm384_vm1, %v5462_v43  ;;  %4578 = vmatprep.mubr.msk.bf16.mxu1 %vm384_vm1, %v3287_v63  ;;  %v6361_v43 = vld [vmem:[#allocation18_spill] sm:$0xff] }
 0x157   : > { %4544 = vmatprep.mubr.msk.bf16.mxu0 %vm384_vm1, %v5474_v39  ;;  %v3290_v4 = vpack.c.bf16 %v6362_v34, %v6361_v43  ;;  %v3293_v39 = vpack.c.bf16 %v6368_v46, %v6367_v61 }
 0x15d   : > { %4579 = vmatmul.mubr.msk.bf16.gmra.mrb[48].mxu1 %vm384_vm1, %v3288_v33 }
 0x15e   : > { %4545 = vmatmul.mubr.msk.bf16.gmra.mrb[16].mxu0 %vm384_vm1, %v5478_v28  ;;  %4582 = vmatprep.mubr.msk.bf16.mxu1 %vm384_vm1, %v3289_v16  ;;  %v6365_v28 = vld [vmem:[#allocation22_spill] sm:$0xff] }
 0x15f   : > { %4548 = vmatprep.mubr.msk.bf16.mxu0 %vm384_vm1, %v5490_v58  ;;  %v3292_v50 = vpack.c.bf16 %v6366_v49, %v6365_v28  ;;  %v6370_v58 = vld [vmem:[#allocation27_spill] sm:$0xff] }
 0x160   : > { %v3294_v60 = vpack.c.bf16 %v6370_v58, %v6369_v53 }
 0x165   : > { %4583 = vmatmul.mubr.msk.bf16.gmra.mrb[52].mxu1 %vm384_vm1, %v3290_v4 }
 0x166   : > { %4549 = vmatmul.mubr.msk.bf16.gmra.mrb[20].mxu0 %vm384_vm1, %v5494_v24  ;;  %4586 = vmatprep.mubr.msk.bf16.mxu1 %vm384_vm1, %v3291_v3  ;;  %v2809_v24 = vld [vmem:[#allocation2 + $0x229] sm:$0xff] }
 0x167   : > { %4552 = vmatprep.mubr.msk.bf16.mxu0 %vm384_vm1, %v5506_v44  ;;  %v2826_v31 = vpack.c.bf16 %v2810_v41, %v2809_v24 }
 0x16d   : > { %4587 = vmatmul.mubr.msk.bf16.gmra.mrb[56].mxu1 %vm384_vm1, %v3292_v50 }
 0x16e   : > { %4553 = vmatmul.mubr.msk.bf16.gmra.mrb[24].mxu0 %vm384_vm1, %v5510_v20  ;;  %4590 = vmatprep.mubr.msk.bf16.mxu1 %vm384_vm1, %v3293_v39 }
 0x16f   : > { %4556 = vmatprep.mubr.msk.bf16.mxu0 %vm384_vm1, %v5522_v26 }
 0x175   : > { %4591 = vmatmul.mubr.msk.bf16.gmra.mrb[60].mxu1 %vm384_vm1, %v3294_v60 }
 0x176   : > { %4557 = vmatmul.mubr.msk.bf16.gmra.mrb[28].mxu0 %vm384_vm1, %v2826_v31 }
 0x1d0   : > { %v4360_v44 = vpop.f32.mrb[0].mxu1 }
 0x1d1   : > { %v1443_v52 = vpop.f32.mrb[1].mxu1 }
 0x1d2   : > { %v4361_v25 = vpop.f32.mrb[2].mxu1 }
 0x1d3   : > { %v5744_v29 = vpop.f32.mrb[3].mxu1 }
 0x1d8   : > { %v5746_v20 = vpop.f32.mrb[4].mxu1 }
 0x1d9   : > { %v5748_v18 = vpop.f32.mrb[5].mxu1 }
 0x1da   : > { %v5750_v26 = vpop.f32.mrb[6].mxu1 }
 0x1db   : > { %v5752_v17 = vpop.f32.mrb[7].mxu1 }
 0x1e0   : > { %v5754_v19 = vpop.f32.mrb[8].mxu1 }
 0x1e1   : > { %v5756_v37 = vpop.f32.mrb[9].mxu1 }
 0x1e2   : > { %v5758_v38 = vpop.f32.mrb[10].mxu1 }
 0x1e3   : > { %v5760_v45 = vpop.f32.mrb[11].mxu1 }
 0x1e8   : > { %v5762_v30 = vpop.f32.mrb[12].mxu1 }
 0x1e9   : > { %v5764_v21 = vpop.f32.mrb[13].mxu1 }
 0x1ea   : > { %v5766_v22 = vpop.f32.mrb[14].mxu1 }
 0x1eb   : > { %v5768_v23 = vpop.f32.mrb[15].mxu1 }
 0x1f0   : > { %v5770_v27 = vpop.f32.mrb[16].mxu1 }
 0x1f1   : > { %v5772_v40 = vpop.f32.mrb[17].mxu1 }
 0x1f2   : > { %v5774_v42 = vpop.f32.mrb[18].mxu1 }
 0x1f3   : > { %v5776_v51 = vpop.f32.mrb[19].mxu1 }
 0x1f8   : > { %v5778_v55 = vpop.f32.mrb[20].mxu1 }
 0x1f9   : > { %v5780_v56 = vpop.f32.mrb[21].mxu1 }
 0x1fa   : > { %v5782_v1 = vpop.f32.mrb[22].mxu1 }
 0x1fb   : > { %v5784_v7 = vpop.f32.mrb[23].mxu1 }
 0x200   : > { %v5786_v8 = vpop.f32.mrb[24].mxu1 }
 0x201   : > { %v5788_v2 = vpop.f32.mrb[25].mxu1 }
 0x202   : > { %v5790_v13 = vpop.f32.mrb[26].mxu1 }
 0x203   : > { %v5792_v14 = vpop.f32.mrb[27].mxu1 }
 0x208   : > { %v5794_v9 = vpop.f32.mrb[28].mxu1 }
 0x209   : > { %v5796_v10 = vpop.f32.mrb[29].mxu1 }
 0x20a   : > { %v5798_v11 = vpop.f32.mrb[30].mxu1 }
 0x20b   : > { %v5800_v12 = vpop.f32.mrb[31].mxu1 }
 0x210   : > { %v4564_v35 = vpop.f32.mrb[32].mxu1 }
 0x211   : > { %3510 = vst.msk [vmem:[%s5806_s14 + $0x10] sm:$0xff] %vm3073_vm2, %v4564_v35  ;;  %v4530_v36 = vpop.f32.mrb[0].mxu0  ;;  %v3381_v15 = vpop.f32.mrb[33].mxu1  ;;  %v3612_v59 = vmul.f32 %v4564_v35, %v4564_v35  ;;  %v3543_v34 = vsel %vm3073_vm2, %v4564_v35, 0.0 }
 0x212   : > { %v4594_v47 = vadd.f32 %v4530_v36, %v4360_v44  ;;  %3508 = vst.msk [vmem:[%s5806_s14] sm:$0xff] %vm3073_vm2, %v3381_v15  ;;  %v2914_v57 = vpop.f32.mrb[1].mxu0  ;;  %v4565_v48 = vpop.f32.mrb[34].mxu1  ;;  %v3540_v63 = vsel %vm3073_vm2, %v3381_v15, 0.0  ;;  %v3610_v54 = vmul.f32 %v3381_v15, %v3381_v15 }
 0x213   : > { %v4595_v0 = vadd.f32 %v2914_v57, %v1443_v52  ;;  %3511 = vst.msk [vmem:[%s5806_s14 + $0x18] sm:$0xff] %vm3073_vm2, %v4565_v48  ;;  %v4531_v33 = vpop.f32.mrb[2].mxu0  ;;  %v3384_v62 = vpop.f32.mrb[35].mxu1  ;;  %v3613_v5 = vmul.f32 %v4565_v48, %v4565_v48  ;;  %v3645_v6 = vsel %vm3073_vm2, %v3612_v59, 0.0  ;;  %v3545_v3 = vsel %vm3073_vm2, %v4565_v48, 0.0 }
 0x214   : > { %3076 = vst.msk [vmem:[%s5814_s18 + $0x10] sm:$0xff] %vm3073_vm2, %v4594_v47  ;;  %v4596_v16 = vadd.f32 %v4531_v33, %v4361_v25  ;;  %3509 = vst.msk [vmem:[%s5806_s14 + $0x8] sm:$0xff] %vm3073_vm2, %v3384_v62  ;;  %v2917_v43 = vpop.f32.mrb[3].mxu0  ;;  %v3541_v4 = vsel %vm3073_vm2, %v3384_v62, 0.0  ;;  %v3109_v49 = vsel %vm3073_vm2, %v4594_v47, 0.0  ;;  %v3642_v50 = vsel %vm3073_vm2, %v3610_v54, 0.0 }
 0x215   : > { %3074 = vst.msk [vmem:[%s5814_s18] sm:$0xff] %vm3073_vm2, %v4595_v0  ;;  %v3177_v32 = vmul.f32 %v4595_v0, %v4595_v0  ;;  %v3542_v28 = vadd.f32 %v3541_v4, %v3540_v63  ;;  %v3611_v61 = vmul.f32 %v3384_v62, %v3384_v62  ;;  %v4597_v46 = vadd.f32 %v2917_v43, %v5744_v29 }
 0x216   : > { %3077 = vst.msk [vmem:[%s5814_s18 + $0x18] sm:$0xff] %vm3073_vm2, %v4596_v16  ;;  %v3179_v39 = vmul.f32 %v4594_v47, %v4594_v47  ;;  %v3106_v24 = vsel %vm3073_vm2, %v4595_v0, 0.0  ;;  %v3647_v41 = vsel %vm3073_vm2, %v3613_v5, 0.0  ;;  %v3180_v60 = vmul.f32 %v4596_v16, %v4596_v16 }
 0x217   : > { %v3544_v53 = vadd.f32 %v3543_v34, %v3542_v28  ;;  %v3643_v31 = vsel %vm3073_vm2, %v3611_v61, 0.0  ;;  %3075 = vst.msk [vmem:[%s5814_s18 + $0x8] sm:$0xff] %vm3073_vm2, %v4597_v46  ;;  %v3107_v44 = vsel %vm3073_vm2, %v4597_v46, 0.0  ;;  %v3178_v52 = vmul.f32 %v4597_v46, %v4597_v46 }
 0x218   : > { %v4568_v58 = vpop.f32.mrb[36].mxu1  ;;  %v3209_v35 = vsel %vm3073_vm2, %v3177_v32, 0.0  ;;  %v3644_v36 = vadd.f32 %v3643_v31, %v3642_v50  ;;  %v3108_v15 = vadd.f32 %v3107_v44, %v3106_v24  ;;  %v3212_v5 = vsel %vm3073_vm2, %v3179_v39, 0.0 }
 0x219   : > { %3514 = vst.msk [vmem:[%s5806_s14 + $0x30] sm:$0xff] %vm3073_vm2, %v4568_v58  ;;  %v4534_v25 = vpop.f32.mrb[4].mxu0  ;;  %v3397_v29 = vpop.f32.mrb[37].mxu1  ;;  %v3210_v48 = vsel %vm3073_vm2, %v3178_v52, 0.0  ;;  %v3546_v63 = vadd.f32 %v3545_v3, %v3544_v53  ;;  %v3111_v32 = vsel %vm3073_vm2, %v4596_v16, 0.0  ;;  %v3616_v3 = vmul.f32 %v4568_v58, %v4568_v58 }
 0x21a   : > { %v4598_v59 = vadd.f32 %v4534_v25, %v5746_v20  ;;  %3512 = vst.msk [vmem:[%s5806_s14 + $0x20] sm:$0xff] %vm3073_vm2, %v3397_v29  ;;  %v2930_v47 = vpop.f32.mrb[5].mxu0  ;;  %v4569_v57 = vpop.f32.mrb[38].mxu1  ;;  %v3547_v54 = vsel %vm3073_vm2, %v3397_v29, 0.0  ;;  %v3614_v0 = vmul.f32 %v3397_v29, %v3397_v29  ;;  %v3646_v43 = vadd.f32 %v3645_v6, %v3644_v36 }
 0x21b   : > { %3515 = vst.msk [vmem:[%s5806_s14 + $0x38] sm:$0xff] %vm3073_vm2, %v4569_v57  ;;  %v4535_v33 = vpop.f32.mrb[6].mxu0  ;;  %v3400_v62 = vpop.f32.mrb[39].mxu1  ;;  %v3110_v34 = vadd.f32 %v3109_v49, %v3108_v15  ;;  %v3211_v20 = vadd.f32 %v3210_v48, %v3209_v35  ;;  %v3548_v28 = vadd.f32 %v3547_v54, %v3546_v63  ;;  %v4599_v24 = vadd.f32 %v2930_v47, %v5748_v18 }
 0x21c   : > { %3080 = vst.msk [vmem:[%s5814_s18 + $0x30] sm:$0xff] %vm3073_vm2, %v4598_v59  ;;  %3513 = vst.msk [vmem:[%s5806_s14 + $0x28] sm:$0xff] %vm3073_vm2, %v3400_v62  ;;  %v2933_v4 = vpop.f32.mrb[7].mxu0  ;;  %v3649_v50 = vsel %vm3073_vm2, %v3614_v0, 0.0  ;;  %v3648_v46 = vadd.f32 %v3647_v41, %v3646_v43  ;;  %v3214_v49 = vsel %vm3073_vm2, %v3180_v60, 0.0  ;;  %v3551_v39 = vsel %vm3073_vm2, %v4568_v58, 0.0 }
 0x21d   : > { %v3213_v61 = vadd.f32 %v3212_v5, %v3211_v20  ;;  %v3112_v6 = vadd.f32 %v3111_v32, %v3110_v34  ;;  %v3183_v53 = vmul.f32 %v4598_v59, %v4598_v59  ;;  %v4600_v31 = vadd.f32 %v4535_v33, %v5750_v26  ;;  %3078 = vst.msk [vmem:[%s5814_s18 + $0x20] sm:$0xff] %vm3073_vm2, %v4599_v24 }
 0x21e   : > { %v3650_v44 = vadd.f32 %v3649_v50, %v3648_v46  ;;  %v3113_v16 = vsel %vm3073_vm2, %v4599_v24, 0.0  ;;  %v3181_v52 = vmul.f32 %v4599_v24, %v4599_v24  ;;  %v3653_v18 = vsel %vm3073_vm2, %v3616_v3, 0.0 }
 0x21f   : > { %v3215_v41 = vadd.f32 %v3214_v49, %v3213_v61  ;;  %v3117_v29 = vsel %vm3073_vm2, %v4598_v59, 0.0  ;;  %v3114_v35 = vadd.f32 %v3113_v16, %v3112_v6  ;;  %v3617_v60 = vmul.f32 %v4569_v57, %v4569_v57  ;;  %3081 = vst.msk [vmem:[%s5814_s18 + $0x38] sm:$0xff] %vm3073_vm2, %v4600_v31 }
 0x220   : > { %v4572_v25 = vpop.f32.mrb[40].mxu1  ;;  %v3216_v36 = vsel %vm3073_vm2, %v3181_v52, 0.0  ;;  %v3549_v15 = vsel %vm3073_vm2, %v3400_v62, 0.0  ;;  %v3615_v47 = vmul.f32 %v3400_v62, %v3400_v62  ;;  %v4601_v48 = vadd.f32 %v2933_v4, %v5752_v17 }
 0x221   : > { %3518 = vst.msk [vmem:[%s5806_s14 + $0x50] sm:$0xff] %vm3073_vm2, %v4572_v25  ;;  %v4538_v26 = vpop.f32.mrb[8].mxu0  ;;  %v3413_v58 = vpop.f32.mrb[41].mxu1  ;;  %v3220_v54 = vsel %vm3073_vm2, %v3183_v53, 0.0  ;;  %v3217_v0 = vadd.f32 %v3216_v36, %v3215_v41  ;;  %v3553_v33 = vsel %vm3073_vm2, %v4569_v57, 0.0  ;;  %v3550_v5 = vadd.f32 %v3549_v15, %v3548_v28 }
 0x222   : > { %3516 = vst.msk [vmem:[%s5806_s14 + $0x40] sm:$0xff] %vm3073_vm2, %v3413_v58  ;;  %v2946_v59 = vpop.f32.mrb[9].mxu0  ;;  %v5877_v63 = vpop.f32.mrb[42].mxu1  ;;  %v3184_v62 = vmul.f32 %v4600_v31, %v4600_v31  ;;  %v3651_v17 = vsel %vm3073_vm2, %v3615_v47, 0.0  ;;  %3079 = vst.msk [vmem:[%s5814_s18 + $0x28] sm:$0xff] %vm3073_vm2, %v4601_v48  ;;  %v3115_v20 = vsel %vm3073_vm2, %v4601_v48, 0.0  ;;  %v3182_v4 = vmul.f32 %v4601_v48, %v4601_v48 }
 0x223   : > { %3519 = vst.msk [vmem:[%s5806_s14 + $0x58] sm:$0xff] %vm3073_vm2, %v5877_v63  ;;  %v4539_v43 = vpop.f32.mrb[10].mxu0  ;;  %v3416_v34 = vpop.f32.mrb[43].mxu1  ;;  %v3552_v3 = vadd.f32 %v3551_v39, %v3550_v5  ;;  %v3652_v57 = vadd.f32 %v3651_v17, %v3650_v44  ;;  %v3116_v28 = vadd.f32 %v3115_v20, %v3114_v35  ;;  %v4602_v50 = vadd.f32 %v4538_v26, %v5754_v19 }
 0x224   : > { %3517 = vst.msk [vmem:[%s5806_s14 + $0x48] sm:$0xff] %vm3073_vm2, %v3416_v34  ;;  %v2949_v32 = vpop.f32.mrb[11].mxu0  ;;  %v3655_v61 = vsel %vm3073_vm2, %v3617_v60, 0.0  ;;  %v3119_v46 = vsel %vm3073_vm2, %v4600_v31, 0.0  ;;  %v3218_v24 = vsel %vm3073_vm2, %v3182_v4, 0.0  ;;  %v3618_v6 = vmul.f32 %v3413_v58, %v3413_v58 }
 0x225   : > { %v3654_v49 = vadd.f32 %v3653_v18, %v3652_v57  ;;  %v3118_v53 = vadd.f32 %v3117_v29, %v3116_v28  ;;  %v3219_v16 = vadd.f32 %v3218_v24, %v3217_v0  ;;  %3084 = vst.msk [vmem:[%s5814_s18 + $0x50] sm:$0xff] %vm3073_vm2, %v4602_v50  ;;  %v3555_v39 = vsel %vm3073_vm2, %v3413_v58, 0.0 }
 0x226   : > { %v3222_v44 = vsel %vm3073_vm2, %v3184_v62, 0.0  ;;  %v3554_v52 = vadd.f32 %v3553_v33, %v3552_v3  ;;  %v3657_v19 = vsel %vm3073_vm2, %v3618_v6, 0.0  ;;  %v4603_v31 = vadd.f32 %v2946_v59, %v5756_v37 }
 0x227   : > { %v3221_v35 = vadd.f32 %v3220_v54, %v3219_v16  ;;  %v3620_v60 = vmul.f32 %v4572_v25, %v4572_v25  ;;  %v3656_v18 = vadd.f32 %v3655_v61, %v3654_v49  ;;  %v3120_v29 = vadd.f32 %v3119_v46, %v3118_v53 }
 0x228   : > { %v5900_v41 = vpop.f32.mrb[44].mxu1  ;;  %v3559_v36 = vsel %vm3073_vm2, %v4572_v25, 0.0  ;;  %v3556_v15 = vadd.f32 %v3555_v39, %v3554_v52  ;;  %3082 = vst.msk [vmem:[%s5814_s18 + $0x40] sm:$0xff] %vm3073_vm2, %v4603_v31  ;;  %v3121_v47 = vsel %vm3073_vm2, %v4603_v31, 0.0  ;;  %v3185_v37 = vmul.f32 %v4603_v31, %v4603_v31 }
 0x229   : > { %3522 = vst.msk [vmem:[%s5806_s14 + $0x70] sm:$0xff] %vm3073_vm2, %v5900_v41  ;;  %v4542_v26 = vpop.f32.mrb[12].mxu0  ;;  %v3429_v58 = vpop.f32.mrb[45].mxu1  ;;  %v3187_v54 = vmul.f32 %v4602_v50, %v4602_v50  ;;  %v3658_v0 = vadd.f32 %v3657_v19, %v3656_v18  ;;  %v3122_v33 = vadd.f32 %v3121_v47, %v3120_v29  ;;  %v3223_v5 = vadd.f32 %v3222_v44, %v3221_v35 }
 0x22a   : > { %3520 = vst.msk [vmem:[%s5806_s14 + $0x60] sm:$0xff] %vm3073_vm2, %v3429_v58  ;;  %v2962_v48 = vpop.f32.mrb[13].mxu0  ;;  %v5911_v59 = vpop.f32.mrb[46].mxu1  ;;  %v3224_v17 = vsel %vm3073_vm2, %v3185_v37, 0.0  ;;  %v4604_v20 = vadd.f32 %v4539_v43, %v5758_v38  ;;  %v3557_v4 = vsel %vm3073_vm2, %v3416_v34, 0.0  ;;  %v3619_v3 = vmul.f32 %v3416_v34, %v3416_v34 }
 0x22b   : > { %3523 = vst.msk [vmem:[%s5806_s14 + $0x78] sm:$0xff] %vm3073_vm2, %v5911_v59  ;;  %v4543_v25 = vpop.f32.mrb[14].mxu0  ;;  %v5916_v62 = vpop.f32.mrb[47].mxu1  ;;  %v3661_v28 = vsel %vm3073_vm2, %v3620_v60, 0.0  ;;  %v3225_v61 = vadd.f32 %v3224_v17, %v3223_v5  ;;  %v3558_v46 = vadd.f32 %v3557_v4, %v3556_v15  ;;  %v4605_v24 = vadd.f32 %v2949_v32, %v5760_v45 }
 0x22c   : > { %3521 = vst.msk [vmem:[%s5806_s14 + $0x68] sm:$0xff] %vm3073_vm2, %v5916_v62  ;;  %v5924_v57 = vpop.f32.mrb[15].mxu0  ;;  %v3125_v6 = vsel %vm3073_vm2, %v4602_v50, 0.0  ;;  %v3561_v38 = vsel %vm3073_vm2, %v5877_v63, 0.0  ;;  %v3621_v43 = vmul.f32 %v5877_v63, %v5877_v63  ;;  %3085 = vst.msk [vmem:[%s5814_s18 + $0x58] sm:$0xff] %vm3073_vm2, %v4604_v20  ;;  %v3659_v34 = vsel %vm3073_vm2, %v3619_v3, 0.0 }
 0x22d   : > { %v3560_v49 = vadd.f32 %v3559_v36, %v3558_v46  ;;  %v3660_v53 = vadd.f32 %v3659_v34, %v3658_v0  ;;  %3083 = vst.msk [vmem:[%s5814_s18 + $0x48] sm:$0xff] %vm3073_vm2, %v4605_v24  ;;  %v3123_v16 = vsel %vm3073_vm2, %v4605_v24, 0.0  ;;  %v3186_v45 = vmul.f32 %v4605_v24, %v4605_v24 }
 0x22e   : > { %v3228_v32 = vsel %vm3073_vm2, %v3187_v54, 0.0  ;;  %v3188_v50 = vmul.f32 %v4604_v20, %v4604_v20  ;;  %v3124_v39 = vadd.f32 %v3123_v16, %v3122_v33  ;;  %v4606_v63 = vadd.f32 %v4542_v26, %v5762_v30 }
 0x22f   : > { %v3662_v52 = vadd.f32 %v3661_v28, %v3660_v53  ;;  %v3226_v19 = vsel %vm3073_vm2, %v3186_v45, 0.0  ;;  %v3562_v31 = vadd.f32 %v3561_v38, %v3560_v49  ;;  %v3563_v35 = vsel %vm3073_vm2, %v3429_v58, 0.0 }
 0x230   : > { %v5941_v44 = vpop.f32.mrb[48].mxu1  ;;  %v3663_v29 = vsel %vm3073_vm2, %v3621_v43, 0.0  ;;  %v3127_v36 = vsel %vm3073_vm2, %v4604_v20, 0.0  ;;  %v3126_v30 = vadd.f32 %v3125_v6, %v3124_v39  ;;  %v3227_v26 = vadd.f32 %v3226_v19, %v3225_v61  ;;  %3088 = vst.msk [vmem:[%s5814_s18 + $0x70] sm:$0xff] %vm3073_vm2, %v4606_v63 }
 0x231   : > { %3526 = vst.msk [vmem:[%s5806_s14 + $0x90] sm:$0xff] %vm3073_vm2, %v5941_v44  ;;  %v4546_v60 = vpop.f32.mrb[16].mxu0  ;;  %v5948_v18 = vpop.f32.mrb[49].mxu1  ;;  %v3624_v37 = vmul.f32 %v5900_v41, %v5900_v41  ;;  %v3564_v54 = vadd.f32 %v3563_v35, %v3562_v31  ;;  %v3622_v0 = vmul.f32 %v3429_v58, %v3429_v58  ;;  %v3664_v33 = vadd.f32 %v3663_v29, %v3662_v52 }
 0x232   : > { %3524 = vst.msk [vmem:[%s5806_s14 + $0x80] sm:$0xff] %vm3073_vm2, %v5948_v18  ;;  %v5957_v15 = vpop.f32.mrb[17].mxu0  ;;  %v5959_v47 = vpop.f32.mrb[50].mxu1  ;;  %v3229_v20 = vadd.f32 %v3228_v32, %v3227_v26  ;;  %v3567_v4 = vsel %vm3073_vm2, %v5900_v41, 0.0  ;;  %v4607_v3 = vadd.f32 %v2962_v48, %v5764_v21  ;;  %v3128_v28 = vadd.f32 %v3127_v36, %v3126_v30 }
 0x233   : > { %3527 = vst.msk [vmem:[%s5806_s14 + $0x98] sm:$0xff] %vm3073_vm2, %v5959_v47  ;;  %v5966_v5 = vpop.f32.mrb[18].mxu0  ;;  %v5968_v17 = vpop.f32.mrb[51].mxu1  ;;  %v3230_v61 = vsel %vm3073_vm2, %v3188_v50, 0.0  ;;  %v3191_v46 = vmul.f32 %v4606_v63, %v4606_v63  ;;  %v3665_v24 = vsel %vm3073_vm2, %v3622_v0, 0.0  ;;  %v4608_v6 = vadd.f32 %v4543_v25, %v5766_v22 }
 0x234   : > { %3525 = vst.msk [vmem:[%s5806_s14 + $0x88] sm:$0xff] %vm3073_vm2, %v5968_v17  ;;  %v5976_v58 = vpop.f32.mrb[19].mxu0  ;;  %v3666_v38 = vadd.f32 %v3665_v24, %v3664_v33  ;;  %3086 = vst.msk [vmem:[%s5814_s18 + $0x60] sm:$0xff] %vm3073_vm2, %v4607_v3  ;;  %v3129_v41 = vsel %vm3073_vm2, %v4607_v3, 0.0  ;;  %v3189_v21 = vmul.f32 %v4607_v3, %v4607_v3  ;;  %v3231_v48 = vadd.f32 %v3230_v61, %v3229_v20 }
 0x235   : > { %v3669_v43 = vsel %vm3073_vm2, %v3624_v37, 0.0  ;;  %v3133_v34 = vsel %vm3073_vm2, %v4606_v63, 0.0  ;;  %v3130_v49 = vadd.f32 %v3129_v41, %v3128_v28  ;;  %v3625_v53 = vmul.f32 %v5911_v59, %v5911_v59  ;;  %3089 = vst.msk [vmem:[%s5814_s18 + $0x78] sm:$0xff] %vm3073_vm2, %v4608_v6 }
 0x236   : > { %v3232_v22 = vsel %vm3073_vm2, %v3189_v21, 0.0  ;;  %v3565_v25 = vsel %vm3073_vm2, %v5916_v62, 0.0  ;;  %v3623_v16 = vmul.f32 %v5916_v62, %v5916_v62  ;;  %v4609_v45 = vadd.f32 %v5924_v57, %v5768_v23 }
 0x237   : > { %v3236_v50 = vsel %vm3073_vm2, %v3191_v46, 0.0  ;;  %v3233_v39 = vadd.f32 %v3232_v22, %v3231_v48  ;;  %v3569_v63 = vsel %vm3073_vm2, %v5911_v59, 0.0  ;;  %v3566_v52 = vadd.f32 %v3565_v25, %v3564_v54 }
 0x238   : > { %v5997_v32 = vpop.f32.mrb[52].mxu1  ;;  %v3192_v62 = vmul.f32 %v4608_v6, %v4608_v6  ;;  %v3667_v23 = vsel %vm3073_vm2, %v3623_v16, 0.0  ;;  %3087 = vst.msk [vmem:[%s5814_s18 + $0x68] sm:$0xff] %vm3073_vm2, %v4609_v45  ;;  %v3131_v57 = vsel %vm3073_vm2, %v4609_v45, 0.0  ;;  %v3190_v35 = vmul.f32 %v4609_v45, %v4609_v45 }
 0x239   : > { %3530 = vst.msk [vmem:[%s5806_s14 + $0xb0] sm:$0xff] %vm3073_vm2, %v5997_v32  ;;  %v6005_v19 = vpop.f32.mrb[20].mxu0  ;;  %v6007_v31 = vpop.f32.mrb[53].mxu1  ;;  %v3568_v36 = vadd.f32 %v3567_v4, %v3566_v52  ;;  %v3668_v30 = vadd.f32 %v3667_v23, %v3666_v38  ;;  %v3132_v26 = vadd.f32 %v3131_v57, %v3130_v49  ;;  %v4610_v37 = vadd.f32 %v4546_v60, %v5770_v27 }
 0x23a   : > { %3528 = vst.msk [vmem:[%s5806_s14 + $0xa0] sm:$0xff] %vm3073_vm2, %v6007_v31  ;;  %v6016_v59 = vpop.f32.mrb[21].mxu0  ;;  %v6018_v29 = vpop.f32.mrb[54].mxu1  ;;  %v3671_v33 = vsel %vm3073_vm2, %v3625_v53, 0.0  ;;  %v3135_v20 = vsel %vm3073_vm2, %v4608_v6, 0.0  ;;  %v3234_v3 = vsel %vm3073_vm2, %v3190_v35, 0.0  ;;  %v3626_v4 = vmul.f32 %v5948_v18, %v5948_v18 }
 0x23b   : > { %3531 = vst.msk [vmem:[%s5806_s14 + $0xb8] sm:$0xff] %vm3073_vm2, %v6018_v29  ;;  %v6024_v54 = vpop.f32.mrb[22].mxu0  ;;  %v6026_v0 = vpop.f32.mrb[55].mxu1  ;;  %v3670_v60 = vadd.f32 %v3669_v43, %v3668_v30  ;;  %v3134_v28 = vadd.f32 %v3133_v34, %v3132_v26  ;;  %v3235_v61 = vadd.f32 %v3234_v3, %v3233_v39  ;;  %3092 = vst.msk [vmem:[%s5814_s18 + $0x90] sm:$0xff] %vm3073_vm2, %v4610_v37  ;;  %v3571_v46 = vsel %vm3073_vm2, %v5948_v18, 0.0 }
 0x23c   : > { %3529 = vst.msk [vmem:[%s5806_s14 + $0xa8] sm:$0xff] %vm3073_vm2, %v6026_v0  ;;  %v6036_v27 = vpop.f32.mrb[23].mxu0  ;;  %v3238_v24 = vsel %vm3073_vm2, %v3192_v62, 0.0  ;;  %v3570_v6 = vadd.f32 %v3569_v63, %v3568_v36  ;;  %v3673_v38 = vsel %vm3073_vm2, %v3626_v4, 0.0  ;;  %v4611_v41 = vadd.f32 %v5957_v15, %v5772_v40 }
 0x23d   : > { %v3237_v21 = vadd.f32 %v3236_v50, %v3235_v61  ;;  %v3628_v48 = vmul.f32 %v5941_v44, %v5941_v44  ;;  %v3672_v43 = vadd.f32 %v3671_v33, %v3670_v60  ;;  %v3136_v34 = vadd.f32 %v3135_v20, %v3134_v28 }
 0x23e   : > { %v3575_v49 = vsel %vm3073_vm2, %v5941_v44, 0.0  ;;  %v3572_v53 = vadd.f32 %v3571_v46, %v3570_v6  ;;  %3090 = vst.msk [vmem:[%s5814_s18 + $0x80] sm:$0xff] %vm3073_vm2, %v4611_v41  ;;  %v3137_v18 = vsel %vm3073_vm2, %v4611_v41, 0.0  ;;  %v3193_v22 = vmul.f32 %v4611_v41, %v4611_v41 }
 0x23f   : > { %v3195_v16 = vmul.f32 %v4610_v37, %v4610_v37  ;;  %v3674_v40 = vadd.f32 %v3673_v38, %v3672_v43  ;;  %v3138_v15 = vadd.f32 %v3137_v18, %v3136_v34  ;;  %v3239_v45 = vadd.f32 %v3238_v24, %v3237_v21 }
 0x240   : > { %v6053_v25 = vpop.f32.mrb[56].mxu1  ;;  %v3240_v39 = vsel %vm3073_vm2, %v3193_v22, 0.0  ;;  %v4612_v63 = vadd.f32 %v5966_v5, %v5774_v42  ;;  %v3573_v52 = vsel %vm3073_vm2, %v5968_v17, 0.0  ;;  %v3627_v62 = vmul.f32 %v5968_v17, %v5968_v17 }
 0x241   : > { %3534 = vst.msk [vmem:[%s5806_s14 + $0xd0] sm:$0xff] %vm3073_vm2, %v6053_v25  ;;  %v6058_v50 = vpop.f32.mrb[24].mxu0  ;;  %v6060_v44 = vpop.f32.mrb[57].mxu1  ;;  %v3677_v35 = vsel %vm3073_vm2, %v3628_v48, 0.0  ;;  %v3241_v36 = vadd.f32 %v3240_v39, %v3239_v45  ;;  %v3574_v42 = vadd.f32 %v3573_v52, %v3572_v53  ;;  %v4613_v5 = vadd.f32 %v5976_v58, %v5776_v51 }
 0x242   : > { %3532 = vst.msk [vmem:[%s5806_s14 + $0xc0] sm:$0xff] %vm3073_vm2, %v6060_v44  ;;  %v6072_v23 = vpop.f32.mrb[25].mxu0  ;;  %v6074_v57 = vpop.f32.mrb[58].mxu1  ;;  %v3141_v26 = vsel %vm3073_vm2, %v4610_v37, 0.0  ;;  %v3577_v33 = vsel %vm3073_vm2, %v5959_v47, 0.0  ;;  %v3629_v20 = vmul.f32 %v5959_v47, %v5959_v47  ;;  %3093 = vst.msk [vmem:[%s5814_s18 + $0x98] sm:$0xff] %vm3073_vm2, %v4612_v63  ;;  %v3196_v47 = vmul.f32 %v4612_v63, %v4612_v63 }
 0x243   : > { %3535 = vst.msk [vmem:[%s5806_s14 + $0xd8] sm:$0xff] %vm3073_vm2, %v6074_v57  ;;  %v6082_v17 = vpop.f32.mrb[26].mxu0  ;;  %v6084_v30 = vpop.f32.mrb[59].mxu1  ;;  %v3675_v3 = vsel %vm3073_vm2, %v3627_v62, 0.0  ;;  %v3576_v58 = vadd.f32 %v3575_v49, %v3574_v42  ;;  %3091 = vst.msk [vmem:[%s5814_s18 + $0x88] sm:$0xff] %vm3073_vm2, %v4613_v5  ;;  %v3139_v37 = vsel %vm3073_vm2, %v4613_v5, 0.0  ;;  %v3194_v60 = vmul.f32 %v4613_v5, %v4613_v5 }
 0x244   : > { %3533 = vst.msk [vmem:[%s5806_s14 + $0xc8] sm:$0xff] %vm3073_vm2, %v6084_v30  ;;  %v6097_v51 = vpop.f32.mrb[27].mxu0  ;;  %v3676_v4 = vadd.f32 %v3675_v3, %v3674_v40  ;;  %v3244_v28 = vsel %vm3073_vm2, %v3195_v16, 0.0  ;;  %v3140_v61 = vadd.f32 %v3139_v37, %v3138_v15  ;;  %v4614_v46 = vadd.f32 %v6005_v19, %v5778_v55 }
 0x245   : > { %v3242_v6 = vsel %vm3073_vm2, %v3194_v60, 0.0  ;;  %v3578_v38 = vadd.f32 %v3577_v33, %v3576_v58  ;;  %v3579_v41 = vsel %vm3073_vm2, %v6007_v31, 0.0  ;;  %v3679_v21 = vsel %vm3073_vm2, %v3629_v20, 0.0 }
 0x246   : > { %v3678_v24 = vadd.f32 %v3677_v35, %v3676_v4  ;;  %v3143_v48 = vsel %vm3073_vm2, %v4612_v63, 0.0  ;;  %v3142_v43 = vadd.f32 %v3141_v26, %v3140_v61  ;;  %v3243_v34 = vadd.f32 %v3242_v6, %v3241_v36  ;;  %3096 = vst.msk [vmem:[%s5814_s18 + $0xb0] sm:$0xff] %vm3073_vm2, %v4614_v46 }
 0x247   : > { %v3632_v55 = vmul.f32 %v5997_v32, %v5997_v32  ;;  %v3580_v19 = vadd.f32 %v3579_v41, %v3578_v38  ;;  %v3630_v53 = vmul.f32 %v6007_v31, %v6007_v31  ;;  %v4615_v15 = vadd.f32 %v6016_v59, %v5780_v56 }
 0x248   : > { %v6112_v49 = vpop.f32.mrb[60].mxu1  ;;  %v3680_v18 = vadd.f32 %v3679_v21, %v3678_v24  ;;  %v3245_v40 = vadd.f32 %v3244_v28, %v3243_v34  ;;  %v3144_v45 = vadd.f32 %v3143_v48, %v3142_v43  ;;  %v3246_v63 = vsel %vm3073_vm2, %v3196_v47, 0.0 }
 0x249   : > { %3538 = vst.msk [vmem:[%s5806_s14 + $0xf0] sm:$0xff] %vm3073_vm2, %v6112_v49  ;;  %v6121_v22 = vpop.f32.mrb[28].mxu0  ;;  %v6123_v16 = vpop.f32.mrb[61].mxu1  ;;  %v3199_v52 = vmul.f32 %v4614_v46, %v4614_v46  ;;  %v3681_v62 = vsel %vm3073_vm2, %v3630_v53, 0.0  ;;  %v4616_v35 = vadd.f32 %v6024_v54, %v5782_v1  ;;  %3094 = vst.msk [vmem:[%s5814_s18 + $0xa0] sm:$0xff] %vm3073_vm2, %v4615_v15  ;;  %v3145_v42 = vsel %vm3073_vm2, %v4615_v15, 0.0 }
 0x24a   : > { %3536 = vst.msk [vmem:[%s5806_s14 + $0xe0] sm:$0xff] %vm3073_vm2, %v6123_v16  ;;  %v6130_v39 = vpop.f32.mrb[29].mxu0  ;;  %v6132_v31 = vpop.f32.mrb[62].mxu1  ;;  %v3682_v36 = vadd.f32 %v3681_v62, %v3680_v18  ;;  %v3197_v5 = vmul.f32 %v4615_v15, %v4615_v15  ;;  %v3247_v26 = vadd.f32 %v3246_v63, %v3245_v40  ;;  %v3583_v1 = vsel %vm3073_vm2, %v5997_v32, 0.0 }
 0x24b   : > { %3539 = vst.msk [vmem:[%s5806_s14 + $0xf8] sm:$0xff] %vm3073_vm2, %v6132_v31  ;;  %v6141_v56 = vpop.f32.mrb[30].mxu0  ;;  %v6143_v59 = vpop.f32.mrb[63].mxu1  ;;  %v3685_v54 = vsel %vm3073_vm2, %v3632_v55, 0.0  ;;  %v3146_v20 = vadd.f32 %v3145_v42, %v3144_v45  ;;  %v3633_v3 = vmul.f32 %v6018_v29, %v6018_v29  ;;  %3097 = vst.msk [vmem:[%s5814_s18 + $0xb8] sm:$0xff] %vm3073_vm2, %v4616_v35  ;;  %v3581_v4 = vsel %vm3073_vm2, %v6026_v0, 0.0 }
 0x24c   : > { %3537 = vst.msk [vmem:[%s5806_s14 + $0xe8] sm:$0xff] %vm3073_vm2, %v6143_v59  ;;  %v6151_v33 = vpop.f32.mrb[31].mxu0  ;;  %v3248_v58 = vsel %vm3073_vm2, %v3197_v5, 0.0  ;;  %v3631_v37 = vmul.f32 %v6026_v0, %v6026_v0  ;;  %v4617_v60 = vadd.f32 %v6036_v27, %v5784_v7  ;;  %v3149_v32 = vsel %vm3073_vm2, %v4614_v46, 0.0 }
 0x24d   : > { %v3249_v28 = vadd.f32 %v3248_v58, %v3247_v26  ;;  %v3585_v47 = vsel %vm3073_vm2, %v6018_v29, 0.0  ;;  %v3582_v61 = vadd.f32 %v3581_v4, %v3580_v19  ;;  %v3252_v24 = vsel %vm3073_vm2, %v3199_v52, 0.0 }
 0x24e   : > { %v3683_v6 = vsel %vm3073_vm2, %v3631_v37, 0.0  ;;  %3095 = vst.msk [vmem:[%s5814_s18 + $0xa8] sm:$0xff] %vm3073_vm2, %v4617_v60  ;;  %v3147_v38 = vsel %vm3073_vm2, %v4617_v60, 0.0  ;;  %v3198_v0 = vmul.f32 %v4617_v60, %v4617_v60  ;;  %v4618_v27 = vadd.f32 %v6058_v50, %v5786_v8 }
 0x24f   : > { %v3584_v41 = vadd.f32 %v3583_v1, %v3582_v61  ;;  %v3684_v21 = vadd.f32 %v3683_v6, %v3682_v36  ;;  %v3148_v7 = vadd.f32 %v3147_v38, %v3146_v20  ;;  %v3687_v46 = vsel %vm3073_vm2, %v3633_v3, 0.0 }
 0x250   : > { %v3200_v29 = vmul.f32 %v4616_v35, %v4616_v35  ;;  %v3250_v48 = vsel %vm3073_vm2, %v3198_v0, 0.0  ;;  %v3634_v43 = vmul.f32 %v6060_v44, %v6060_v44  ;;  %3100 = vst.msk [vmem:[%s5814_s18 + $0xd0] sm:$0xff] %vm3073_vm2, %v4618_v27  ;;  %v3587_v53 = vsel %vm3073_vm2, %v6060_v44, 0.0 }
 0x251   : > { %v3686_v34 = vadd.f32 %v3685_v54, %v3684_v21  ;;  %v3150_v55 = vadd.f32 %v3149_v32, %v3148_v7  ;;  %v3251_v19 = vadd.f32 %v3250_v48, %v3249_v28  ;;  %v3151_v18 = vsel %vm3073_vm2, %v4616_v35, 0.0 }
 0x252   : > { %v3586_v8 = vadd.f32 %v3585_v47, %v3584_v41  ;;  %v3689_v50 = vsel %vm3073_vm2, %v3634_v43, 0.0  ;;  %v4619_v40 = vadd.f32 %v6072_v23, %v5788_v2  ;;  %v3636_v45 = vmul.f32 %v6053_v25, %v6053_v25 }
 0x253   : > { %v3253_v15 = vadd.f32 %v3252_v24, %v3251_v19  ;;  %v3688_v63 = vadd.f32 %v3687_v46, %v3686_v34  ;;  %v3152_v52 = vadd.f32 %v3151_v18, %v3150_v55  ;;  %v3254_v62 = vsel %vm3073_vm2, %v3200_v29, 0.0 }
 0x254   : > { %v3588_v36 = vadd.f32 %v3587_v53, %v3586_v8  ;;  %3098 = vst.msk [vmem:[%s5814_s18 + $0xc0] sm:$0xff] %vm3073_vm2, %v4619_v40  ;;  %v3153_v44 = vsel %vm3073_vm2, %v4619_v40, 0.0  ;;  %v3201_v35 = vmul.f32 %v4619_v40, %v4619_v40  ;;  %v3591_v42 = vsel %vm3073_vm2, %v6053_v25, 0.0 }
 0x255   : > { %v3690_v5 = vadd.f32 %v3689_v50, %v3688_v63  ;;  %v3154_v2 = vadd.f32 %v3153_v44, %v3152_v52  ;;  %v3255_v23 = vadd.f32 %v3254_v62, %v3253_v15  ;;  %v4620_v1 = vadd.f32 %v6082_v17, %v5790_v13 }
 0x256   : > { %v3256_v26 = vsel %vm3073_vm2, %v3201_v35, 0.0  ;;  %v3589_v54 = vsel %vm3073_vm2, %v6084_v30, 0.0  ;;  %v3635_v20 = vmul.f32 %v6084_v30, %v6084_v30  ;;  %v3693_v3 = vsel %vm3073_vm2, %v3636_v45, 0.0 }
 0x257   : > { %v3257_v58 = vadd.f32 %v3256_v26, %v3255_v23  ;;  %v3590_v4 = vadd.f32 %v3589_v54, %v3588_v36  ;;  %v4621_v25 = vadd.f32 %v6097_v51, %v5792_v14  ;;  %v3157_v37 = vsel %vm3073_vm2, %v4618_v27, 0.0  ;;  %3101 = vst.msk [vmem:[%s5814_s18 + $0xd8] sm:$0xff] %vm3073_vm2, %v4620_v1 }
 0x258   : > { %v3203_v60 = vmul.f32 %v4618_v27, %v4618_v27  ;;  %v3637_v32 = vmul.f32 %v6074_v57, %v6074_v57  ;;  %v3691_v13 = vsel %vm3073_vm2, %v3635_v20, 0.0  ;;  %v3593_v14 = vsel %vm3073_vm2, %v6074_v57, 0.0 }
 0x259   : > { %v3592_v17 = vadd.f32 %v3591_v42, %v3590_v4  ;;  %v3692_v28 = vadd.f32 %v3691_v13, %v3690_v5  ;;  %3099 = vst.msk [vmem:[%s5814_s18 + $0xc8] sm:$0xff] %vm3073_vm2, %v4621_v25  ;;  %v3155_v30 = vsel %vm3073_vm2, %v4621_v25, 0.0  ;;  %v3202_v47 = vmul.f32 %v4621_v25, %v4621_v25 }
 0x25a   : > { %v3204_v51 = vmul.f32 %v4620_v1, %v4620_v1  ;;  %v3156_v61 = vadd.f32 %v3155_v30, %v3154_v2  ;;  %v4622_v24 = vadd.f32 %v6121_v22, %v5794_v9  ;;  %v3595_v41 = vsel %vm3073_vm2, %v6123_v16, 0.0 }
 0x25b   : > { %v3694_v6 = vadd.f32 %v3693_v3, %v3692_v28  ;;  %v3258_v38 = vsel %vm3073_vm2, %v3202_v47, 0.0  ;;  %v3594_v0 = vadd.f32 %v3593_v14, %v3592_v17  ;;  %v3260_v21 = vsel %vm3073_vm2, %v3203_v60, 0.0 }
 0x25c   : > { %v3695_v7 = vsel %vm3073_vm2, %v3637_v32, 0.0  ;;  %v3158_v27 = vadd.f32 %v3157_v37, %v3156_v61  ;;  %v3259_v46 = vadd.f32 %v3258_v38, %v3257_v58  ;;  %3104 = vst.msk [vmem:[%s5814_s18 + $0xf0] sm:$0xff] %vm3073_vm2, %v4622_v24  ;;  %v3159_v57 = vsel %vm3073_vm2, %v4620_v1, 0.0 }
 0x25d   : > { %v3596_v29 = vadd.f32 %v3595_v41, %v3594_v0  ;;  %v3638_v9 = vmul.f32 %v6123_v16, %v6123_v16  ;;  %v3696_v22 = vadd.f32 %v3695_v7, %v3694_v6  ;;  %v4623_v43 = vadd.f32 %v6130_v39, %v5796_v10 }
 0x25e   : > { %v3261_v48 = vadd.f32 %v3260_v21, %v3259_v46  ;;  %v3160_v34 = vadd.f32 %v3159_v57, %v3158_v27  ;;  %v3262_v55 = vsel %vm3073_vm2, %v3204_v51, 0.0  ;;  %v4624_v53 = vadd.f32 %v6141_v56, %v5798_v11 }
 0x25f   : > { %v3697_v19 = vsel %vm3073_vm2, %v3638_v9, 0.0  ;;  %3102 = vst.msk [vmem:[%s5814_s18 + $0xe0] sm:$0xff] %vm3073_vm2, %v4623_v43  ;;  %v3161_v8 = vsel %vm3073_vm2, %v4623_v43, 0.0  ;;  %v3205_v16 = vmul.f32 %v4623_v43, %v4623_v43  ;;  %v3640_v40 = vmul.f32 %v6112_v49, %v6112_v49 }
 0x260   : > { %v3698_v18 = vadd.f32 %v3697_v19, %v3696_v22  ;;  %v3263_v50 = vadd.f32 %v3262_v55, %v3261_v48  ;;  %v3162_v10 = vadd.f32 %v3161_v8, %v3160_v34  ;;  %3105 = vst.msk [vmem:[%s5814_s18 + $0xf8] sm:$0xff] %vm3073_vm2, %v4624_v53  ;;  %v3597_v15 = vsel %vm3073_vm2, %v6143_v59, 0.0 }
 0x261   : > { %v3264_v39 = vsel %vm3073_vm2, %v3205_v16, 0.0  ;;  %v3639_v11 = vmul.f32 %v6143_v59, %v6143_v59  ;;  %v4625_v56 = vadd.f32 %v6151_v33, %v5800_v12  ;;  %v3599_v45 = vsel %vm3073_vm2, %v6112_v49, 0.0 }
 0x262   : > { %v3207_v63 = vmul.f32 %v4622_v24, %v4622_v24  ;;  %v3265_v52 = vadd.f32 %v3264_v39, %v3263_v50  ;;  %v3598_v62 = vadd.f32 %v3597_v15, %v3596_v29  ;;  %v3641_v36 = vmul.f32 %v6132_v31, %v6132_v31 }
 0x263   : > { %v3699_v44 = vsel %vm3073_vm2, %v3639_v11, 0.0  ;;  %3103 = vst.msk [vmem:[%s5814_s18 + $0xe8] sm:$0xff] %vm3073_vm2, %v4625_v56  ;;  %v3163_v35 = vsel %vm3073_vm2, %v4625_v56, 0.0  ;;  %v3206_v42 = vmul.f32 %v4625_v56, %v4625_v56  ;;  %v3701_v59 = vsel %vm3073_vm2, %v3640_v40, 0.0 }
 0x264   : > { %v3600_v5 = vadd.f32 %v3599_v45, %v3598_v62  ;;  %v3700_v12 = vadd.f32 %v3699_v44, %v3698_v18  ;;  %v3164_v33 = vadd.f32 %v3163_v35, %v3162_v10  ;;  %v3165_v49 = vsel %vm3073_vm2, %v4622_v24, 0.0 }
 0x265   : > { %v3601_v2 = vsel %vm3073_vm2, %v6132_v31, 0.0  ;;  %v3208_v23 = vmul.f32 %v4624_v53, %v4624_v53  ;;  %v3266_v26 = vsel %vm3073_vm2, %v3206_v42, 0.0  ;;  %v3268_v58 = vsel %vm3073_vm2, %v3207_v63, 0.0 }
 0x266   : > { %v3602_v1 = vadd.f32 %v3601_v2, %v3600_v5  ;;  %v3702_v54 = vadd.f32 %v3701_v59, %v3700_v12  ;;  %v3166_v20 = vadd.f32 %v3165_v49, %v3164_v33  ;;  %v3267_v3 = vadd.f32 %v3266_v26, %v3265_v52 }
 0x267   : > { %v3703_v4 = vsel %vm3073_vm2, %v3641_v36, 0.0  ;;  %v3167_v25 = vsel %vm3073_vm2, %v4624_v53, 0.0  ;;  %v3270_v17 = vsel %vm3073_vm2, %v3208_v23, 0.0 }
 0x268   : > { %v3603_v37 = vrot.slane %v3602_v1, 4  ;;  %v3704_v60 = vadd.f32 %v3703_v4, %v3702_v54  ;;  %v3168_v32 = vadd.f32 %v3167_v25, %v3166_v20  ;;  %v3269_v13 = vadd.f32 %v3268_v58, %v3267_v3 }
 0x26a   : > { %v3604_v31 = vadd.f32 %v3603_v37, %v3602_v1  ;;  %v3705_v28 = vrot.slane %v3704_v60, 4  ;;  %v3169_v30 = vrot.slane %v3168_v32, 4  ;;  %v3271_v47 = vadd.f32 %v3270_v17, %v3269_v13 }
 0x26c   : > { %v3605_v14 = vrot.slane %v3604_v31, 2  ;;  %v3706_v51 = vadd.f32 %v3705_v28, %v3704_v60  ;;  %v3170_v61 = vadd.f32 %v3169_v30, %v3168_v32  ;;  %v3272_v24 = vrot.slane %v3271_v47, 4 }
 0x26e   : > { %v3606_v6 = vadd.f32 %v3605_v14, %v3604_v31  ;;  %v3707_v38 = vrot.slane %v3706_v51, 2  ;;  %v3171_v0 = vrot.slane %v3170_v61, 2  ;;  %v3273_v41 = vadd.f32 %v3272_v24, %v3271_v47 }
 0x270   : > { %v3607_v21 = vrot.slane %v3606_v6, 1  ;;  %v3708_v7 = vadd.f32 %v3707_v38, %v3706_v51  ;;  %v3172_v27 = vadd.f32 %v3171_v0, %v3170_v61  ;;  %v3274_v46 = vrot.slane %v3273_v41, 2 }
 0x272   : > { %v3608_v57 = vadd.f32 %v3607_v21, %v3606_v6  ;;  %v3709_v29 = vrot.slane %v3708_v7, 1  ;;  %v3173_v9 = vrot.slane %v3172_v27, 1  ;;  %v3275_v22 = vadd.f32 %v3274_v46, %v3273_v41 }
 0x274   : > { %3609 = vst.msk [vmem:[%s347_s20] sm:$0x1] %vm3175_vm3, %v3608_v57  ;;  %v3710_v48 = vadd.f32 %v3709_v29, %v3708_v7  ;;  %v3174_v43 = vadd.f32 %v3173_v9, %v3172_v27  ;;  %v3276_v34 = vrot.slane %v3275_v22, 1 }
 0x276   : > { %3711 = vst.msk [vmem:[%s350_s23] sm:$0x1] %vm3175_vm3, %v3710_v48  ;;  %3176 = vst.msk [vmem:[%s336_s26] sm:$0x1] %vm3175_vm3, %v3174_v43  ;;  %v3277_v55 = vadd.f32 %v3276_v34, %v3275_v22 }
 0x278   : > { %3278 = vst.msk [vmem:[%s339_s9] sm:$0x1] %vm3175_vm3, %v3277_v55 }
 0x279 PF: > { %s19_s27 = sadd.s32 1, %s4875_s27  }
 0x27a   : > { %p16_p4 = scmp.ge.s32.totalorder %s19_s27, 4  }
 0x27c   :  { %18 = sbr.rel (!%p16_p4) target bundleno = 1 (0x1), region = 132 }

</bundles_post_ra>
